<compile_context>
chip_gen: v7x
topology: tpu7x:2x2x1
jax: 0.10.0
libtpu: 0.0.40
codegen_flags: <defaults>
</compile_context>

<pallas_src>
import jax
import jax.numpy as jnp
from jax.experimental import pallas as pl
from jax.experimental.pallas import tpu as pltpu


def _double_conv_kernel(x_ref, w1_ref, b1_ref, w2_ref, b2_ref, o_ref, xw_ref, mid_ref):
    # x_ref  : (1, H, W, Cin)      one batch element, NHWC, no halo
    # w1_ref : (9*Cin, Cp)         conv1 weights, rows ordered (kh, kw, cin)
    # b1_ref : (1, Cp)             f32
    # w2_ref : (3, 3*Cp, Cp)       conv2 weights, per-kh rows ordered (kw, cin)
    # b2_ref : (1, Cp)             f32
    # o_ref  : (1, H*W, Cout)      only the useful channels go back to HBM
    # xw_ref : (H+2, W, 3*Cin)     kw-packed input, zero top/bottom halo rows
    # mid_ref: (H+2, W, 3*Cp)      kw-packed conv1 activation, zero halo rows
    _, H, W, Cin = x_ref.shape
    Cp = w1_ref.shape[-1]
    Cout = o_ref.shape[-1]
    HW = H * W
    cdt = mid_ref.dtype

    def pack_kw(a):
        # a: (H, W, C) -> (H, W, 3*C) with lane blocks [a[:,w-1,:], a[:,w,:], a[:,w+1,:]]
        # and zero fill at the W edges.  The +/-1 column shifts are sublane shifts (XLU),
        # done exactly once per conv (equivalent to pltpu.roll + edge masking).
        C = a.shape[-1]
        zcol = jnp.zeros((H, 1, C), a.dtype)
        left = jnp.concatenate([zcol, a[:, :W - 1, :]], axis=1)   # [h, w] = a[h, w-1]
        right = jnp.concatenate([a[:, 1:, :], zcol], axis=1)      # [h, w] = a[h, w+1]
        return jnp.concatenate([left, a, right], axis=-1)

    zrow_x = jnp.zeros((W, 3 * Cin), cdt)
    zrow_m = jnp.zeros((W, 3 * Cp), cdt)

    # ---- conv1: one im2col GEMM, K = 9*Cin ------------------------------------------
    xw_ref[0, :, :] = zrow_x               # only the 2 halo rows are zeroed per step
    xw_ref[H + 1, :, :] = zrow_x
    xw_ref[1:H + 1, :, :] = pack_kw(x_ref[0]).astype(cdt)
    # kh taps are free leading-dim slices; lane-concat yields the (kh, kw, cin) order
    # that matches w1_ref's rows.
    patch1 = jnp.concatenate(
        [xw_ref[kh:kh + H, :, :] for kh in range(3)], axis=-1).reshape(HW, 9 * Cin)
    acc1 = jnp.dot(patch1, w1_ref[...], preferred_element_type=jnp.float32)
    acc1 = acc1 + b1_ref[...]
    relu1 = jnp.maximum(acc1, 0.0).reshape(H, W, Cp)

    # ---- conv2: 3 GEMMs, K = 3*Cp (MXU-internal kw accumulation) ---------------------
    mid_ref[0, :, :] = zrow_m
    mid_ref[H + 1, :, :] = zrow_m
    mid_ref[1:H + 1, :, :] = pack_kw(relu1.astype(cdt))
    acc2 = jnp.broadcast_to(b2_ref[...], (HW, Cp)).astype(jnp.float32)
    for kh in range(3):                    # 3 taps, single live accumulator
        patch2 = mid_ref[kh:kh + H, :, :].reshape(HW, 3 * Cp)
        acc2 = acc2 + jnp.dot(patch2, w2_ref[kh], preferred_element_type=jnp.float32)
    relu2 = jnp.maximum(acc2, 0.0)

    # Slice the lane padding away before the store: HBM writeback = useful bytes only.
    o_ref[0, :, :] = relu2[:, :Cout].astype(o_ref.dtype)


def double_conv_nhwc(x_nhwc, w1_oihw, b1, w2_oihw, b2, *, compute_dtype=jnp.bfloat16):
    """ReLU(conv2(ReLU(conv1(x)))), 3x3 convs, stride 1, padding 1.  NHWC activations."""
    N, H, W, Cin = x_nhwc.shape
    Cout = w1_oihw.shape[0]
    Cp = ((Cout + 127) // 128) * 128        # lane-dense GEMM N dimension

    # Weight/bias prep (tiny, one-time): OIHW -> HWIO, zero-pad channels to Cp, reshape
    # to the kernel's GEMM layouts.  Padded channels are exactly zero end-to-end.
    w1 = jnp.transpose(w1_oihw, (2, 3, 1, 0))                               # (3,3,Cin,Cout)
    w1r = jnp.pad(w1, ((0, 0), (0, 0), (0, 0), (0, Cp - Cout))
                  ).reshape(9 * Cin, Cp).astype(compute_dtype)
    w2 = jnp.transpose(w2_oihw, (2, 3, 1, 0))                               # (3,3,Cout,Cout)
    w2r = jnp.pad(w2, ((0, 0), (0, 0), (0, Cp - Cout), (0, Cp - Cout))
                  ).reshape(3, 3 * Cp, Cp).astype(compute_dtype)
    b1p = jnp.pad(b1, (0, Cp - Cout)).reshape(1, Cp).astype(jnp.float32)
    b2p = jnp.pad(b2, (0, Cp - Cout)).reshape(1, Cp).astype(jnp.float32)
    x = x_nhwc.astype(compute_dtype)

    inv = dict(pipeline_mode=pl.Buffered(1))   # invariant blocks: no double-buffer VMEM

    out = pl.pallas_call(
        _double_conv_kernel,
        out_shape=jax.ShapeDtypeStruct((N, H * W, Cout), x_nhwc.dtype),
        grid=(N,),
        in_specs=[
            pl.BlockSpec((1, H, W, Cin), lambda n: (n, 0, 0, 0)),
            pl.BlockSpec((9 * Cin, Cp), lambda n: (0, 0), **inv),
            pl.BlockSpec((1, Cp), lambda n: (0, 0), **inv),
            pl.BlockSpec((3, 3 * Cp, Cp), lambda n: (0, 0, 0), **inv),
            pl.BlockSpec((1, Cp), lambda n: (0, 0), **inv),
        ],
        out_specs=pl.BlockSpec((1, H * W, Cout), lambda n: (n, 0, 0)),
        scratch_shapes=[
            pltpu.VMEM((H + 2, W, 3 * Cin), compute_dtype),
            pltpu.VMEM((H + 2, W, 3 * Cp), compute_dtype),
        ],
        compiler_params=pltpu.CompilerParams(dimension_semantics=("parallel",)),
    )(x, w1r, b1p, w2r, b2p)

    return out.reshape(N, H, W, Cout)       # contiguous reshape, no data movement


def double_conv_nchw(x_nchw, w1_oihw, b1, w2_oihw, b2, *, compute_dtype=jnp.bfloat16):
    # TODO(synk): keep the surrounding model NHWC end-to-end; these transposes exist only
    #             to mirror the PyTorch NCHW interface and are extra HBM passes.
    x = jnp.transpose(x_nchw, (0, 2, 3, 1))
    y = double_conv_nhwc(x, w1_oihw, b1, w2_oihw, b2, compute_dtype=compute_dtype)
    return jnp.transpose(y, (0, 3, 1, 2))


def _reference(x, w1, b1, w2, b2):
    def conv_relu(x, w, b):
        y = jax.lax.conv_general_dilated(
            x, w, window_strides=(1, 1), padding="SAME",
            dimension_numbers=("NCHW", "OIHW", "NCHW"))
        return jnp.maximum(y + b[None, :, None, None], 0.0)
    return conv_relu(conv_relu(x, w1, b1), w2, b2)


if __name__ == "__main__":
    # DoubleConv(in_channels=4, out_channels=8), input NCHW = (2, 4, 16, 16)
    N, Cin, H, W, Cout = 2, 4, 16, 16, 8

    key = jax.random.PRNGKey(0)
    kx, k1, k2, k3, k4 = jax.random.split(key, 5)
    x = jax.random.normal(kx, (N, Cin, H, W), jnp.float32)
    w1 = jax.random.normal(k1, (Cout, Cin, 3, 3), jnp.float32) * 0.1
    b1 = jax.random.normal(k2, (Cout,), jnp.float32) * 0.1
    w2 = jax.random.normal(k3, (Cout, Cout, 3, 3), jnp.float32) * 0.1
    b2 = jax.random.normal(k4, (Cout,), jnp.float32) * 0.1

    expected = _reference(x, w1, b1, w2, b2)

    # f32 MXU operands: tight match vs the f32 reference.
    out_f32 = jax.block_until_ready(
        double_conv_nchw(x, w1, b1, w2, b2, compute_dtype=jnp.float32))
    assert out_f32.shape == (N, Cout, H, W)
    assert jnp.allclose(out_f32, expected, atol=1e-3, rtol=1e-3), (
        "Pallas DoubleConv (f32) mismatch vs reference")

    # bf16 MXU operands (default, f32 accumulation): the v6e/v7x fast path.
    out_bf16 = jax.block_until_ready(double_conv_nchw(x, w1, b1, w2, b2))
    assert jnp.allclose(out_bf16, expected, atol=5e-2, rtol=5e-2), (
        "Pallas DoubleConv (bf16 operands) mismatch vs reference")

    print("KERNEL_OK")
</pallas_src>

<mosaic_0001>
module attributes {stable_mosaic.version = 11 : i64} {
  func.func @_double_conv_kernel(%arg0: i32, %arg1: memref<1x16x16x4xf32, #tpu.memory_space<vmem>>, %arg2: memref<36x128xf32, #tpu.memory_space<vmem>>, %arg3: memref<1x128xf32, #tpu.memory_space<vmem>>, %arg4: memref<3x384x128xf32, #tpu.memory_space<vmem>>, %arg5: memref<1x128xf32, #tpu.memory_space<vmem>>, %arg6: memref<1x256x8xf32, #tpu.memory_space<vmem>>, %arg7: memref<18x16x12xf32, #tpu.memory_space<vmem>>, %arg8: memref<18x16x384xf32, #tpu.memory_space<vmem>>) attributes {dimension_semantics = [#tpu.dimension_semantics<parallel>], iteration_bounds = array<i64: 2>, scalar_prefetch = 0 : i64, scratch_operands = 2 : i64, tpu.core_type = #tpu.core_type<tc>, window_params = [{transform_indices = @transform_0, window_bounds = array<i64: 1, 16, 16, 4>}, {pipeline_mode = #tpu.pipeline_mode<synchronous>, transform_indices = @transform_1, window_bounds = array<i64: 36, 128>}, {pipeline_mode = #tpu.pipeline_mode<synchronous>, transform_indices = @transform_2, window_bounds = array<i64: 1, 128>}, {pipeline_mode = #tpu.pipeline_mode<synchronous>, transform_indices = @transform_3, window_bounds = array<i64: 3, 384, 128>}, {pipeline_mode = #tpu.pipeline_mode<synchronous>, transform_indices = @transform_4, window_bounds = array<i64: 1, 128>}, {transform_indices = @transform_5, window_bounds = array<i64: 1, 256, 8>}]} {
    %cst = arith.constant 0.000000e+00 : f32
    %0 = vector.broadcast %cst : f32 to vector<16x12xf32>
    %cst_0 = arith.constant 0.000000e+00 : f32
    %1 = vector.broadcast %cst_0 : f32 to vector<16x384xf32>
    %c0 = arith.constant 0 : index
    %c0_1 = arith.constant 0 : index
    %c0_2 = arith.constant 0 : index
    %2 = vector.load %arg7[%c0, %c0_1, %c0_2] : memref<18x16x12xf32, #tpu.memory_space<vmem>>, vector<1x16x12xf32>
    %3 = vector.shape_cast %2 : vector<1x16x12xf32> to vector<16x12xf32>
    %4 = vector.shape_cast %0 : vector<16x12xf32> to vector<1x16x12xf32>
    tpu.vector_store %arg7[%c0, %c0_1, %c0_2], %4 {strides = array<i32>} : memref<18x16x12xf32, #tpu.memory_space<vmem>>, vector<1x16x12xf32>,
    %c17 = arith.constant 17 : index
    %c0_3 = arith.constant 0 : index
    %c0_4 = arith.constant 0 : index
    %5 = vector.load %arg7[%c17, %c0_3, %c0_4] : memref<18x16x12xf32, #tpu.memory_space<vmem>>, vector<1x16x12xf32>
    %6 = vector.shape_cast %5 : vector<1x16x12xf32> to vector<16x12xf32>
    %7 = vector.shape_cast %0 : vector<16x12xf32> to vector<1x16x12xf32>
    tpu.vector_store %arg7[%c17, %c0_3, %c0_4], %7 {strides = array<i32>} : memref<18x16x12xf32, #tpu.memory_space<vmem>>, vector<1x16x12xf32>,
    %c0_5 = arith.constant 0 : index
    %c0_6 = arith.constant 0 : index
    %c0_7 = arith.constant 0 : index
    %c0_8 = arith.constant 0 : index
    %8 = vector.load %arg1[%c0_5, %c0_6, %c0_7, %c0_8] : memref<1x16x16x4xf32, #tpu.memory_space<vmem>>, vector<1x16x16x4xf32>
    %9 = vector.shape_cast %8 : vector<1x16x16x4xf32> to vector<16x16x4xf32>
    %cst_9 = arith.constant 0.000000e+00 : f32
    %10 = vector.broadcast %cst_9 : f32 to vector<16x1x4xf32>
    %11 = vector.extract_strided_slice %9 {offsets = [0, 0, 0], sizes = [16, 15, 4], strides = [1, 1, 1]} : vector<16x16x4xf32> to vector<16x15x4xf32>
    %12 = tpu.concatenate %10, %11 in 1 : vector<16x1x4xf32>, vector<16x15x4xf32> -> vector<16x16x4xf32>
    %13 = vector.extract_strided_slice %9 {offsets = [0, 1, 0], sizes = [16, 15, 4], strides = [1, 1, 1]} : vector<16x16x4xf32> to vector<16x15x4xf32>
    %14 = tpu.concatenate %13, %10 in 1 : vector<16x15x4xf32>, vector<16x1x4xf32> -> vector<16x16x4xf32>
    %15 = tpu.concatenate %12, %9, %14 in 2 : vector<16x16x4xf32>, vector<16x16x4xf32>, vector<16x16x4xf32> -> vector<16x16x12xf32>
    %c1 = arith.constant 1 : index
    %c0_10 = arith.constant 0 : index
    %c0_11 = arith.constant 0 : index
    %16 = vector.load %arg7[%c1, %c0_10, %c0_11] : memref<18x16x12xf32, #tpu.memory_space<vmem>>, vector<16x16x12xf32>
    tpu.vector_store %arg7[%c1, %c0_10, %c0_11], %15 {strides = array<i32>} : memref<18x16x12xf32, #tpu.memory_space<vmem>>, vector<16x16x12xf32>,
    %c0_12 = arith.constant 0 : index
    %c0_13 = arith.constant 0 : index
    %c0_14 = arith.constant 0 : index
    %17 = vector.load %arg7[%c0_12, %c0_13, %c0_14] : memref<18x16x12xf32, #tpu.memory_space<vmem>>, vector<16x16x12xf32>
    %c1_15 = arith.constant 1 : index
    %c0_16 = arith.constant 0 : index
    %c0_17 = arith.constant 0 : index
    %18 = vector.load %arg7[%c1_15, %c0_16, %c0_17] : memref<18x16x12xf32, #tpu.memory_space<vmem>>, vector<16x16x12xf32>
    %c2 = arith.constant 2 : index
    %c0_18 = arith.constant 0 : index
    %c0_19 = arith.constant 0 : index
    %19 = vector.load %arg7[%c2, %c0_18, %c0_19] : memref<18x16x12xf32, #tpu.memory_space<vmem>>, vector<16x16x12xf32>
    %20 = tpu.concatenate %17, %18, %19 in 2 : vector<16x16x12xf32>, vector<16x16x12xf32>, vector<16x16x12xf32> -> vector<16x16x36xf32>
    %21 = vector.shape_cast %20 : vector<16x16x36xf32> to vector<256x36xf32>
    %c0_20 = arith.constant 0 : index
    %c0_21 = arith.constant 0 : index
    %22 = vector.load %arg2[%c0_20, %c0_21] : memref<36x128xf32, #tpu.memory_space<vmem>>, vector<36x128xf32>
    %cst_22 = arith.constant dense<0.000000e+00> : vector<256x128xf32>
    %23 = tpu.matmul %21, %22, %cst_22 {dimension_numbers = #tpu.dot_dimension_numbers<[1], [0], [0], [1], [0, 0, 1, 1], [], []>} : vector<256x36xf32>, vector<36x128xf32>, vector<256x128xf32> -> vector<256x128xf32>
    %c0_23 = arith.constant 0 : index
    %c0_24 = arith.constant 0 : index
    %24 = vector.load %arg3[%c0_23, %c0_24] : memref<1x128xf32, #tpu.memory_space<vmem>>, vector<1x128xf32>
    %25 = vector.broadcast %24 : vector<1x128xf32> to vector<256x128xf32>
    %26 = arith.addf %23, %25 : vector<256x128xf32>
    %cst_25 = arith.constant 0.000000e+00 : f32
    %27 = vector.broadcast %cst_25 : f32 to vector<256x128xf32>
    %28 = arith.maximumf %26, %27 : vector<256x128xf32>
    %29 = vector.shape_cast %28 : vector<256x128xf32> to vector<16x16x128xf32>
    %c0_26 = arith.constant 0 : index
    %c0_27 = arith.constant 0 : index
    %c0_28 = arith.constant 0 : index
    %30 = vector.load %arg8[%c0_26, %c0_27, %c0_28] : memref<18x16x384xf32, #tpu.memory_space<vmem>>, vector<1x16x384xf32>
    %31 = vector.shape_cast %30 : vector<1x16x384xf32> to vector<16x384xf32>
    %32 = vector.shape_cast %1 : vector<16x384xf32> to vector<1x16x384xf32>
    tpu.vector_store %arg8[%c0_26, %c0_27, %c0_28], %32 {strides = array<i32>} : memref<18x16x384xf32, #tpu.memory_space<vmem>>, vector<1x16x384xf32>,
    %c17_29 = arith.constant 17 : index
    %c0_30 = arith.constant 0 : index
    %c0_31 = arith.constant 0 : index
    %33 = vector.load %arg8[%c17_29, %c0_30, %c0_31] : memref<18x16x384xf32, #tpu.memory_space<vmem>>, vector<1x16x384xf32>
    %34 = vector.shape_cast %33 : vector<1x16x384xf32> to vector<16x384xf32>
    %35 = vector.shape_cast %1 : vector<16x384xf32> to vector<1x16x384xf32>
    tpu.vector_store %arg8[%c17_29, %c0_30, %c0_31], %35 {strides = array<i32>} : memref<18x16x384xf32, #tpu.memory_space<vmem>>, vector<1x16x384xf32>,
    %cst_32 = arith.constant 0.000000e+00 : f32
    %36 = vector.broadcast %cst_32 : f32 to vector<16x1x128xf32>
    %37 = vector.extract_strided_slice %29 {offsets = [0, 0, 0], sizes = [16, 15, 128], strides = [1, 1, 1]} : vector<16x16x128xf32> to vector<16x15x128xf32>
    %38 = tpu.concatenate %36, %37 in 1 : vector<16x1x128xf32>, vector<16x15x128xf32> -> vector<16x16x128xf32>
    %39 = vector.extract_strided_slice %29 {offsets = [0, 1, 0], sizes = [16, 15, 128], strides = [1, 1, 1]} : vector<16x16x128xf32> to vector<16x15x128xf32>
    %40 = tpu.concatenate %39, %36 in 1 : vector<16x15x128xf32>, vector<16x1x128xf32> -> vector<16x16x128xf32>
    %41 = tpu.concatenate %38, %29, %40 in 2 : vector<16x16x128xf32>, vector<16x16x128xf32>, vector<16x16x128xf32> -> vector<16x16x384xf32>
    %c1_33 = arith.constant 1 : index
    %c0_34 = arith.constant 0 : index
    %c0_35 = arith.constant 0 : index
    %42 = vector.load %arg8[%c1_33, %c0_34, %c0_35] : memref<18x16x384xf32, #tpu.memory_space<vmem>>, vector<16x16x384xf32>
    tpu.vector_store %arg8[%c1_33, %c0_34, %c0_35], %41 {strides = array<i32>} : memref<18x16x384xf32, #tpu.memory_space<vmem>>, vector<16x16x384xf32>,
    %c0_36 = arith.constant 0 : index
    %c0_37 = arith.constant 0 : index
    %43 = vector.load %arg5[%c0_36, %c0_37] : memref<1x128xf32, #tpu.memory_space<vmem>>, vector<1x128xf32>
    %44 = vector.shape_cast %43 : vector<1x128xf32> to vector<1x128xf32>
    %45 = vector.broadcast %44 : vector<1x128xf32> to vector<256x128xf32>
    %c0_38 = arith.constant 0 : index
    %c0_39 = arith.constant 0 : index
    %c0_40 = arith.constant 0 : index
    %46 = vector.load %arg8[%c0_38, %c0_39, %c0_40] : memref<18x16x384xf32, #tpu.memory_space<vmem>>, vector<16x16x384xf32>
    %47 = vector.shape_cast %46 : vector<16x16x384xf32> to vector<256x384xf32>
    %c0_41 = arith.constant 0 : index
    %c0_42 = arith.constant 0 : index
    %c0_43 = arith.constant 0 : index
    %48 = vector.load %arg4[%c0_41, %c0_42, %c0_43] : memref<3x384x128xf32, #tpu.memory_space<vmem>>, vector<1x384x128xf32>
    %49 = vector.shape_cast %48 : vector<1x384x128xf32> to vector<384x128xf32>
    %cst_44 = arith.constant dense<0.000000e+00> : vector<256x128xf32>
    %50 = tpu.matmul %47, %49, %cst_44 {dimension_numbers = #tpu.dot_dimension_numbers<[1], [0], [0], [1], [0, 0, 1, 1], [], []>} : vector<256x384xf32>, vector<384x128xf32>, vector<256x128xf32> -> vector<256x128xf32>
    %51 = arith.addf %45, %50 : vector<256x128xf32>
    %c1_45 = arith.constant 1 : index
    %c0_46 = arith.constant 0 : index
    %c0_47 = arith.constant 0 : index
    %52 = vector.load %arg8[%c1_45, %c0_46, %c0_47] : memref<18x16x384xf32, #tpu.memory_space<vmem>>, vector<16x16x384xf32>
    %53 = vector.shape_cast %52 : vector<16x16x384xf32> to vector<256x384xf32>
    %c1_48 = arith.constant 1 : index
    %c0_49 = arith.constant 0 : index
    %c0_50 = arith.constant 0 : index
    %54 = vector.load %arg4[%c1_48, %c0_49, %c0_50] : memref<3x384x128xf32, #tpu.memory_space<vmem>>, vector<1x384x128xf32>
    %55 = vector.shape_cast %54 : vector<1x384x128xf32> to vector<384x128xf32>
    %cst_51 = arith.constant dense<0.000000e+00> : vector<256x128xf32>
    %56 = tpu.matmul %53, %55, %cst_51 {dimension_numbers = #tpu.dot_dimension_numbers<[1], [0], [0], [1], [0, 0, 1, 1], [], []>} : vector<256x384xf32>, vector<384x128xf32>, vector<256x128xf32> -> vector<256x128xf32>
    %57 = arith.addf %51, %56 : vector<256x128xf32>
    %c2_52 = arith.constant 2 : index
    %c0_53 = arith.constant 0 : index
    %c0_54 = arith.constant 0 : index
    %58 = vector.load %arg8[%c2_52, %c0_53, %c0_54] : memref<18x16x384xf32, #tpu.memory_space<vmem>>, vector<16x16x384xf32>
    %59 = vector.shape_cast %58 : vector<16x16x384xf32> to vector<256x384xf32>
    %c2_55 = arith.constant 2 : index
    %c0_56 = arith.constant 0 : index
    %c0_57 = arith.constant 0 : index
    %60 = vector.load %arg4[%c2_55, %c0_56, %c0_57] : memref<3x384x128xf32, #tpu.memory_space<vmem>>, vector<1x384x128xf32>
    %61 = vector.shape_cast %60 : vector<1x384x128xf32> to vector<384x128xf32>
    %cst_58 = arith.constant dense<0.000000e+00> : vector<256x128xf32>
    %62 = tpu.matmul %59, %61, %cst_58 {dimension_numbers = #tpu.dot_dimension_numbers<[1], [0], [0], [1], [0, 0, 1, 1], [], []>} : vector<256x384xf32>, vector<384x128xf32>, vector<256x128xf32> -> vector<256x128xf32>
    %63 = arith.addf %57, %62 : vector<256x128xf32>
    %cst_59 = arith.constant 0.000000e+00 : f32
    %64 = vector.broadcast %cst_59 : f32 to vector<256x128xf32>
    %65 = arith.maximumf %63, %64 : vector<256x128xf32>
    %66 = vector.extract_strided_slice %65 {offsets = [0, 0], sizes = [256, 8], strides = [1, 1]} : vector<256x128xf32> to vector<256x8xf32>
    %c0_60 = arith.constant 0 : index
    %c0_61 = arith.constant 0 : index
    %c0_62 = arith.constant 0 : index
    %67 = vector.load %arg6[%c0_60, %c0_61, %c0_62] : memref<1x256x8xf32, #tpu.memory_space<vmem>>, vector<1x256x8xf32>
    %68 = vector.shape_cast %67 : vector<1x256x8xf32> to vector<256x8xf32>
    %69 = vector.shape_cast %66 : vector<256x8xf32> to vector<1x256x8xf32>
    tpu.vector_store %arg6[%c0_60, %c0_61, %c0_62], %69 {strides = array<i32>} : memref<1x256x8xf32, #tpu.memory_space<vmem>>, vector<1x256x8xf32>,
    return
  }
  func.func @transform_0(%arg0: i32) -> (i32, i32, i32, i32) {
    %c0_i32 = arith.constant 0 : i32
    %c0_i32_0 = arith.constant 0 : i32
    %c0_i32_1 = arith.constant 0 : i32
    %c0_i32_2 = arith.constant 0 : i32
    return %arg0, %c0_i32, %c0_i32_0, %c0_i32_1 : i32, i32, i32, i32
  }
  func.func @transform_1(%arg0: i32) -> (i32, i32) {
    %c0_i32 = arith.constant 0 : i32
    %c0_i32_0 = arith.constant 0 : i32
    %c0_i32_1 = arith.constant 0 : i32
    return %c0_i32, %c0_i32_0 : i32, i32
  }
  func.func @transform_2(%arg0: i32) -> (i32, i32) {
    %c0_i32 = arith.constant 0 : i32
    %c0_i32_0 = arith.constant 0 : i32
    %c0_i32_1 = arith.constant 0 : i32
    return %c0_i32, %c0_i32_0 : i32, i32
  }
  func.func @transform_3(%arg0: i32) -> (i32, i32, i32) {
    %c0_i32 = arith.constant 0 : i32
    %c0_i32_0 = arith.constant 0 : i32
    %c0_i32_1 = arith.constant 0 : i32
    %c0_i32_2 = arith.constant 0 : i32
    return %c0_i32, %c0_i32_0, %c0_i32_1 : i32, i32, i32
  }
  func.func @transform_4(%arg0: i32) -> (i32, i32) {
    %c0_i32 = arith.constant 0 : i32
    %c0_i32_0 = arith.constant 0 : i32
    %c0_i32_1 = arith.constant 0 : i32
    return %c0_i32, %c0_i32_0 : i32, i32
  }
  func.func @transform_5(%arg0: i32) -> (i32, i32, i32) {
    %c0_i32 = arith.constant 0 : i32
    %c0_i32_0 = arith.constant 0 : i32
    %c0_i32_1 = arith.constant 0 : i32
    return %arg0, %c0_i32, %c0_i32_0 : i32, i32, i32
  }
}

</mosaic_0001>

<bundles_post_ra>
// kernel: tpu_custom_call.1
= control target key start
LH: loop header
LB: loop body
LE: loop exit
PB: predicated region body
PF: predicated region fallthrough
CT: control target
= control target key end

     0   :  { %10 = vsyncpa [#allocation5], 0  ;;  %s4958_s18 = smov 0   ;;  %s7040_s0 = inlined_call_operand.vmem [shape: f32[2,16,16,4], index: 0, kind: input, shape index: {}]   ;;  %s7041_s1 = inlined_call_operand.vmem [shape: f32[36,128], index: 1, kind: input, shape index: {}]   ;;  %s7042_s2 = inlined_call_operand.vmem [shape: f32[1,128], index: 2, kind: input, shape index: {}]   ;;  %s7043_s3 = inlined_call_operand.hbm [shape: f32[3,384,128], index: 3, kind: input, shape index: {}]   ;;  %s7044_s4 = inlined_call_operand.vmem [shape: f32[1,128], index: 4, kind: input, shape index: {}]   ;;  %s7045_s5 = inlined_call_operand.vmem [shape: f32[2,256,8], index: 5, kind: output, shape index: {}]  }
   0x1 LB: > { %s4964_s19 = sadd.s32 4294967295, %s4917_s18   ;;  %p3938_p0 = scmp.ge.s32.totalorder %s4917_s18, 1  ;;  %s4917_s18 = sphi %s4958_s18, %s16_s18  }
   0x2   : > { %p157_p1 = scmp.lt.s32.totalorder %s4917_s18, 3  ;;  %s4919_s20 = smov [#allocation4]  }
   0x3   : > { %s175_s21 = sshll.u32 %s4919_s20, 4  ;;  %p7046_p3 = scmp.eq.s32.totalorder %s4964_s19, 0  ;;  %s176_s21 = int_to_ptr.vmem [resolvable:$true] %s175_s21 }
   0x4   : > { %p4968_p2 = pnand %p3938_p0, %p157_p1  ;;  %s4879_s26 = scalar_lea.hbm %s7043_s3, 18432 }
   0x5   : > { %p4880_p6 = scmp.ne.s32.totalorder %s7043_s3, %s4879_s26  ;;  %p4886_p10 = scmp.lt.u32.totalorder %s4879_s26, %s7043_s3 }
   0x6   : > { %s7142_s22 = scalar_select %p4968_p2, 1, 0 }
   0x7   : > { %p4855_p4 = pneg %p4968_p2 }
   0x9   : > { %p4977_p5 = pnand %p7046_p3, %p4855_p4 }
   0xb   : > { %p4881_p7 = pneg %p4977_p5 }
   0xd   : > { %p4882_p8 = pnand %p4881_p7, %p4880_p6 }
   0xf   : > { %p4883_p9 = pneg %p4882_p8 }
  0x11   : > { %p4888_p11 = pnand %p4886_p10, %p4883_p9 }
  0x13   : > { %4891 = shalt.err (!%p4888_p11)
}
  0x14   : > { %s4892_s6 = scalar_lea.vmem %s176_s21, 18432  ;;  %p4900_p1 = scmp.lt.s32.totalorder %s176_s21, %s176_s21 }
  0x15   : > { %p4893_p12 = scmp.ne.s32.totalorder %s176_s21, %s4892_s6  ;;  %p4901_p4 = scmp.lt.s32.totalorder %s4892_s6, %s4892_s6 }
  0x17   : > { %p4895_p13 = pnand %p4893_p12, %p4881_p7  ;;  %p4902_p3 = por %p4901_p4, %p4900_p1 }
  0x19   : > { %p4896_p0 = pneg %p4895_p13 }
  0x1b   : > { %p4903_p2 = pnand %p4902_p3, %p4896_p0 }
  0x1d   : > { %4906 = shalt.err (!%p4903_p2)
}
  0x1e   : > { %s4920_s7 = smov 128   ;;  %s4921_s8 = smov 8  }
  0x1f   : > { %4858 = dma.hbm_to_vmem [thread:$0]  (!%p4977_p5), %s7043_s3, 18432, %s176_s21, [#allocation5], %s4920_s7, %s4920_s7, %s4921_s8  }
  0x20   : > { %p7144_p6 = scmp.ne.s32.totalorder %s7142_s22, 0 }
  0x22   : > { %202 = sbr.rel (%p7144_p6) target bundleno = 1125 (0x465), region = 40 }
  0x29   : > { %p7145_p8 = scmp.eq.s32.totalorder %s4964_s19, 0 }
  0x2b   : > { %4912 = dma.done.wait (%p7145_p8), [#allocation5], 18432   ;;  %p7146_p7 = pmov %p7145_p8 }
  0x2c   : > { %p230_p2 = scmp.lt.s32.totalorder %s4964_s19, 1  ;;  %s4922_s15 = smov 4   ;;  %vm407_vm0 = vcmask 1046528   ;;  %vm310_vm1 = vcmask 1040384   ;;  %vm240_vm2 = vcmask 97280   ;;  %vm696_vm3 = vcmask 31744  }
  0x2d   : > { %4914 = vsyncadd (%p7146_p7), [#allocation5], 4294948864  ;;  %s4923_s16 = smov 8   ;;  %vm729_vm4 = vcmask 64512   ;;  %vm1322_vm5 = vcmask 1043456   ;;  %s4925_s29 = smov 12  }
  0x2e   : > { %s7291_s19 = smov (!%p230_p2, %s4964_s19), 1  ;;  %s4926_s30 = smov 24   ;;  %vm1180_vm6 = vcmask 195584   ;;  %vm1225_vm7 = vcmask 293888   ;;  %vm5819_vm8 = vmneg %vm310_vm1 }
  0x2f   : > { %s3984_s11 = sshll.u32 %s7291_s19, 8 }
  0x30   : > { %s5013_s14 = scalar_lea.vmem %s7040_s0, %s3984_s11 }
  0x31   : > { %v5016_v0 = vld [vmem:[%s5013_s14 + $0x10] sm:$0xff]  ;;  %v5019_v1 = vld [vmem:[%s5013_s14] sm:$0xff]  ;;  %v247_v2 = vld [vmem:[%s5013_s14 + $0x8] sm:$0xff] }
  0x32   : > { %492 = vrot.lane.b32.xlu1 %v5016_v0, %s4922_s15  ;;  %488 = vrot.lane.b32.xlu0 %v5019_v1, %s4922_s15  ;;  %v408_v3 = vrot.slane %v5019_v1, 1  ;;  %v409_v4 = vrot.slane %v247_v2, 1  ;;  %v249_v5 = vld [vmem:[%s5013_s14 + $0x18] sm:$0xff]  ;;  %v411_v7 = vrot.slane %v5016_v0, 1  ;;  %v5038_v12 = vld [vmem:[%s5013_s14 + $0x20] sm:$0xff]  ;;  %v312_v16 = vrot.slane %v247_v2, 7 }
  0x33   : > { %v412_v8 = vrot.slane %v249_v5, 1  ;;  %v251_v13 = vld [vmem:[%s5013_s14 + $0x28] sm:$0xff]  ;;  %v414_v14 = vrot.slane %v5038_v12, 1  ;;  %v314_v17 = vrot.slane %v5016_v0, 7  ;;  %v311_v18 = vrot.slane %v5019_v1, 7  ;;  %v5047_v20 = vld [vmem:[%s5013_s14 + $0x30] sm:$0xff] }
  0x34   : > { %v410_v6 = vsel %vm407_vm0, %v408_v3, %v409_v4  ;;  %v472_v9 = vsel %vm407_vm0, %v409_v4, 0.0  ;;  %v415_v15 = vrot.slane %v251_v13, 1  ;;  %v315_v19 = vrot.slane %v249_v5, 7  ;;  %v253_v21 = vld [vmem:[%s5013_s14 + $0x38] sm:$0xff]  ;;  %v5056_v26 = vld [vmem:[%s5013_s14 + $0x40] sm:$0xff]  ;;  %v255_v27 = vld [vmem:[%s5013_s14 + $0x48] sm:$0xff] }
  0x35   : > { %v413_v10 = vsel %vm407_vm0, %v411_v7, %v412_v8  ;;  %v473_v11 = vsel %vm407_vm0, %v412_v8, 0.0  ;;  %v317_v22 = vrot.slane %v5038_v12, 7  ;;  %v318_v23 = vrot.slane %v251_v13, 7  ;;  %v5091_v39 = vld [vmem:[%s5013_s14 + $0x50] sm:$0xff]  ;;  %v257_v40 = vld [vmem:[%s5013_s14 + $0x58] sm:$0xff]  ;;  %v5117_v52 = vld [vmem:[%s5013_s14 + $0x60] sm:$0xff] }
  0x36   : > { %490 = vrot.lane.b32.xlu0 %v247_v2, %s4922_s15  ;;  %600 = vrot.lane.b32.xlu1 %v410_v6, %s4923_s16  ;;  %v320_v24 = vrot.slane %v5047_v20, 7  ;;  %v321_v25 = vrot.slane %v253_v21, 7  ;;  %v416_v28 = vsel %vm407_vm0, %v414_v14, %v415_v15  ;;  %v474_v29 = vsel %vm407_vm0, %v415_v15, 0.0  ;;  %v259_v53 = vld [vmem:[%s5013_s14 + $0x68] sm:$0xff]  ;;  %v5140_v63 = vld [vmem:[%s5013_s14 + $0x70] sm:$0xff] }
  0x37   : > { %v323_v30 = vrot.slane %v5056_v26, 7  ;;  %v324_v31 = vrot.slane %v255_v27, 7  ;;  %v5065_v32 = vsel %vm310_vm1, %v311_v18, %v312_v16  ;;  %v5070_v33 = vsel %vm310_vm1, %v314_v17, %v315_v19  ;;  %v261_v2 = vld [vmem:[%s5013_s14 + $0x78] sm:$0xff]  ;;  %v5152_v7 = vld [vmem:[%s5013_s14 + $0x80] sm:$0xff]  ;;  %v263_v8 = vld [vmem:[%s5013_s14 + $0x88] sm:$0xff] }
  0x38   : > { %v5077_v34 = vsel %vm310_vm1, %v317_v22, %v318_v23  ;;  %v5082_v35 = vsel %vm310_vm1, %v320_v24, %v321_v25  ;;  %v417_v36 = vrot.slane %v5047_v20, 1  ;;  %v418_v37 = vrot.slane %v253_v21, 1  ;;  %v5170_v19 = vld [vmem:[%s5013_s14 + $0x90] sm:$0xff] }
  0x39   : > { %v5088_v38 = vsel %vm310_vm1, %v323_v30, %v324_v31  ;;  %v326_v41 = vrot.slane %v5091_v39, 7  ;;  %v327_v42 = vrot.slane %v257_v40, 7  ;;  %v420_v46 = vrot.slane %v5056_v26, 1 }
  0x3a   : > { %494 = vrot.lane.b32.xlu0 %v249_v5, %s4922_s15  ;;  %602 = vrot.lane.b32.xlu1 %v472_v9, %s4923_s16  ;;  %v419_v43 = vsel %vm407_vm0, %v417_v36, %v418_v37  ;;  %v475_v44 = vsel %vm407_vm0, %v418_v37, 0.0  ;;  %v421_v47 = vrot.slane %v255_v27, 1  ;;  %v423_v50 = vrot.slane %v5091_v39, 1  ;;  %v5188_v37 = vld [vmem:[%s5013_s14 + $0xa0] sm:$0xff] }
  0x3b   : > { %v5105_v45 = vsel %vm310_vm1, %v326_v41, %v327_v42  ;;  %v424_v51 = vrot.slane %v257_v40, 1  ;;  %v329_v54 = vrot.slane %v5117_v52, 7  ;;  %v330_v55 = vrot.slane %v259_v53, 7 }
  0x3c   : > { %v422_v48 = vsel %vm407_vm0, %v420_v46, %v421_v47  ;;  %v476_v49 = vsel %vm407_vm0, %v421_v47, 0.0  ;;  %v426_v59 = vrot.slane %v5117_v52, 1  ;;  %v427_v60 = vrot.slane %v259_v53, 1 }
  0x3d   : > { %v425_v56 = vsel %vm407_vm0, %v423_v50, %v424_v51  ;;  %v477_v57 = vsel %vm407_vm0, %v424_v51, 0.0  ;;  %v5131_v58 = vsel %vm310_vm1, %v329_v54, %v330_v55  ;;  %v429_v3 = vrot.slane %v5140_v63, 1  ;;  %v5210_v50 = vld [vmem:[%s5013_s14 + $0xb0] sm:$0xff]  ;;  %v5213_v51 = vld [vmem:[%s5013_s14 + $0xb8] sm:$0xff] }
  0x3e   : > { %604 = vrot.lane.b32.xlu0 %v413_v10, %s4923_s16  ;;  %606 = vrot.lane.b32.xlu1 %v473_v11, %s4923_s16  ;;  %v428_v61 = vsel %vm407_vm0, %v426_v59, %v427_v60  ;;  %v478_v62 = vsel %vm407_vm0, %v427_v60, 0.0  ;;  %v430_v4 = vrot.slane %v261_v2, 1  ;;  %v332_v9 = vrot.slane %v5140_v63, 7  ;;  %v5226_v59 = vld [vmem:[%s5013_s14 + $0xc0] sm:$0xff]  ;;  %v5229_v60 = vld [vmem:[%s5013_s14 + $0xc8] sm:$0xff] }
  0x3f   : > { %v333_v10 = vrot.slane %v261_v2, 7  ;;  %v432_v11 = vrot.slane %v5152_v7, 1  ;;  %v335_v23 = vrot.slane %v5152_v7, 7  ;;  %v336_v25 = vrot.slane %v263_v8, 7 }
  0x40   : > { %v431_v5 = vsel %vm407_vm0, %v429_v3, %v430_v4  ;;  %v479_v6 = vsel %vm407_vm0, %v430_v4, 0.0  ;;  %v338_v42 = vrot.slane %v5170_v19, 7  ;;  %v442_v55 = vrot.slane %v5213_v51, 1 }
  0x41   : > { %v5165_v14 = vsel %vm310_vm1, %v332_v9, %v333_v10  ;;  %v7048_v4 = vmov 0.0  }
  0x42   : > { %496 = vrot.lane.b32.xlu0 %v5038_v12, %s4922_s15  ;;  %498 = vrot.lane.b32.xlu1 %v251_v13, %s4922_s15  ;;  %v433_v13 = vrot.slane %v263_v8, 1  ;;  %241 = vst.msk [vmem:[#allocation2] sm:$0xff] %vm240_vm2, %v7048_v4  ;;  %242 = vst.msk [vmem:[#allocation2 + $0x8] sm:$0xff] %vm240_vm2, %v7048_v4 }
  0x43   : > { %244 = vst.msk [vmem:[#allocation2 + $0x110] sm:$0xff] %vm240_vm2, %v7048_v4  ;;  %245 = vst.msk [vmem:[#allocation2 + $0x118] sm:$0xff] %vm240_vm2, %v7048_v4  ;;  %2132 = vmatprep.mubr.f32.mxu1 %v7048_v4 }
  0x44   : > { %v434_v15 = vsel %vm407_vm0, %v432_v11, %v433_v13  ;;  %v480_v16 = vsel %vm407_vm0, %v433_v13, 0.0  ;;  %v391_v13 = vsel %vm310_vm1, 0.0, %v311_v18 }
  0x46   : > { %608 = vrot.lane.b32.xlu0 %v416_v28, %s4923_s16  ;;  %610 = vrot.lane.b32.xlu1 %v474_v29, %s4923_s16  ;;  %v5183_v29 = vsel %vm310_vm1, %v335_v23, %v336_v25 }
  0x4a   : > { %500 = vrot.lane.b32.xlu0 %v5047_v20, %s4922_s15  ;;  %502 = vrot.lane.b32.xlu1 %v253_v21, %s4922_s15  ;;  %v265_v21 = vld [vmem:[%s5013_s14 + $0x98] sm:$0xff] }
  0x4b   : > { %v436_v28 = vrot.slane %v265_v21, 1 }
  0x4d   : > { %v481_v36 = vsel %vm407_vm0, %v436_v28, 0.0 }
  0x4e   : > { %612 = vrot.lane.b32.xlu0 %v419_v43, %s4923_s16  ;;  %614 = vrot.lane.b32.xlu1 %v475_v44, %s4923_s16  ;;  %v339_v43 = vrot.slane %v265_v21, 7  ;;  %v438_v44 = vrot.slane %v5188_v37, 1 }
  0x50   : > { %v5205_v47 = vsel %vm310_vm1, %v338_v42, %v339_v43  ;;  %v1217_v43 = vld [vmem:[%s7041_s1 + $0x20] sm:$0xf] }
  0x52   : > { %504 = vrot.lane.b32.xlu0 %v5056_v26, %s4922_s15  ;;  %506 = vrot.lane.b32.xlu1 %v255_v27, %s4922_s15  ;;  %v435_v27 = vrot.slane %v5170_v19, 1 }
  0x54   : > { %v437_v31 = vsel %vm407_vm0, %v435_v27, %v436_v28 }
  0x56   : > { %616 = vrot.lane.b32.xlu0 %v422_v48, %s4923_s16  ;;  %618 = vrot.lane.b32.xlu1 %v476_v49, %s4923_s16 }
  0x5a   : > { %508 = vrot.lane.b32.xlu0 %v5091_v39, %s4922_s15  ;;  %510 = vrot.lane.b32.xlu1 %v257_v40, %s4922_s15  ;;  %v5191_v40 = vld [vmem:[%s5013_s14 + $0xa8] sm:$0xff]  ;;  %v5371_v39 = vld [vmem:[%s5013_s14 + $0xd8] sm:$0xff] }
  0x5b   : > { %v439_v46 = vrot.slane %v5191_v40, 1 }
  0x5d   : > { %v440_v48 = vsel %vm407_vm0, %v438_v44, %v439_v46  ;;  %v482_v49 = vsel %vm407_vm0, %v439_v46, 0.0  ;;  %v392_v44 = vsel %vm310_vm1, 0.0, %v314_v17 }
  0x5e   : > { %620 = vrot.lane.b32.xlu0 %v425_v56, %s4923_s16  ;;  %622 = vrot.lane.b32.xlu1 %v477_v57, %s4923_s16  ;;  %v483_v57 = vsel %vm407_vm0, %v442_v55, 0.0 }
  0x62   : > { %512 = vrot.lane.b32.xlu0 %v5117_v52, %s4922_s15  ;;  %514 = vrot.lane.b32.xlu1 %v259_v53, %s4922_s15  ;;  %v441_v53 = vrot.slane %v5210_v50, 1 }
  0x64   : > { %v443_v56 = vsel %vm407_vm0, %v441_v53, %v442_v55 }
  0x66   : > { %624 = vrot.lane.b32.xlu0 %v428_v61, %s4923_s16  ;;  %626 = vrot.lane.b32.xlu1 %v478_v62, %s4923_s16  ;;  %v444_v61 = vrot.slane %v5226_v59, 1  ;;  %v445_v62 = vrot.slane %v5229_v60, 1 }
  0x68   : > { %v484_v3 = vsel %vm407_vm0, %v445_v62, 0.0 }
  0x6a   : > { %516 = vrot.lane.b32.xlu0 %v5140_v63, %s4922_s15  ;;  %518 = vrot.lane.b32.xlu1 %v261_v2, %s4922_s15  ;;  %v446_v2 = vsel %vm407_vm0, %v444_v61, %v445_v62 }
  0x6e   : > { %628 = vrot.lane.b32.xlu0 %v431_v5, %s4923_s16  ;;  %630 = vrot.lane.b32.xlu1 %v479_v6, %s4923_s16  ;;  %v1213_v5 = vld [vmem:[%s7041_s1] sm:$0xff]  ;;  %v1214_v6 = vld [vmem:[%s7041_s1 + $0x8] sm:$0xff] }
  0x72   : > { %520 = vrot.lane.b32.xlu0 %v5152_v7, %s4922_s15  ;;  %522 = vrot.lane.b32.xlu1 %v263_v8, %s4922_s15  ;;  %v4603_v8 = vpack.c.bf16 %v1214_v6, %v1213_v5 }
  0x74   : > { %4604 = vmatprep.subr.bf16.mxu0 %v4603_v8 }
  0x75   : > { %4606 = vmatpush3.bf16.msra.mxu0 %v4603_v8 }
  0x76   : > { %632 = vrot.lane.b32.xlu0 %v434_v15, %s4923_s16  ;;  %634 = vrot.lane.b32.xlu1 %v480_v16, %s4923_s16  ;;  %v1215_v15 = vld [vmem:[%s7041_s1 + $0x10] sm:$0xff]  ;;  %v1216_v16 = vld [vmem:[%s7041_s1 + $0x18] sm:$0xff] }
  0x7a   : > { %524 = vrot.lane.b32.xlu0 %v5170_v19, %s4922_s15  ;;  %526 = vrot.lane.b32.xlu1 %v265_v21, %s4922_s15  ;;  %v4607_v21 = vpack.c.bf16 %v1216_v16, %v1215_v15  ;;  %v5466_v19 = vld [vmem:[%s5013_s14 + $0xf0] sm:$0xff] }
  0x7c   : > { %4608 = vmatprep.subr.bf16.mxu0 %v4607_v21 }
  0x7d   : > { %4610 = vmatpush3.bf16.msra.mxu0 %v4607_v21 }
  0x7e   : > { %636 = vrot.lane.b32.xlu0 %v437_v31, %s4923_s16  ;;  %638 = vrot.lane.b32.xlu1 %v481_v36, %s4923_s16 }
  0x7f   : > { %4313 = vmatprep.subr.msk.mxu0 %vm1322_vm5, %v1217_v43 }
  0x81   : > { %4314 = vmatpush3.msk.msra.mxu0 %vm1322_vm5, %v1217_v43 }
  0x82   : > { %528 = vrot.lane.b32.xlu0 %v5188_v37, %s4922_s15  ;;  %530 = vrot.lane.b32.xlu1 %v5191_v40, %s4922_s15 }
  0x86   : > { %640 = vrot.lane.b32.xlu0 %v440_v48, %s4923_s16  ;;  %642 = vrot.lane.b32.xlu1 %v482_v49, %s4923_s16 }
  0x8a   : > { %532 = vrot.lane.b32.xlu0 %v5210_v50, %s4922_s15  ;;  %534 = vrot.lane.b32.xlu1 %v5213_v51, %s4922_s15 }
  0x8e   : > { %644 = vrot.lane.b32.xlu0 %v443_v56, %s4923_s16  ;;  %646 = vrot.lane.b32.xlu1 %v483_v57, %s4923_s16 }
  0x92   : > { %536 = vrot.lane.b32.xlu0 %v5226_v59, %s4922_s15  ;;  %538 = vrot.lane.b32.xlu1 %v5229_v60, %s4922_s15 }
  0x96   : > { %648 = vrot.lane.b32.xlu0 %v446_v2, %s4923_s16  ;;  %650 = vrot.lane.b32.xlu1 %v484_v3, %s4923_s16 }
  0xa4   : > { %v493_v10 = vpop.permute.xlu1 %492  ;;  %v489_v11 = vpop.permute.xlu0 %488 }
  0xa5   : > { %v697_v25 = vsel %vm696_vm3, %v391_v13, %v489_v11  ;;  %v699_v48 = vsel %vm696_vm3, %v392_v44, %v493_v10  ;;  %v394_v11 = vsel %vm310_vm1, 0.0, %v320_v24 }
  0xa8   : > { %v491_v27 = vpop.permute.xlu0 %490  ;;  %v601_v28 = vpop.permute.xlu1 %600 }
  0xa9   : > { %v730_v1 = vsel %vm729_vm4, %v697_v25, %v601_v28  ;;  %v698_v18 = vsel %vm696_vm3, %v5065_v32, %v491_v27 }
  0xaa   : > { %763 = vst.msk [vmem:[#allocation2 + $0x10] sm:$0xff] %vm240_vm2, %v730_v1  ;;  %v395_v1 = vsel %vm310_vm1, 0.0, %v323_v30 }
  0xac   : > { %v495_v31 = vpop.permute.xlu0 %494  ;;  %v603_v36 = vpop.permute.xlu1 %602 }
  0xad   : > { %v731_v46 = vsel %vm729_vm4, %v698_v18, %v603_v36  ;;  %v700_v32 = vsel %vm696_vm3, %v5070_v33, %v495_v31  ;;  %v393_v33 = vsel %vm310_vm1, 0.0, %v317_v22 }
  0xae   : > { %764 = vst.msk [vmem:[#allocation2 + $0x18] sm:$0xff] %vm240_vm2, %v731_v46 }
  0xb0   : > { %v605_v49 = vpop.permute.xlu0 %604  ;;  %v607_v53 = vpop.permute.xlu1 %606 }
  0xb1   : > { %v732_v55 = vsel %vm729_vm4, %v699_v48, %v605_v49  ;;  %v733_v56 = vsel %vm729_vm4, %v700_v32, %v607_v53  ;;  %v5285_v0 = vld [vmem:[#allocation2 + $0x10] sm:$0xff] }
  0xb2   : > { %765 = vst.msk [vmem:[#allocation2 + $0x20] sm:$0xff] %vm240_vm2, %v732_v55  ;;  %766 = vst.msk [vmem:[#allocation2 + $0x28] sm:$0xff] %vm240_vm2, %v733_v56  ;;  %924 = vrot.lane.b32.xlu0 %v5285_v0, %s4925_s29 }
  0xb4   : > { %v497_v17 = vpop.permute.xlu0 %496  ;;  %v499_v57 = vpop.permute.xlu1 %498 }
  0xb5   : > { %v5294_v61 = vld [vmem:[#allocation2 + $0x18] sm:$0xff]  ;;  %v701_v62 = vsel %vm696_vm3, %v393_v33, %v497_v17  ;;  %v702_v2 = vsel %vm696_vm3, %v5077_v34, %v499_v57  ;;  %v5368_v17 = vld [vmem:[%s5013_s14 + $0xd0] sm:$0xff] }
  0xb6   : > { %926 = vrot.lane.b32.xlu1 %v5294_v61, %s4925_s29 }
  0xb8   : > { %v609_v3 = vpop.permute.xlu0 %608  ;;  %v611_v5 = vpop.permute.xlu1 %610 }
  0xb9   : > { %v734_v6 = vsel %vm729_vm4, %v701_v62, %v609_v3  ;;  %v735_v8 = vsel %vm729_vm4, %v702_v2, %v611_v5  ;;  %v5303_v10 = vld [vmem:[#allocation2 + $0x20] sm:$0xff]  ;;  %v5305_v12 = vld [vmem:[#allocation2 + $0x28] sm:$0xff]  ;;  %v448_v2 = vrot.slane %v5371_v39, 1  ;;  %v397_v3 = vsel %vm310_vm1, 0.0, %v329_v54 }
  0xba   : > { %767 = vst.msk [vmem:[#allocation2 + $0x30] sm:$0xff] %vm240_vm2, %v734_v6  ;;  %768 = vst.msk [vmem:[#allocation2 + $0x38] sm:$0xff] %vm240_vm2, %v735_v8  ;;  %1052 = vrot.lane.b32.xlu0 %v5303_v10, %s4926_s30  ;;  %1054 = vrot.lane.b32.xlu1 %v5305_v12, %s4926_s30 }
  0xbc   : > { %v501_v22 = vpop.permute.xlu0 %500  ;;  %v503_v34 = vpop.permute.xlu1 %502 }
  0xbd   : > { %v703_v13 = vsel %vm696_vm3, %v394_v11, %v501_v22  ;;  %v704_v15 = vsel %vm696_vm3, %v5082_v35, %v503_v34  ;;  %v485_v11 = vsel %vm407_vm0, %v448_v2, 0.0 }
  0xbe   : > { %928 = vrot.lane.b32.xlu0 %v5303_v10, %s4925_s29  ;;  %930 = vrot.lane.b32.xlu1 %v5305_v12, %s4925_s29 }
  0xc0   : > { %v613_v16 = vpop.permute.xlu0 %612  ;;  %v615_v21 = vpop.permute.xlu1 %614 }
  0xc1   : > { %v736_v25 = vsel %vm729_vm4, %v703_v13, %v613_v16  ;;  %v737_v27 = vsel %vm729_vm4, %v704_v15, %v615_v21  ;;  %v5325_v20 = vld [vmem:[#allocation2 + $0x30] sm:$0xff]  ;;  %v5327_v24 = vld [vmem:[#allocation2 + $0x38] sm:$0xff] }
  0xc2   : > { %769 = vst.msk [vmem:[#allocation2 + $0x40] sm:$0xff] %vm240_vm2, %v736_v25  ;;  %770 = vst.msk [vmem:[#allocation2 + $0x48] sm:$0xff] %vm240_vm2, %v737_v27  ;;  %1056 = vrot.lane.b32.xlu0 %v5325_v20, %s4926_s30  ;;  %1058 = vrot.lane.b32.xlu1 %v5327_v24, %s4926_s30 }
  0xc4   : > { %v505_v35 = vpop.permute.xlu0 %504  ;;  %v507_v28 = vpop.permute.xlu1 %506 }
  0xc5   : > { %v705_v18 = vsel %vm696_vm3, %v395_v1, %v505_v35  ;;  %v706_v31 = vsel %vm696_vm3, %v5088_v38, %v507_v28  ;;  %v396_v38 = vsel %vm310_vm1, 0.0, %v326_v41  ;;  %v5416_v35 = vld [vmem:[%s5013_s14 + $0xe0] sm:$0xff]  ;;  %v5419_v28 = vld [vmem:[%s5013_s14 + $0xe8] sm:$0xff] }
  0xc6   : > { %932 = vrot.lane.b32.xlu0 %v5325_v20, %s4925_s29  ;;  %934 = vrot.lane.b32.xlu1 %v5327_v24, %s4925_s29 }
  0xc8   : > { %v617_v36 = vpop.permute.xlu0 %616  ;;  %v619_v43 = vpop.permute.xlu1 %618 }
  0xc9   : > { %v738_v44 = vsel %vm729_vm4, %v705_v18, %v617_v36  ;;  %v739_v46 = vsel %vm729_vm4, %v706_v31, %v619_v43  ;;  %v5347_v26 = vld [vmem:[#allocation2 + $0x40] sm:$0xff]  ;;  %v5349_v30 = vld [vmem:[#allocation2 + $0x48] sm:$0xff]  ;;  %v451_v43 = vrot.slane %v5419_v28, 1 }
  0xca   : > { %771 = vst.msk [vmem:[#allocation2 + $0x50] sm:$0xff] %vm240_vm2, %v738_v44  ;;  %772 = vst.msk [vmem:[#allocation2 + $0x58] sm:$0xff] %vm240_vm2, %v739_v46  ;;  %1060 = vrot.lane.b32.xlu0 %v5347_v26, %s4926_s30  ;;  %1062 = vrot.lane.b32.xlu1 %v5349_v30, %s4926_s30  ;;  %v399_v44 = vsel %vm310_vm1, 0.0, %v335_v23 }
  0xcc   : > { %v509_v48 = vpop.permute.xlu0 %508  ;;  %v511_v32 = vpop.permute.xlu1 %510 }
  0xcd   : > { %v707_v49 = vsel %vm696_vm3, %v396_v38, %v509_v48  ;;  %v708_v53 = vsel %vm696_vm3, %v5105_v45, %v511_v32  ;;  %v447_v45 = vrot.slane %v5368_v17, 1 }
  0xce   : > { %936 = vrot.lane.b32.xlu0 %v5347_v26, %s4925_s29  ;;  %938 = vrot.lane.b32.xlu1 %v5349_v30, %s4925_s29 }
  0xcf   : > { %v449_v34 = vsel %vm407_vm0, %v447_v45, %v448_v2 }
  0xd0   : > { %v621_v55 = vpop.permute.xlu0 %620  ;;  %v623_v56 = vpop.permute.xlu1 %622 }
  0xd1   : > { %v5373_v41 = vld [vmem:[#allocation2 + $0x50] sm:$0xff]  ;;  %v5375_v57 = vld [vmem:[#allocation2 + $0x58] sm:$0xff]  ;;  %v740_v33 = vsel %vm729_vm4, %v707_v49, %v621_v55  ;;  %v741_v62 = vsel %vm729_vm4, %v708_v53, %v623_v56  ;;  %v486_v53 = vsel %vm407_vm0, %v451_v43, 0.0 }
  0xd2   : > { %1064 = vrot.lane.b32.xlu0 %v5373_v41, %s4926_s30  ;;  %1066 = vrot.lane.b32.xlu1 %v5375_v57, %s4926_s30  ;;  %773 = vst.msk [vmem:[#allocation2 + $0x60] sm:$0xff] %vm240_vm2, %v740_v33  ;;  %774 = vst.msk [vmem:[#allocation2 + $0x68] sm:$0xff] %vm240_vm2, %v741_v62 }
  0xd4   : > { %v513_v5 = vpop.permute.xlu0 %512  ;;  %v515_v6 = vpop.permute.xlu1 %514 }
  0xd5   : > { %v709_v8 = vsel %vm696_vm3, %v397_v3, %v513_v5  ;;  %v710_v22 = vsel %vm696_vm3, %v5131_v58, %v515_v6  ;;  %v398_v58 = vsel %vm310_vm1, 0.0, %v332_v9  ;;  %v341_v3 = vrot.slane %v5188_v37, 7 }
  0xd6   : > { %540 = vrot.lane.b32.xlu0 %v5368_v17, %s4922_s15  ;;  %542 = vrot.lane.b32.xlu1 %v5371_v39, %s4922_s15  ;;  %v342_v5 = vrot.slane %v5191_v40, 7  ;;  %v453_v37 = vrot.slane %v5466_v19, 1 }
  0xd8   : > { %v625_v52 = vpop.permute.xlu0 %624  ;;  %v627_v54 = vpop.permute.xlu1 %626 }
  0xd9   : > { %v742_v13 = vsel %vm729_vm4, %v709_v8, %v625_v52  ;;  %v743_v15 = vsel %vm729_vm4, %v710_v22, %v627_v54  ;;  %v5421_v9 = vld [vmem:[#allocation2 + $0x60] sm:$0xff]  ;;  %v5423_v18 = vld [vmem:[#allocation2 + $0x68] sm:$0xff]  ;;  %v343_v54 = vsel %vm310_vm1, %v341_v3, %v342_v5 }
  0xda   : > { %652 = vrot.lane.b32.xlu0 %v449_v34, %s4923_s16  ;;  %654 = vrot.lane.b32.xlu1 %v485_v11, %s4923_s16  ;;  %775 = vst.msk [vmem:[#allocation2 + $0x70] sm:$0xff] %vm240_vm2, %v742_v13  ;;  %776 = vst.msk [vmem:[#allocation2 + $0x78] sm:$0xff] %vm240_vm2, %v743_v15 }
  0xdc   : > { %v517_v16 = vpop.permute.xlu0 %516  ;;  %v519_v21 = vpop.permute.xlu1 %518 }
  0xdd   : > { %v711_v25 = vsel %vm696_vm3, %v398_v58, %v517_v16  ;;  %v712_v27 = vsel %vm696_vm3, %v5165_v14, %v519_v21  ;;  %v450_v14 = vrot.slane %v5416_v35, 1  ;;  %v344_v21 = vrot.slane %v5210_v50, 7 }
  0xde   : > { %940 = vrot.lane.b32.xlu0 %v5373_v41, %s4925_s29  ;;  %942 = vrot.lane.b32.xlu1 %v5375_v57, %s4925_s29 }
  0xdf   : > { %v452_v49 = vsel %vm407_vm0, %v450_v14, %v451_v43  ;;  %v402_v50 = vsel %vm310_vm1, 0.0, %v344_v21 }
  0xe0   : > { %v629_v63 = vpop.permute.xlu0 %628  ;;  %v631_v1 = vpop.permute.xlu1 %630 }
  0xe1   : > { %v744_v31 = vsel %vm729_vm4, %v711_v25, %v629_v63  ;;  %v745_v36 = vsel %vm729_vm4, %v712_v27, %v631_v1  ;;  %v5471_v22 = vld [vmem:[#allocation2 + $0x70] sm:$0xff]  ;;  %v5473_v34 = vld [vmem:[#allocation2 + $0x78] sm:$0xff]  ;;  %v345_v25 = vrot.slane %v5213_v51, 7 }
  0xe2   : > { %1068 = vrot.lane.b32.xlu0 %v5421_v9, %s4926_s30  ;;  %1070 = vrot.lane.b32.xlu1 %v5423_v18, %s4926_s30  ;;  %777 = vst.msk [vmem:[#allocation2 + $0x80] sm:$0xff] %vm240_vm2, %v744_v31  ;;  %778 = vst.msk [vmem:[#allocation2 + $0x88] sm:$0xff] %vm240_vm2, %v745_v36 }
  0xe3   : > { %v346_v51 = vsel %vm310_vm1, %v344_v21, %v345_v25  ;;  %v2023_v25 = vld [vmem:[#allocation4 + $0x18] sm:$0xff] }
  0xe4   : > { %v521_v46 = vpop.permute.xlu0 %520  ;;  %v523_v38 = vpop.permute.xlu1 %522 }
  0xe5   : > { %v713_v48 = vsel %vm696_vm3, %v399_v44, %v521_v46  ;;  %v714_v32 = vsel %vm696_vm3, %v5183_v29, %v523_v38  ;;  %v400_v29 = vsel %vm310_vm1, 0.0, %v338_v42  ;;  %v5469_v42 = vld [vmem:[%s5013_s14 + $0xf8] sm:$0xff] }
  0xe6   : > { %544 = vrot.lane.b32.xlu0 %v5416_v35, %s4922_s15  ;;  %546 = vrot.lane.b32.xlu1 %v5419_v28, %s4922_s15  ;;  %v454_v40 = vrot.slane %v5469_v42, 1 }
  0xe8   : > { %v633_v7 = vpop.permute.xlu0 %632  ;;  %v635_v55 = vpop.permute.xlu1 %634  ;;  %v455_v27 = vsel %vm407_vm0, %v453_v37, %v454_v40  ;;  %v487_v63 = vsel %vm407_vm0, %v454_v40, 0.0 }
  0xe9   : > { %v746_v23 = vsel %vm729_vm4, %v713_v48, %v633_v7  ;;  %v747_v56 = vsel %vm729_vm4, %v714_v32, %v635_v55  ;;  %v347_v48 = vrot.slane %v5226_v59, 7  ;;  %v348_v32 = vrot.slane %v5229_v60, 7 }
  0xea   : > { %656 = vrot.lane.b32.xlu0 %v452_v49, %s4923_s16  ;;  %658 = vrot.lane.b32.xlu1 %v486_v53, %s4923_s16  ;;  %779 = vst.msk [vmem:[#allocation2 + $0x90] sm:$0xff] %vm240_vm2, %v746_v23  ;;  %780 = vst.msk [vmem:[#allocation2 + $0x98] sm:$0xff] %vm240_vm2, %v747_v56  ;;  %v5513_v49 = vld [vmem:[#allocation2 + $0x80] sm:$0xff]  ;;  %v5515_v53 = vld [vmem:[#allocation2 + $0x88] sm:$0xff] }
  0xeb   : > { %v403_v59 = vsel %vm310_vm1, 0.0, %v347_v48  ;;  %v349_v60 = vsel %vm310_vm1, %v347_v48, %v348_v32 }
  0xec   : > { %v525_v33 = vpop.permute.xlu0 %524  ;;  %v527_v62 = vpop.permute.xlu1 %526 }
  0xed   : > { %v715_v45 = vsel %vm696_vm3, %v400_v29, %v525_v33  ;;  %v716_v2 = vsel %vm696_vm3, %v5205_v47, %v527_v62  ;;  %v401_v47 = vsel %vm310_vm1, 0.0, %v341_v3 }
  0xee   : > { %944 = vrot.lane.b32.xlu0 %v5421_v9, %s4925_s29  ;;  %946 = vrot.lane.b32.xlu1 %v5423_v18, %s4925_s29 }
  0xf0   : > { %v637_v6 = vpop.permute.xlu0 %636  ;;  %v639_v8 = vpop.permute.xlu1 %638 }
  0xf1   : > { %v748_v11 = vsel %vm729_vm4, %v715_v45, %v637_v6  ;;  %v749_v52 = vsel %vm729_vm4, %v716_v2, %v639_v8  ;;  %v5533_v2 = vld [vmem:[#allocation2 + $0x90] sm:$0xff]  ;;  %v5535_v3 = vld [vmem:[#allocation2 + $0x98] sm:$0xff] }
  0xf2   : > { %1072 = vrot.lane.b32.xlu0 %v5471_v22, %s4926_s30  ;;  %1074 = vrot.lane.b32.xlu1 %v5473_v34, %s4926_s30  ;;  %781 = vst.msk [vmem:[#allocation2 + $0xa0] sm:$0xff] %vm240_vm2, %v748_v11  ;;  %782 = vst.msk [vmem:[#allocation2 + $0xa8] sm:$0xff] %vm240_vm2, %v749_v52 }
  0xf4   : > { %v529_v13 = vpop.permute.xlu0 %528  ;;  %v531_v15 = vpop.permute.xlu1 %530 }
  0xf5   : > { %v717_v58 = vsel %vm696_vm3, %v401_v47, %v529_v13  ;;  %v718_v16 = vsel %vm696_vm3, %v343_v54, %v531_v15  ;;  %v2020_v15 = vld [vmem:[#allocation4] sm:$0xff] }
  0xf6   : > { %548 = vrot.lane.b32.xlu0 %v5466_v19, %s4922_s15  ;;  %550 = vrot.lane.b32.xlu1 %v5469_v42, %s4922_s15  ;;  %s6913_s15 = scalar_lea.vmem %s7045_s5, %s3984_s11 }
  0xf8   : > { %v641_v1 = vpop.permute.xlu0 %640  ;;  %v643_v31 = vpop.permute.xlu1 %642 }
  0xf9   : > { %v750_v36 = vsel %vm729_vm4, %v717_v58, %v641_v1  ;;  %v751_v14 = vsel %vm729_vm4, %v718_v16, %v643_v31  ;;  %v5549_v52 = vld [vmem:[#allocation2 + $0xa0] sm:$0xff]  ;;  %v5551_v37 = vld [vmem:[#allocation2 + $0xa8] sm:$0xff]  ;;  %v2022_v16 = vld [vmem:[#allocation4 + $0x10] sm:$0xff] }
  0xfa   : > { %660 = vrot.lane.b32.xlu0 %v455_v27, %s4923_s16  ;;  %662 = vrot.lane.b32.xlu1 %v487_v63, %s4923_s16  ;;  %783 = vst.msk [vmem:[#allocation2 + $0xb0] sm:$0xff] %vm240_vm2, %v750_v36  ;;  %784 = vst.msk [vmem:[#allocation2 + $0xb8] sm:$0xff] %vm240_vm2, %v751_v14  ;;  %v2021_v58 = vld [vmem:[#allocation4 + $0x8] sm:$0xff]  ;;  %v7050_v27 = vmov 0.0|0.0   ;;  %v4615_v63 = vpack.c.bf16 %v2023_v25, %v2022_v16  ;;  %v350_v25 = vrot.slane %v5368_v17, 7 }
  0xfb   : > { %v4612_v21 = vpack.c.bf16 %v2021_v58, %v2020_v15  ;;  %4611 = vmatprep.subr.bf16.mxu1 %v7050_v27 }
  0xfc   : > { %v533_v43 = vpop.permute.xlu0 %532  ;;  %v535_v44 = vpop.permute.xlu1 %534 }
  0xfd   : > { %v719_v46 = vsel %vm696_vm3, %v402_v50, %v533_v43  ;;  %v720_v38 = vsel %vm696_vm3, %v346_v51, %v535_v44  ;;  %4613 = vmatpush1.bf16.msra.mxu1 %v4612_v21  ;;  %v795_v50 = vld [vmem:[#allocation2] sm:$0xff]  ;;  %v796_v51 = vld [vmem:[#allocation2 + $0x8] sm:$0xff] }
  0xfe   : > { %948 = vrot.lane.b32.xlu0 %v5471_v22, %s4925_s29  ;;  %950 = vrot.lane.b32.xlu1 %v5473_v34, %s4925_s29 }
  0xff   : > { %4614 = vmatprep.subr.bf16.mxu1 %v7050_v27 }
 0x100   : > { %v645_v7 = vpop.permute.xlu0 %644  ;;  %v647_v55 = vpop.permute.xlu1 %646 }
 0x101   : > { %v752_v23 = vsel %vm729_vm4, %v719_v46, %v645_v7  ;;  %v753_v56 = vsel %vm729_vm4, %v720_v38, %v647_v55  ;;  %v5561_v40 = vld [vmem:[#allocation2 + $0xb0] sm:$0xff]  ;;  %v5563_v47 = vld [vmem:[#allocation2 + $0xb8] sm:$0xff]  ;;  %4616 = vmatpush1.bf16.msra.mxu1 %v4615_v63  ;;  %v351_v63 = vrot.slane %v5371_v39, 7 }
 0x102   : > { %1076 = vrot.lane.b32.xlu0 %v5513_v49, %s4926_s30  ;;  %1078 = vrot.lane.b32.xlu1 %v5515_v53, %s4926_s30  ;;  %785 = vst.msk [vmem:[#allocation2 + $0xc0] sm:$0xff] %vm240_vm2, %v752_v23  ;;  %786 = vst.msk [vmem:[#allocation2 + $0xc8] sm:$0xff] %vm240_vm2, %v753_v56 }
 0x103   : > { %4617 = vmatprep.subr.bf16.mxu1 %v7050_v27 }
 0x104   : > { %v537_v29 = vpop.permute.xlu0 %536  ;;  %v539_v33 = vpop.permute.xlu1 %538 }
 0x105   : > { %v721_v62 = vsel %vm696_vm3, %v403_v59, %v537_v29  ;;  %v722_v45 = vsel %vm696_vm3, %v349_v60, %v539_v33 }
 0x106   : > { %952 = vrot.lane.b32.xlu0 %v5513_v49, %s4925_s29  ;;  %954 = vrot.lane.b32.xlu1 %v5515_v53, %s4925_s29 }
 0x108   : > { %v649_v5 = vpop.permute.xlu0 %648  ;;  %v651_v6 = vpop.permute.xlu1 %650 }
 0x109   : > { %v754_v8 = vsel %vm729_vm4, %v721_v62, %v649_v5  ;;  %v755_v11 = vsel %vm729_vm4, %v722_v45, %v651_v6  ;;  %v5573_v54 = vld [vmem:[#allocation2 + $0xc0] sm:$0xff]  ;;  %v5575_v13 = vld [vmem:[#allocation2 + $0xc8] sm:$0xff] }
 0x10a   : > { %1080 = vrot.lane.b32.xlu0 %v5533_v2, %s4926_s30  ;;  %1082 = vrot.lane.b32.xlu1 %v5535_v3, %s4926_s30  ;;  %787 = vst.msk [vmem:[#allocation2 + $0xd0] sm:$0xff] %vm240_vm2, %v754_v8  ;;  %788 = vst.msk [vmem:[#allocation2 + $0xd8] sm:$0xff] %vm240_vm2, %v755_v11 }
 0x10e   : > { %956 = vrot.lane.b32.xlu0 %v5533_v2, %s4925_s29  ;;  %958 = vrot.lane.b32.xlu1 %v5535_v3, %s4925_s29 }
 0x111   : > { %v5587_v1 = vld [vmem:[#allocation2 + $0xd0] sm:$0xff]  ;;  %v5589_v31 = vld [vmem:[#allocation2 + $0xd8] sm:$0xff] }
 0x112   : > { %1084 = vrot.lane.b32.xlu0 %v5549_v52, %s4926_s30  ;;  %1086 = vrot.lane.b32.xlu1 %v5551_v37, %s4926_s30 }
 0x116   : > { %960 = vrot.lane.b32.xlu0 %v5549_v52, %s4925_s29  ;;  %962 = vrot.lane.b32.xlu1 %v5551_v37, %s4925_s29 }
 0x11a   : > { %1088 = vrot.lane.b32.xlu0 %v5561_v40, %s4926_s30  ;;  %1090 = vrot.lane.b32.xlu1 %v5563_v47, %s4926_s30 }
 0x11e   : > { %964 = vrot.lane.b32.xlu0 %v5561_v40, %s4925_s29  ;;  %966 = vrot.lane.b32.xlu1 %v5563_v47, %s4925_s29 }
 0x122   : > { %1092 = vrot.lane.b32.xlu0 %v5573_v54, %s4926_s30  ;;  %1094 = vrot.lane.b32.xlu1 %v5575_v13, %s4926_s30 }
 0x124   : > { %v925_v36 = vpop.permute.xlu0 %924 }
 0x125   : > { %v1148_v43 = vsel %vm240_vm2, %v795_v50, %v925_v36 }
 0x126   : > { %968 = vrot.lane.b32.xlu0 %v5573_v54, %s4925_s29  ;;  %970 = vrot.lane.b32.xlu1 %v5575_v13, %s4925_s29 }
 0x128   : > { %v927_v14 = vpop.permute.xlu1 %926 }
 0x129   : > { %v1149_v44 = vsel %vm240_vm2, %v796_v51, %v927_v14 }
 0x12a   : > { %1096 = vrot.lane.b32.xlu0 %v5587_v1, %s4926_s30  ;;  %1098 = vrot.lane.b32.xlu1 %v5589_v31, %s4926_s30 }
 0x12c   : > { %v1053_v46 = vpop.permute.xlu0 %1052  ;;  %v1055_v38 = vpop.permute.xlu1 %1054 }
 0x12d   : > { %v1182_v48 = vsel %vm1180_vm6, %v1149_v44, %v1055_v38  ;;  %v1181_v32 = vsel %vm1180_vm6, %v1148_v43, %v1053_v46  ;;  %v2024_v43 = vld [vmem:[#allocation4 + $0x20] sm:$0xff]  ;;  %v2025_v44 = vld [vmem:[#allocation4 + $0x28] sm:$0xff] }
 0x12e   : > { %972 = vrot.lane.b32.xlu0 %v5587_v1, %s4925_s29  ;;  %974 = vrot.lane.b32.xlu1 %v5589_v31, %s4925_s29  ;;  %v4618_v46 = vpack.c.bf16 %v2025_v44, %v2024_v43  ;;  %v2034_v44 = vld [vmem:[#allocation4 + $0x70] sm:$0xff] }
 0x12f   : > { %4315 = vmatprep.mubr.msk.f32.mxu0 %vm1225_vm7, %v1181_v32 }
 0x130   : > { %4316 = vmatmul.mubr.msk.f32.vlgmr.msra.gmra.mrb[0].mxu0 %vm1225_vm7, %v1182_v48  ;;  %v929_v7 = vpop.permute.xlu0 %928  ;;  %v931_v55 = vpop.permute.xlu1 %930  ;;  %4619 = vmatpush1.bf16.msra.mxu1 %v4618_v46  ;;  %v2035_v46 = vld [vmem:[#allocation4 + $0x78] sm:$0xff] }
 0x131   : > { %v1150_v23 = vsel %vm240_vm2, %v5285_v0, %v929_v7  ;;  %v1151_v56 = vsel %vm240_vm2, %v5294_v61, %v931_v55  ;;  %4620 = vmatprep.subr.bf16.mxu1 %v7050_v27  ;;  %v2026_v55 = vld [vmem:[#allocation4 + $0x30] sm:$0xff] }
 0x134   : > { %v1057_v59 = vpop.permute.xlu0 %1056  ;;  %v1059_v60 = vpop.permute.xlu1 %1058 }
 0x135   : > { %v1183_v29 = vsel %vm1180_vm6, %v1150_v23, %v1057_v59  ;;  %v1184_v33 = vsel %vm1180_vm6, %v1151_v56, %v1059_v60  ;;  %v2027_v23 = vld [vmem:[#allocation4 + $0x38] sm:$0xff]  ;;  %v2028_v56 = vld [vmem:[#allocation4 + $0x40] sm:$0xff]  ;;  %v2029_v60 = vld [vmem:[#allocation4 + $0x48] sm:$0xff] }
 0x136   : > { %4318 = vmatprep.mubr.msk.f32.mxu0 %vm1225_vm7, %v1183_v29  ;;  %v4621_v59 = vpack.c.bf16 %v2027_v23, %v2026_v55 }
 0x137   : > { %4319 = vmatmul.mubr.msk.f32.gmra.mrb[2].mxu0 %vm1225_vm7, %v1184_v33 }
 0x138   : > { %v933_v62 = vpop.permute.xlu0 %932  ;;  %v935_v45 = vpop.permute.xlu1 %934  ;;  %4622 = vmatpush1.bf16.msra.mxu1 %v4621_v59  ;;  %v2038_v59 = vld [vmem:[#allocation4 + $0x90] sm:$0xff] }
 0x139   : > { %v1152_v5 = vsel %vm240_vm2, %v5303_v10, %v933_v62  ;;  %v1153_v0 = vsel %vm240_vm2, %v5305_v12, %v935_v45  ;;  %v4624_v62 = vpack.c.bf16 %v2029_v60, %v2028_v56  ;;  %4623 = vmatprep.subr.bf16.mxu1 %v7050_v27  ;;  %v2030_v45 = vld [vmem:[#allocation4 + $0x50] sm:$0xff]  ;;  %v2039_v60 = vld [vmem:[#allocation4 + $0x98] sm:$0xff] }
 0x13c   : > { %v1061_v6 = vpop.permute.xlu0 %1060  ;;  %v1063_v61 = vpop.permute.xlu1 %1062  ;;  %4625 = vmatpush1.bf16.msra.mxu1 %v4624_v62 }
 0x13d   : > { %v1185_v8 = vsel %vm1180_vm6, %v1152_v5, %v1061_v6  ;;  %v1186_v11 = vsel %vm1180_vm6, %v1153_v0, %v1063_v61  ;;  %v2031_v5 = vld [vmem:[#allocation4 + $0x58] sm:$0xff]  ;;  %4626 = vmatprep.subr.bf16.mxu1 %v7050_v27 }
 0x13e   : > { %4321 = vmatprep.mubr.msk.f32.mxu0 %vm1225_vm7, %v1185_v8 }
 0x13f   : > { %4322 = vmatmul.mubr.msk.f32.gmra.mrb[4].mxu0 %vm1225_vm7, %v1186_v11  ;;  %v4627_v11 = vpack.c.bf16 %v2031_v5, %v2030_v45  ;;  %v4639_v5 = vpack.c.bf16 %v2039_v60, %v2038_v59  ;;  %v2047_v59 = vld [vmem:[#allocation4 + $0xd8] sm:$0xff]  ;;  %v2060_v60 = vld [vmem:[#allocation4 + $0x140] sm:$0xff] }
 0x140   : > { %v937_v15 = vpop.permute.xlu0 %936  ;;  %v939_v58 = vpop.permute.xlu1 %938 }
 0x141   : > { %v1154_v16 = vsel %vm240_vm2, %v5325_v20, %v937_v15  ;;  %v1155_v10 = vsel %vm240_vm2, %v5327_v24, %v939_v58  ;;  %v404_v20 = vsel %vm310_vm1, 0.0, %v350_v25  ;;  %v352_v24 = vsel %vm310_vm1, %v350_v25, %v351_v63  ;;  %4628 = vmatpush1.bf16.msra.mxu1 %v4627_v11  ;;  %v2032_v25 = vld [vmem:[#allocation4 + $0x60] sm:$0xff]  ;;  %v2033_v63 = vld [vmem:[#allocation4 + $0x68] sm:$0xff] }
 0x142   : > { %v353_v15 = vrot.slane %v5416_v35, 7  ;;  %v354_v58 = vrot.slane %v5419_v28, 7  ;;  %4629 = vmatprep.subr.bf16.mxu1 %v7050_v27 }
 0x144   : > { %v1065_v21 = vpop.permute.xlu0 %1064  ;;  %v1067_v12 = vpop.permute.xlu1 %1066  ;;  %v405_v35 = vsel %vm310_vm1, 0.0, %v353_v15  ;;  %v355_v28 = vsel %vm310_vm1, %v353_v15, %v354_v58  ;;  %v2040_v58 = vld [vmem:[#allocation4 + $0xa0] sm:$0xff] }
 0x145   : > { %v1187_v36 = vsel %vm1180_vm6, %v1154_v16, %v1065_v21  ;;  %v1188_v14 = vsel %vm1180_vm6, %v1155_v10, %v1067_v12 }
 0x146   : > { %4324 = vmatprep.mubr.msk.f32.mxu0 %vm1225_vm7, %v1187_v36  ;;  %v4630_v36 = vpack.c.bf16 %v2033_v63, %v2032_v25 }
 0x147   : > { %4325 = vmatmul.mubr.msk.f32.gmra.mrb[6].mxu0 %vm1225_vm7, %v1188_v14 }
 0x148   : > { %v541_v50 = vpop.permute.xlu0 %540  ;;  %v543_v51 = vpop.permute.xlu1 %542  ;;  %4631 = vmatpush1.bf16.msra.mxu1 %v4630_v36 }
 0x149   : > { %v723_v17 = vsel %vm696_vm3, %v404_v20, %v541_v50  ;;  %v724_v39 = vsel %vm696_vm3, %v352_v24, %v543_v51  ;;  %4632 = vmatprep.subr.bf16.mxu1 %v7050_v27 }
 0x14c   : > { %v653_v38 = vpop.permute.xlu0 %652  ;;  %v655_v48 = vpop.permute.xlu1 %654 }
 0x14d   : > { %v756_v32 = vsel %vm729_vm4, %v723_v17, %v653_v38  ;;  %v757_v7 = vsel %vm729_vm4, %v724_v39, %v655_v48  ;;  %v2036_v17 = vld [vmem:[#allocation4 + $0x80] sm:$0xff]  ;;  %v4633_v39 = vpack.c.bf16 %v2035_v46, %v2034_v44  ;;  %v2037_v38 = vld [vmem:[#allocation4 + $0x88] sm:$0xff] }
 0x14e   : > { %789 = vst.msk [vmem:[#allocation2 + $0xe0] sm:$0xff] %vm240_vm2, %v756_v32  ;;  %790 = vst.msk [vmem:[#allocation2 + $0xe8] sm:$0xff] %vm240_vm2, %v757_v7  ;;  %v2052_v48 = vld [vmem:[#allocation4 + $0x100] sm:$0xff]  ;;  %v2053_v32 = vld [vmem:[#allocation4 + $0x108] sm:$0xff]  ;;  %v4636_v23 = vpack.c.bf16 %v2037_v38, %v2036_v17 }
 0x14f   : > { %4634 = vmatpush1.bf16.msra.mxu1 %v4633_v39  ;;  %v4659_v56 = vpack.c.bf16 %v2053_v32, %v2052_v48  ;;  %v2057_v44 = vld [vmem:[#allocation4 + $0x128] sm:$0xff]  ;;  %v2044_v38 = vld [vmem:[#allocation4 + $0xc0] sm:$0xff] }
 0x150   : > { %v941_v29 = vpop.permute.xlu0 %940  ;;  %v943_v33 = vpop.permute.xlu1 %942  ;;  %4635 = vmatprep.subr.bf16.mxu1 %v7050_v27  ;;  %v2045_v48 = vld [vmem:[#allocation4 + $0xc8] sm:$0xff] }
 0x151   : > { %v1156_v0 = vsel %vm240_vm2, %v5347_v26, %v941_v29  ;;  %v1157_v6 = vsel %vm240_vm2, %v5349_v30, %v943_v33  ;;  %4660 = vmatprep.subr.bf16.mxu0 %v4659_v56  ;;  %v4648_v32 = vpack.c.bf16 %v2045_v48, %v2044_v38 }
 0x152   : > { %4662 = vmatpush3.bf16.msra.mxu0 %v4659_v56  ;;  %v2046_v56 = vld [vmem:[#allocation4 + $0xd0] sm:$0xff] }
 0x153   : > { %4637 = vmatpush1.bf16.msra.mxu1 %v4636_v23 }
 0x154   : > { %v1069_v61 = vpop.permute.xlu0 %1068  ;;  %v1071_v8 = vpop.permute.xlu1 %1070  ;;  %4638 = vmatprep.subr.bf16.mxu1 %v7050_v27 }
 0x155   : > { %v1189_v16 = vsel %vm1180_vm6, %v1156_v0, %v1069_v61  ;;  %v1190_v10 = vsel %vm1180_vm6, %v1157_v6, %v1071_v8  ;;  %v5650_v21 = vld [vmem:[#allocation2 + $0xe0] sm:$0xff]  ;;  %v5652_v12 = vld [vmem:[#allocation2 + $0xe8] sm:$0xff]  ;;  %v356_v0 = vrot.slane %v5466_v19, 7  ;;  %v357_v6 = vrot.slane %v5469_v42, 7 }
 0x156   : > { %1100 = vrot.lane.b32.xlu0 %v5650_v21, %s4926_s30  ;;  %1102 = vrot.lane.b32.xlu1 %v5652_v12, %s4926_s30 }
 0x157   : > { %4327 = vmatprep.mubr.msk.f32.mxu0 %vm1225_vm7, %v1189_v16  ;;  %4640 = vmatpush1.bf16.msra.mxu1 %v4639_v5  ;;  %v406_v19 = vsel %vm310_vm1, 0.0, %v356_v0  ;;  %v358_v42 = vsel %vm310_vm1, %v356_v0, %v357_v6  ;;  %v2041_v16 = vld [vmem:[#allocation4 + $0xa8] sm:$0xff]  ;;  %v4651_v5 = vpack.c.bf16 %v2047_v59, %v2046_v56  ;;  %v2048_v6 = vld [vmem:[#allocation4 + $0xe0] sm:$0xff] }
 0x158   : > { %4328 = vmatmul.mubr.msk.f32.gmra.mrb[8].mxu0 %vm1225_vm7, %v1190_v10  ;;  %v545_v26 = vpop.permute.xlu0 %544  ;;  %v547_v30 = vpop.permute.xlu1 %546  ;;  %4641 = vmatprep.subr.bf16.mxu1 %v7050_v27  ;;  %v4642_v10 = vpack.c.bf16 %v2041_v16, %v2040_v58  ;;  %v2061_v0 = vld [vmem:[#allocation4 + $0x148] sm:$0xff] }
 0x159   : > { %v725_v14 = vsel %vm696_vm3, %v405_v35, %v545_v26  ;;  %v726_v50 = vsel %vm696_vm3, %v355_v28, %v547_v30  ;;  %v2054_v26 = vld [vmem:[#allocation4 + $0x110] sm:$0xff]  ;;  %v2055_v30 = vld [vmem:[#allocation4 + $0x118] sm:$0xff] }
 0x15a   : > { %976 = vrot.lane.b32.xlu0 %v5650_v21, %s4925_s29  ;;  %978 = vrot.lane.b32.xlu1 %v5652_v12, %s4925_s29  ;;  %v4663_v35 = vpack.c.bf16 %v2055_v30, %v2054_v26  ;;  %v2050_v30 = vld [vmem:[#allocation4 + $0xf0] sm:$0xff] }
 0x15b   : > { %4643 = vmatpush1.bf16.msra.mxu1 %v4642_v10 }
 0x15c   : > { %v657_v51 = vpop.permute.xlu0 %656  ;;  %v659_v20 = vpop.permute.xlu1 %658  ;;  %4664 = vmatprep.subr.bf16.mxu0 %v4663_v35  ;;  %4644 = vmatprep.subr.bf16.mxu1 %v7050_v27 }
 0x15d   : > { %v758_v24 = vsel %vm729_vm4, %v725_v14, %v657_v51  ;;  %v759_v43 = vsel %vm729_vm4, %v726_v50, %v659_v20  ;;  %v2042_v51 = vld [vmem:[#allocation4 + $0xb0] sm:$0xff]  ;;  %v2043_v20 = vld [vmem:[#allocation4 + $0xb8] sm:$0xff]  ;;  %4666 = vmatpush3.bf16.msra.mxu0 %v4663_v35 }
 0x15e   : > { %791 = vst.msk [vmem:[#allocation2 + $0xf0] sm:$0xff] %vm240_vm2, %v758_v24  ;;  %792 = vst.msk [vmem:[#allocation2 + $0xf8] sm:$0xff] %vm240_vm2, %v759_v43  ;;  %v4645_v24 = vpack.c.bf16 %v2043_v20, %v2042_v51  ;;  %v2056_v43 = vld [vmem:[#allocation4 + $0x120] sm:$0xff]  ;;  %v2051_v35 = vld [vmem:[#allocation4 + $0xf8] sm:$0xff] }
 0x15f   : > { %v4667_v46 = vpack.c.bf16 %v2057_v44, %v2056_v43 }
 0x160   : > { %v945_v7 = vpop.permute.xlu0 %944  ;;  %v947_v55 = vpop.permute.xlu1 %946  ;;  %4646 = vmatpush1.bf16.msra.mxu1 %v4645_v24  ;;  %v4657_v24 = vpack.c.bf16 %v2051_v35, %v2050_v30 }
 0x161   : > { %v1158_v29 = vsel %vm240_vm2, %v5373_v41, %v945_v7  ;;  %v1159_v33 = vsel %vm240_vm2, %v5375_v57, %v947_v55  ;;  %4668 = vmatprep.subr.bf16.mxu0 %v4667_v46  ;;  %4647 = vmatprep.subr.bf16.mxu1 %v7050_v27  ;;  %v2058_v7 = vld [vmem:[#allocation4 + $0x130] sm:$0xff]  ;;  %v2059_v55 = vld [vmem:[#allocation4 + $0x138] sm:$0xff] }
 0x162   : > { %4670 = vmatpush3.bf16.msra.mxu0 %v4667_v46  ;;  %v4671_v23 = vpack.c.bf16 %v2059_v55, %v2058_v7 }
 0x164   : > { %v1073_v62 = vpop.permute.xlu0 %1072  ;;  %v1075_v45 = vpop.permute.xlu1 %1074  ;;  %4649 = vmatpush1.bf16.msra.mxu1 %v4648_v32  ;;  %4672 = vmatprep.subr.bf16.mxu0 %v4671_v23 }
 0x165   : > { %v1191_v61 = vsel %vm1180_vm6, %v1158_v29, %v1073_v62  ;;  %v1192_v8 = vsel %vm1180_vm6, %v1159_v33, %v1075_v45  ;;  %v5684_v11 = vld [vmem:[#allocation2 + $0xf0] sm:$0xff]  ;;  %v5686_v15 = vld [vmem:[#allocation2 + $0xf8] sm:$0xff]  ;;  %4650 = vmatprep.subr.bf16.mxu1 %v7050_v27 }
 0x166   : > { %1104 = vrot.lane.b32.xlu0 %v5684_v11, %s4926_s30  ;;  %1106 = vrot.lane.b32.xlu1 %v5686_v15, %s4926_s30 }
 0x167   : > { %4330 = vmatprep.mubr.msk.f32.mxu0 %vm1225_vm7, %v1191_v61  ;;  %v2049_v61 = vld [vmem:[#allocation4 + $0xe8] sm:$0xff]  ;;  %4674 = vmatpush3.bf16.msra.mxu0 %v4671_v23 }
 0x168   : > { %4331 = vmatmul.mubr.msk.f32.gmra.mrb[10].mxu0 %vm1225_vm7, %v1192_v8  ;;  %v549_v41 = vpop.permute.xlu0 %548  ;;  %v551_v57 = vpop.permute.xlu1 %550  ;;  %4652 = vmatpush1.bf16.msra.mxu1 %v4651_v5  ;;  %v4654_v10 = vpack.c.bf16 %v2049_v61, %v2048_v6 }
 0x169   : > { %v727_v28 = vsel %vm696_vm3, %v406_v19, %v549_v41  ;;  %v728_v25 = vsel %vm696_vm3, %v358_v42, %v551_v57  ;;  %v2062_v42 = vld [vmem:[#allocation4 + $0x150] sm:$0xff]  ;;  %4653 = vmatprep.subr.bf16.mxu1 %v7050_v27 }
 0x16a   : > { %980 = vrot.lane.b32.xlu0 %v5684_v11, %s4925_s29  ;;  %982 = vrot.lane.b32.xlu1 %v5686_v15, %s4925_s29 }
 0x16c   : > { %v661_v63 = vpop.permute.xlu0 %660  ;;  %v663_v36 = vpop.permute.xlu1 %662  ;;  %4655 = vmatpush1.bf16.msra.mxu1 %v4654_v10 }
 0x16d   : > { %v760_v14 = vsel %vm729_vm4, %v727_v28, %v661_v63  ;;  %v761_v50 = vsel %vm729_vm4, %v728_v25, %v663_v36  ;;  %v2064_v28 = vld [vmem:[#allocation4 + $0x160] sm:$0xff]  ;;  %v2065_v25 = vld [vmem:[#allocation4 + $0x168] sm:$0xff]  ;;  %v891_v63 = vld [vmem:[#allocation2 + $0x118] sm:$0xff]  ;;  %4656 = vmatprep.subr.bf16.mxu1 %v7050_v27 }
 0x16e   : > { %793 = vst.msk [vmem:[#allocation2 + $0x100] sm:$0xff] %vm240_vm2, %v760_v14  ;;  %794 = vst.msk [vmem:[#allocation2 + $0x108] sm:$0xff] %vm240_vm2, %v761_v50  ;;  %v890_v36 = vld [vmem:[#allocation2 + $0x110] sm:$0xff]  ;;  %v4683_v46 = vpack.c.bf16 %v2065_v25, %v2064_v28  ;;  %v2679_v25 = vld [vmem:[#allocation4 + $0x280] sm:$0xff] }
 0x170   : > { %v949_v17 = vpop.permute.xlu0 %948  ;;  %v951_v39 = vpop.permute.xlu1 %950  ;;  %4658 = vmatpush1.bf16.msra.mxu1 %v4657_v24 }
 0x171   : > { %v1160_v29 = vsel %vm240_vm2, %v5421_v9, %v949_v17  ;;  %v1161_v33 = vsel %vm240_vm2, %v5423_v18, %v951_v39  ;;  %v4675_v9 = vpack.c.bf16 %v2061_v0, %v2060_v60  ;;  %v2063_v18 = vld [vmem:[#allocation4 + $0x158] sm:$0xff]  ;;  %v2066_v17 = vld [vmem:[#allocation4 + $0x170] sm:$0xff] }
 0x172   : > { %v4679_v26 = vpack.c.bf16 %v2063_v18, %v2062_v42  ;;  %v2067_v39 = vld [vmem:[#allocation4 + $0x178] sm:$0xff] }
 0x173   : > { %4676 = vmatprep.subr.bf16.mxu0 %v4675_v9  ;;  %2133 = vmatmul.mubr.f32.vlgmr.msra.gmra.mrb[0].mxu1 %v7048_v4  ;;  %v4687_v38 = vpack.c.bf16 %v2067_v39, %v2066_v17 }
 0x174   : > { %v1077_v62 = vpop.permute.xlu0 %1076  ;;  %v1079_v45 = vpop.permute.xlu1 %1078  ;;  %4678 = vmatpush3.bf16.msra.mxu0 %v4675_v9  ;;  %2137 = vmatprep.mubr.f32.mxu1 %v7048_v4 }
 0x175   : > { %v1193_v8 = vsel %vm1180_vm6, %v1160_v29, %v1077_v62  ;;  %v1194_v41 = vsel %vm1180_vm6, %v1161_v33, %v1079_v45  ;;  %v888_v57 = vld [vmem:[#allocation2 + $0x100] sm:$0xff]  ;;  %v889_v19 = vld [vmem:[#allocation2 + $0x108] sm:$0xff]  ;;  %4680 = vmatprep.subr.bf16.mxu0 %v4679_v26 }
 0x176   : > { %1108 = vrot.lane.b32.xlu0 %v888_v57, %s4926_s30  ;;  %1110 = vrot.lane.b32.xlu1 %v889_v19, %s4926_s30 }
 0x177   : > { %4333 = vmatprep.mubr.msk.f32.mxu0 %vm1225_vm7, %v1193_v8  ;;  %2138 = vmatmul.mubr.f32.gmra.mrb[2].mxu1 %v7048_v4 }
 0x178   : > { %4334 = vmatmul.mubr.msk.f32.gmra.mrb[12].mxu0 %vm1225_vm7, %v1194_v41  ;;  %v953_v58 = vpop.permute.xlu0 %952  ;;  %v955_v16 = vpop.permute.xlu1 %954 }
 0x179   : > { %v1162_v14 = vsel %vm240_vm2, %v5471_v22, %v953_v58  ;;  %v1163_v50 = vsel %vm240_vm2, %v5473_v34, %v955_v16  ;;  %4682 = vmatpush3.bf16.msra.mxu0 %v4679_v26 }
 0x17a   : > { %984 = vrot.lane.b32.xlu0 %v888_v57, %s4925_s29  ;;  %986 = vrot.lane.b32.xlu1 %v889_v19, %s4925_s29 }
 0x17b   : > { %4684 = vmatprep.subr.bf16.mxu0 %v4683_v46 }
 0x17c   : > { %v1081_v51 = vpop.permute.xlu0 %1080  ;;  %v1083_v20 = vpop.permute.xlu1 %1082 }
 0x17d   : > { %v1195_v43 = vsel %vm1180_vm6, %v1162_v14, %v1081_v51  ;;  %v1196_v44 = vsel %vm1180_vm6, %v1163_v50, %v1083_v20  ;;  %4686 = vmatpush3.bf16.msra.mxu0 %v4683_v46  ;;  %v2682_v46 = vld [vmem:[#allocation4 + $0x298] sm:$0xff] }
 0x17e   : > { %1114 = vrot.lane.b32.xlu1 %v891_v63, %s4926_s30  ;;  %1112 = vrot.lane.b32.xlu0 %v890_v36, %s4926_s30  ;;  %v2680_v63 = vld [vmem:[#allocation4 + $0x288] sm:$0xff] }
 0x17f   : > { %4336 = vmatprep.mubr.msk.f32.mxu0 %vm1225_vm7, %v1195_v43  ;;  %4688 = vmatprep.subr.bf16.mxu0 %v4687_v38  ;;  %v4739_v36 = vpack.c.bf16 %v2680_v63, %v2679_v25 }
 0x180   : > { %4337 = vmatmul.mubr.msk.f32.gmra.mrb[14].mxu0 %vm1225_vm7, %v1196_v44  ;;  %v957_v22 = vpop.permute.xlu0 %956  ;;  %v959_v34 = vpop.permute.xlu1 %958  ;;  %v2681_v44 = vld [vmem:[#allocation4 + $0x290] sm:$0xff] }
 0x181   : > { %v1164_v48 = vsel %vm240_vm2, %v5513_v49, %v957_v22  ;;  %v1165_v32 = vsel %vm240_vm2, %v5515_v53, %v959_v34  ;;  %4690 = vmatpush3.bf16.msra.mxu0 %v4687_v38  ;;  %4740 = vmatprep.subr.bf16.mxu1 %v4739_v36  ;;  %v4743_v22 = vpack.c.bf16 %v2682_v46, %v2681_v44 }
 0x182   : > { %4691 = vmatprep.subr.bf16.mxu0 %v7050_v27  ;;  %4742 = vmatpush3.bf16.msra.mxu1 %v4739_v36 }
 0x183   : > { %4744 = vmatprep.subr.bf16.mxu1 %v4743_v22 }
 0x184   : > { %v1085_v7 = vpop.permute.xlu0 %1084  ;;  %v1087_v55 = vpop.permute.xlu1 %1086 }
 0x185   : > { %v1197_v23 = vsel %vm1180_vm6, %v1164_v48, %v1085_v7  ;;  %v1198_v56 = vsel %vm1180_vm6, %v1165_v32, %v1087_v55 }
 0x186   : > { %4339 = vmatprep.mubr.msk.f32.mxu0 %vm1225_vm7, %v1197_v23  ;;  %4746 = vmatpush3.bf16.msra.mxu1 %v4743_v22  ;;  %v2683_v23 = vld [vmem:[#allocation4 + $0x2a0] sm:$0xff] }
 0x187   : > { %4340 = vmatmul.mubr.msk.f32.gmra.mrb[16].mxu0 %vm1225_vm7, %v1198_v56  ;;  %v2684_v56 = vld [vmem:[#allocation4 + $0x2a8] sm:$0xff] }
 0x188   : > { %v961_v59 = vpop.permute.xlu0 %960  ;;  %v963_v49 = vpop.permute.xlu1 %962 }
 0x189   : > { %v1166_v53 = vsel %vm240_vm2, %v5533_v2, %v961_v59  ;;  %v1167_v60 = vsel %vm240_vm2, %v5535_v3, %v963_v49  ;;  %v4747_v59 = vpack.c.bf16 %v2684_v56, %v2683_v23 }
 0x18b   : > { %4748 = vmatprep.subr.bf16.mxu1 %v4747_v59 }
 0x18c   : > { %v1089_v29 = vpop.permute.xlu0 %1088  ;;  %v1091_v33 = vpop.permute.xlu1 %1090  ;;  %4750 = vmatpush3.bf16.msra.mxu1 %v4747_v59 }
 0x18d   : > { %v1199_v62 = vsel %vm1180_vm6, %v1166_v53, %v1089_v29  ;;  %v1200_v45 = vsel %vm1180_vm6, %v1167_v60, %v1091_v33  ;;  %v2686_v33 = vld [vmem:[#allocation4 + $0x2b8] sm:$0xff] }
 0x18e   : > { %4342 = vmatprep.mubr.msk.f32.mxu0 %vm1225_vm7, %v1199_v62 }
 0x18f   : > { %4343 = vmatmul.mubr.msk.f32.gmra.mrb[18].mxu0 %vm1225_vm7, %v1200_v45  ;;  %v2648_v45 = vld [vmem:[#allocation4 + $0x188] sm:$0xff] }
 0x190   : > { %v965_v5 = vpop.permute.xlu0 %964  ;;  %v967_v0 = vpop.permute.xlu1 %966 }
 0x191   : > { %v1168_v6 = vsel %vm240_vm2, %v5549_v52, %v965_v5  ;;  %v1169_v2 = vsel %vm240_vm2, %v5551_v37, %v967_v0  ;;  %v2687_v5 = vld [vmem:[#allocation4 + $0x2c0] sm:$0xff] }
 0x194   : > { %v1093_v61 = vpop.permute.xlu0 %1092  ;;  %v1095_v3 = vpop.permute.xlu1 %1094 }
 0x195   : > { %v1201_v8 = vsel %vm1180_vm6, %v1168_v6, %v1093_v61  ;;  %v1202_v41 = vsel %vm1180_vm6, %v1169_v2, %v1095_v3  ;;  %v2688_v6 = vld [vmem:[#allocation4 + $0x2c8] sm:$0xff]  ;;  %v2649_v2 = vld [vmem:[#allocation4 + $0x190] sm:$0xff]  ;;  %v2650_v61 = vld [vmem:[#allocation4 + $0x198] sm:$0xff] }
 0x196   : > { %4345 = vmatprep.mubr.msk.f32.mxu0 %vm1225_vm7, %v1201_v8  ;;  %v5808_v3 = vld [vmem:[%s7042_s2] ss:$0 sm:$0xff]  ;;  %v4755_v8 = vpack.c.bf16 %v2688_v6, %v2687_v5  ;;  %v2657_v6 = vld [vmem:[#allocation4 + $0x1d0] sm:$0xff] }
 0x197   : > { %4346 = vmatmul.mubr.msk.f32.gmra.mrb[20].mxu0 %vm1225_vm7, %v1202_v41  ;;  %v4695_v41 = vpack.c.bf16 %v2650_v61, %v2649_v2  ;;  %v2658_v2 = vld [vmem:[#allocation4 + $0x1d8] sm:$0xff] }
 0x198   : > { %v969_v57 = vpop.permute.xlu0 %968  ;;  %v971_v19 = vpop.permute.xlu1 %970 }
 0x199   : > { %v1170_v9 = vsel %vm240_vm2, %v5561_v40, %v969_v57  ;;  %v1171_v52 = vsel %vm240_vm2, %v5563_v47, %v971_v19  ;;  %v2651_v57 = vld [vmem:[#allocation4 + $0x1a0] sm:$0xff] }
 0x19c   : > { %v1097_v42 = vpop.permute.xlu0 %1096  ;;  %v1099_v37 = vpop.permute.xlu1 %1098 }
 0x19d   : > { %v1203_v18 = vsel %vm1180_vm6, %v1170_v9, %v1097_v42  ;;  %v1204_v58 = vsel %vm1180_vm6, %v1171_v52, %v1099_v37  ;;  %v2652_v9 = vld [vmem:[#allocation4 + $0x1a8] sm:$0xff]  ;;  %v2689_v52 = vld [vmem:[#allocation4 + $0x2d0] sm:$0xff]  ;;  %v2690_v42 = vld [vmem:[#allocation4 + $0x2d8] sm:$0xff] }
 0x19e   : > { %4348 = vmatprep.mubr.msk.f32.mxu0 %vm1225_vm7, %v1203_v18 }
 0x19f   : > { %4349 = vmatmul.mubr.msk.f32.gmra.mrb[22].mxu0 %vm1225_vm7, %v1204_v58  ;;  %v4759_v58 = vpack.c.bf16 %v2690_v42, %v2689_v52  ;;  %v2660_v52 = vld [vmem:[#allocation4 + $0x1e8] sm:$0xff] }
 0x1a0   : > { %v973_v16 = vpop.permute.xlu0 %972  ;;  %v975_v10 = vpop.permute.xlu1 %974 }
 0x1a1   : > { %v1172_v26 = vsel %vm240_vm2, %v5573_v54, %v973_v16  ;;  %v1173_v40 = vsel %vm240_vm2, %v5575_v13, %v975_v10 }
 0x1c8   : > { %v1101_v30 = vpop.permute.xlu0 %1100  ;;  %v1103_v47 = vpop.permute.xlu1 %1102 }
 0x1c9   : > { %v1205_v35 = vsel %vm1180_vm6, %v1172_v26, %v1101_v30  ;;  %v1206_v28 = vsel %vm1180_vm6, %v1173_v40, %v1103_v47  ;;  %v4698_v26 = vpack.c.bf16 %v2652_v9, %v2651_v57  ;;  %v2653_v30 = vld [vmem:[#allocation4 + $0x1b0] sm:$0xff]  ;;  %v2654_v47 = vld [vmem:[#allocation4 + $0x1b8] sm:$0xff]  ;;  %v2659_v9 = vld [vmem:[#allocation4 + $0x1e0] sm:$0xff] }
 0x1ca   : > { %4351 = vmatprep.mubr.msk.f32.mxu0 %vm1225_vm7, %v1205_v35  ;;  %v4710_v42 = vpack.c.bf16 %v2660_v52, %v2659_v9 }
 0x1cb   : > { %4352 = vmatmul.mubr.msk.f32.gmra.mrb[24].mxu0 %vm1225_vm7, %v1206_v28 }
 0x1cc   : > { %v977_v14 = vpop.permute.xlu0 %976  ;;  %v979_v54 = vpop.permute.xlu1 %978 }
 0x1cd   : > { %v1174_v13 = vsel %vm240_vm2, %v5587_v1, %v977_v14  ;;  %v1175_v50 = vsel %vm240_vm2, %v5589_v31, %v979_v54  ;;  %v4701_v54 = vpack.c.bf16 %v2654_v47, %v2653_v30  ;;  %v2664_v30 = vld [vmem:[#allocation4 + $0x208] sm:$0xff]  ;;  %v2691_v47 = vld [vmem:[#allocation4 + $0x2e0] sm:$0xff] }
 0x1d8   : > { %v1105_v51 = vpop.permute.xlu0 %1104  ;;  %v1107_v20 = vpop.permute.xlu1 %1106 }
 0x1d9   : > { %v1207_v24 = vsel %vm1180_vm6, %v1174_v13, %v1105_v51  ;;  %v1208_v43 = vsel %vm1180_vm6, %v1175_v50, %v1107_v20  ;;  %v2655_v20 = vld [vmem:[#allocation4 + $0x1c0] sm:$0xff] }
 0x1da   : > { %4354 = vmatprep.mubr.msk.f32.mxu0 %vm1225_vm7, %v1207_v24  ;;  %v2656_v24 = vld [vmem:[#allocation4 + $0x1c8] sm:$0xff] }
 0x1db   : > { %4355 = vmatmul.mubr.msk.f32.gmra.mrb[26].mxu0 %vm1225_vm7, %v1208_v43 }
 0x1dc   : > { %v981_v34 = vpop.permute.xlu0 %980  ;;  %v983_v1 = vpop.permute.xlu1 %982 }
 0x1dd   : > { %v1176_v31 = vsel %vm240_vm2, %v5650_v21, %v981_v34  ;;  %v1177_v17 = vsel %vm240_vm2, %v5652_v12, %v983_v1  ;;  %v4704_v34 = vpack.c.bf16 %v2656_v24, %v2655_v20 }
 0x1e8   : > { %v1109_v39 = vpop.permute.xlu0 %1108  ;;  %v1111_v38 = vpop.permute.xlu1 %1110 }
 0x1e9   : > { %v1209_v48 = vsel %vm1180_vm6, %v1176_v31, %v1109_v39  ;;  %v1210_v32 = vsel %vm1180_vm6, %v1177_v17, %v1111_v38 }
 0x1ea   : > { %4357 = vmatprep.mubr.msk.f32.mxu0 %vm1225_vm7, %v1209_v48 }
 0x1eb   : > { %4358 = vmatmul.mubr.msk.f32.gmra.mrb[28].mxu0 %vm1225_vm7, %v1210_v32 }
 0x1ec   : > { %v985_v7 = vpop.permute.xlu0 %984  ;;  %v987_v55 = vpop.permute.xlu1 %986 }
 0x1ed   : > { %v1178_v21 = vsel %vm240_vm2, %v5684_v11, %v985_v7  ;;  %v1179_v12 = vsel %vm240_vm2, %v5686_v15, %v987_v55  ;;  %v2685_v11 = vld [vmem:[#allocation4 + $0x2b0] sm:$0xff]  ;;  %v2647_v15 = vld [vmem:[#allocation4 + $0x180] sm:$0xff] }
 0x1ee   : > { %v4751_v62 = vpack.c.bf16 %v2686_v33, %v2685_v11  ;;  %v4692_v0 = vpack.c.bf16 %v2648_v45, %v2647_v15 }
 0x1f0   : > { %v1115_v49 = vpop.permute.xlu1 %1114  ;;  %v1113_v53 = vpop.permute.xlu0 %1112  ;;  %4752 = vmatprep.subr.bf16.mxu1 %v4751_v62 }
 0x1f1   : > { %v1212_v60 = vsel %vm1180_vm6, %v1179_v12, %v1115_v49  ;;  %v1211_v29 = vsel %vm1180_vm6, %v1178_v21, %v1113_v53  ;;  %4754 = vmatpush3.bf16.msra.mxu1 %v4751_v62 }
 0x1f2   : > { %4360 = vmatprep.mubr.msk.f32.mxu0 %vm1225_vm7, %v1211_v29  ;;  %4756 = vmatprep.subr.bf16.mxu1 %v4755_v8 }
 0x1f3   : > { %4361 = vmatmul.mubr.msk.f32.gmra.mrb[30].mxu0 %vm1225_vm7, %v1212_v60 }
 0x1f4   : > { %4395 = vmatprep.mubr.f32.mxu0 %v7048_v4 }
 0x1f5   : > { %4758 = vmatpush3.bf16.msra.mxu1 %v4755_v8 }
 0x1f6   : > { %4760 = vmatprep.subr.bf16.mxu1 %v4759_v58 }
 0x1f7   : > { %4396 = vmatmul.mubr.f32.vlgmr.msra.gmra.mrb[32].mxu0 %v7048_v4 }
 0x1f8   : > { %4693 = vmatpush1.bf16.msra.mxu0 %v4692_v0 }
 0x1f9   : > { %4694 = vmatprep.subr.bf16.mxu0 %v7050_v27  ;;  %4762 = vmatpush3.bf16.msra.mxu1 %v4759_v58  ;;  %v2662_v58 = vld [vmem:[#allocation4 + $0x1f8] sm:$0xff] }
 0x1fc   : > { %4696 = vmatpush1.bf16.msra.mxu0 %v4695_v41  ;;  %v4707_v41 = vpack.c.bf16 %v2658_v2, %v2657_v6  ;;  %v2670_v6 = vld [vmem:[#allocation4 + $0x238] sm:$0xff] }
 0x1fd   : > { %4697 = vmatprep.subr.bf16.mxu0 %v7050_v27 }
 0x200   : > { %4699 = vmatpush1.bf16.msra.mxu0 %v4698_v26  ;;  %v2663_v26 = vld [vmem:[#allocation4 + $0x200] sm:$0xff] }
 0x201   : > { %4700 = vmatprep.subr.bf16.mxu0 %v7050_v27 }
 0x203   : > { %v4317_v19 = vpop.f32.mrb[0].mxu0 }
 0x204   : > { %v1398_v37 = vadd.f32 %v4317_v19, %v5808_v3  ;;  %v1392_v18 = vpop.f32.mrb[1].mxu0  ;;  %4702 = vmatpush1.bf16.msra.mxu0 %v4701_v54 }
 0x205   : > { %v1393_v16 = vadd.f32 %v5808_v3, %v1392_v18  ;;  %4703 = vmatprep.subr.bf16.mxu0 %v7050_v27  ;;  %v2661_v18 = vld [vmem:[#allocation4 + $0x1f0] sm:$0xff] }
 0x206   : > { %v5813_v10 = vmax.f32 %v1398_v37, 0.0 }
 0x207   : > { %v5815_v40 = vmax.f32 %v1393_v16, 0.0  ;;  %v4713_v16 = vpack.c.bf16 %v2662_v58, %v2661_v18 }
 0x208   : > { %v5824_v28 = vrot.slane %v5813_v10, 1  ;;  %v1629_v14 = vrot.slane %v5813_v10, 7  ;;  %4705 = vmatpush1.bf16.msra.mxu0 %v4704_v34  ;;  %v2665_v34 = vld [vmem:[#allocation4 + $0x210] sm:$0xff] }
 0x209   : > { %2142 = vmatprep.mubr.f32.mxu1 %v5815_v40  ;;  %v5828_v25 = vrot.slane %v5815_v40, 7  ;;  %v1724_v63 = vrot.slane %v5815_v40, 1  ;;  %4706 = vmatprep.subr.bf16.mxu0 %v7050_v27 }
 0x20a   : > { %v4320_v36 = vpop.f32.mrb[2].mxu0 }
 0x20b   : > { %v1408_v13 = vadd.f32 %v4320_v36, %v5808_v3  ;;  %3987 = vmatmul.mubr.msk.f32.gmra.mrb[4].mxu1 %vm5819_vm8, %v5828_v25  ;;  %v1402_v50 = vpop.f32.mrb[3].mxu0  ;;  %v5838_v51 = vsel %vm407_vm0, %v1724_v63, %v5824_v28  ;;  %v5852_v22 = vsel %vm310_vm1, %v5828_v25, %v1629_v14  ;;  %v4716_v36 = vpack.c.bf16 %v2664_v30, %v2663_v26  ;;  %v2692_v14 = vld [vmem:[#allocation4 + $0x2e8] sm:$0xff] }
 0x20c   : > { %v1403_v43 = vadd.f32 %v5808_v3, %v1402_v50  ;;  %2147 = vmatprep.mubr.f32.mxu1 %v5813_v10  ;;  %4398 = vmatprep.mubr.f32.mxu0 %v5838_v51  ;;  %v4763_v50 = vpack.c.bf16 %v2692_v14, %v2691_v47 }
 0x20d   : > { %v5844_v44 = vmax.f32 %v1408_v13, 0.0  ;;  %4399 = vmatmul.mubr.msk.f32.gmra.mrb[34].mxu0 %vm407_vm0, %v5824_v28 }
 0x20e   : > { %v5848_v46 = vmax.f32 %v1403_v43, 0.0  ;;  %4708 = vmatpush1.bf16.msra.mxu0 %v4707_v41  ;;  %4764 = vmatprep.subr.bf16.mxu1 %v4763_v50  ;;  %v2672_v41 = vld [vmem:[#allocation4 + $0x248] sm:$0xff] }
 0x20f   : > { %2148 = vmatmul.mubr.f32.gmra.mrb[6].mxu1 %v5852_v22  ;;  %v5856_v1 = vrot.slane %v5844_v44, 1  ;;  %v1632_v48 = vrot.slane %v5844_v44, 7  ;;  %4709 = vmatprep.subr.bf16.mxu0 %v7050_v27 }
 0x210   : > { %2152 = vmatprep.mubr.f32.mxu1 %v5848_v46  ;;  %v5861_v31 = vrot.slane %v5848_v46, 7  ;;  %v1727_v17 = vrot.slane %v5848_v46, 1  ;;  %4766 = vmatpush3.bf16.msra.mxu1 %v4763_v50 }
 0x212   : > { %v4323_v39 = vpop.f32.mrb[4].mxu0  ;;  %v5866_v38 = vsel %vm407_vm0, %v1727_v17, %v5856_v1  ;;  %v5885_v59 = vsel %vm310_vm1, %v5861_v31, %v1632_v48  ;;  %4711 = vmatpush1.bf16.msra.mxu0 %v4710_v42  ;;  %v2666_v17 = vld [vmem:[#allocation4 + $0x218] sm:$0xff] }
 0x213   : > { %v1418_v32 = vadd.f32 %v4323_v39, %v5808_v3  ;;  %3989 = vmatmul.mubr.msk.f32.gmra.mrb[8].mxu1 %vm5819_vm8, %v5861_v31  ;;  %v1412_v7 = vpop.f32.mrb[5].mxu0  ;;  %4401 = vmatprep.mubr.f32.mxu0 %v5866_v38  ;;  %v4719_v48 = vpack.c.bf16 %v2666_v17, %v2665_v34  ;;  %v2694_v42 = vld [vmem:[#allocation4 + $0x2f8] sm:$0xff]  ;;  %v2675_v17 = vld [vmem:[#allocation4 + $0x260] sm:$0xff] }
 0x214   : > { %v1413_v55 = vadd.f32 %v5808_v3, %v1412_v7  ;;  %2157 = vmatprep.mubr.f32.mxu1 %v5844_v44  ;;  %4402 = vmatmul.mubr.msk.f32.gmra.mrb[36].mxu0 %vm407_vm0, %v5856_v1 }
 0x215   : > { %v5878_v23 = vmax.f32 %v1418_v32, 0.0  ;;  %4712 = vmatprep.subr.bf16.mxu0 %v7050_v27 }
 0x216   : > { %v5881_v56 = vmax.f32 %v1413_v55, 0.0  ;;  %4714 = vmatpush1.bf16.msra.mxu0 %v4713_v16 }
 0x217   : > { %2158 = vmatmul.mubr.f32.gmra.mrb[10].mxu1 %v5885_v59  ;;  %v5889_v21 = vrot.slane %v5878_v23, 1  ;;  %v1635_v29 = vrot.slane %v5878_v23, 7  ;;  %4715 = vmatprep.subr.bf16.mxu0 %v7050_v27 }
 0x218   : > { %2162 = vmatprep.mubr.f32.mxu1 %v5881_v56  ;;  %v5893_v12 = vrot.slane %v5881_v56, 7  ;;  %v1730_v49 = vrot.slane %v5881_v56, 1 }
 0x21a   : > { %v4326_v53 = vpop.f32.mrb[6].mxu0  ;;  %v5898_v60 = vsel %vm407_vm0, %v1730_v49, %v5889_v21  ;;  %v5916_v5 = vsel %vm310_vm1, %v5893_v12, %v1635_v29  ;;  %4717 = vmatpush1.bf16.msra.mxu0 %v4716_v36  ;;  %v2668_v29 = vld [vmem:[#allocation4 + $0x228] sm:$0xff]  ;;  %v2674_v36 = vld [vmem:[#allocation4 + $0x258] sm:$0xff] }
 0x21b   : > { %v1428_v11 = vadd.f32 %v4326_v53, %v5808_v3  ;;  %3991 = vmatmul.mubr.msk.f32.gmra.mrb[12].mxu1 %vm5819_vm8, %v5893_v12  ;;  %v1422_v33 = vpop.f32.mrb[7].mxu0  ;;  %4404 = vmatprep.mubr.f32.mxu0 %v5898_v60  ;;  %v2667_v53 = vld [vmem:[#allocation4 + $0x220] sm:$0xff] }
 0x21c   : > { %v1423_v62 = vadd.f32 %v5808_v3, %v1422_v33  ;;  %2167 = vmatprep.mubr.f32.mxu1 %v5878_v23  ;;  %4405 = vmatmul.mubr.msk.f32.gmra.mrb[38].mxu0 %vm407_vm0, %v5889_v21 }
 0x21d   : > { %v5910_v15 = vmax.f32 %v1428_v11, 0.0  ;;  %4718 = vmatprep.subr.bf16.mxu0 %v7050_v27  ;;  %v4722_v11 = vpack.c.bf16 %v2668_v29, %v2667_v53  ;;  %v2677_v53 = vld [vmem:[#allocation4 + $0x270] sm:$0xff]  ;;  %v2678_v29 = vld [vmem:[#allocation4 + $0x278] sm:$0xff] }
 0x21e   : > { %v5912_v45 = vmax.f32 %v1423_v62, 0.0  ;;  %4720 = vmatpush1.bf16.msra.mxu0 %v4719_v48  ;;  %v2669_v62 = vld [vmem:[#allocation4 + $0x230] sm:$0xff]  ;;  %v2676_v48 = vld [vmem:[#allocation4 + $0x268] sm:$0xff] }
 0x21f   : > { %2168 = vmatmul.mubr.f32.gmra.mrb[14].mxu1 %v5916_v5  ;;  %v5920_v0 = vrot.slane %v5910_v15, 1  ;;  %v1638_v19 = vrot.slane %v5910_v15, 7  ;;  %4721 = vmatprep.subr.bf16.mxu0 %v7050_v27  ;;  %v4725_v2 = vpack.c.bf16 %v2670_v6, %v2669_v62 }
 0x220   : > { %2172 = vmatprep.mubr.f32.mxu1 %v5912_v45  ;;  %v5924_v61 = vrot.slane %v5912_v45, 7  ;;  %v1733_v8 = vrot.slane %v5912_v45, 1 }
 0x222   : > { %v5929_v57 = vsel %vm407_vm0, %v1733_v8, %v5920_v0  ;;  %v5942_v37 = vsel %vm310_vm1, %v5924_v61, %v1638_v19  ;;  %4723 = vmatpush1.bf16.msra.mxu0 %v4722_v11  ;;  %v2671_v8 = vld [vmem:[#allocation4 + $0x240] sm:$0xff]  ;;  %v2693_v19 = vld [vmem:[#allocation4 + $0x2f0] sm:$0xff]  ;;  %v4737_v11 = vpack.c.bf16 %v2678_v29, %v2677_v53 }
 0x223   : > { %3993 = vmatmul.mubr.msk.f32.gmra.mrb[16].mxu1 %vm5819_vm8, %v5924_v61  ;;  %4407 = vmatprep.mubr.f32.mxu0 %v5929_v57  ;;  %v4728_v52 = vpack.c.bf16 %v2672_v41, %v2671_v8  ;;  %v4767_v16 = vpack.c.bf16 %v2694_v42, %v2693_v19  ;;  %v3307_v8 = vld [vmem:[#allocation4 + $0x400] sm:$0xff]  ;;  %v3308_v41 = vld [vmem:[#allocation4 + $0x408] sm:$0xff] }
 0x224   : > { %2177 = vmatprep.mubr.f32.mxu1 %v5910_v15  ;;  %4408 = vmatmul.mubr.msk.f32.gmra.mrb[40].mxu0 %vm407_vm0, %v5920_v0 }
 0x225   : > { %4724 = vmatprep.subr.bf16.mxu0 %v7050_v27  ;;  %4768 = vmatprep.subr.bf16.mxu1 %v4767_v16 }
 0x226   : > { %4726 = vmatpush1.bf16.msra.mxu0 %v4725_v2  ;;  %4770 = vmatpush3.bf16.msra.mxu1 %v4767_v16 }
 0x227   : > { %2178 = vmatmul.mubr.f32.gmra.mrb[18].mxu1 %v5942_v37  ;;  %4727 = vmatprep.subr.bf16.mxu0 %v7050_v27 }
 0x228   : > { %4771 = vmatprep.subr.bf16.mxu1 %v7050_v27 }
 0x22a   : > { %4729 = vmatpush1.bf16.msra.mxu0 %v4728_v52 }
 0x22b   : > { %v4329_v63 = vpop.f32.mrb[8].mxu0  ;;  %4730 = vmatprep.subr.bf16.mxu0 %v7050_v27 }
 0x22c   : > { %v1438_v54 = vadd.f32 %v4329_v63, %v5808_v3  ;;  %v1432_v13 = vpop.f32.mrb[9].mxu0  ;;  %v2673_v63 = vld [vmem:[#allocation4 + $0x250] sm:$0xff] }
 0x22d   : > { %v1433_v20 = vadd.f32 %v5808_v3, %v1432_v13 }
 0x22e   : > { %v5949_v24 = vmax.f32 %v1438_v54, 0.0  ;;  %v4731_v54 = vpack.c.bf16 %v2674_v36, %v2673_v63 }
 0x22f   : > { %v5951_v43 = vmax.f32 %v1433_v20, 0.0 }
 0x230   : > { %v5955_v39 = vrot.slane %v5949_v24, 1  ;;  %v1641_v55 = vrot.slane %v5949_v24, 7  ;;  %4732 = vmatpush1.bf16.msra.mxu0 %v4731_v54 }
 0x231   : > { %2182 = vmatprep.mubr.f32.mxu1 %v5951_v43  ;;  %v5959_v32 = vrot.slane %v5951_v43, 7  ;;  %v1736_v7 = vrot.slane %v5951_v43, 1  ;;  %4733 = vmatprep.subr.bf16.mxu0 %v7050_v27 }
 0x233   : > { %3995 = vmatmul.mubr.msk.f32.gmra.mrb[20].mxu1 %vm5819_vm8, %v5959_v32  ;;  %v5968_v49 = vsel %vm407_vm0, %v1736_v7, %v5955_v39  ;;  %v5977_v33 = vsel %vm310_vm1, %v5959_v32, %v1641_v55  ;;  %v4734_v7 = vpack.c.bf16 %v2676_v48, %v2675_v17 }
 0x234   : > { %2187 = vmatprep.mubr.f32.mxu1 %v5949_v24  ;;  %4410 = vmatprep.mubr.f32.mxu0 %v5968_v49 }
 0x235   : > { %4411 = vmatmul.mubr.msk.f32.gmra.mrb[42].mxu0 %vm407_vm0, %v5955_v39 }
 0x236   : > { %4735 = vmatpush1.bf16.msra.mxu0 %v4734_v7 }
 0x237   : > { %2188 = vmatmul.mubr.f32.gmra.mrb[22].mxu1 %v5977_v33  ;;  %4736 = vmatprep.subr.bf16.mxu0 %v7050_v27 }
 0x23a   : > { %4738 = vmatpush1.bf16.msra.mxu0 %v4737_v11 }
 0x23b   : > { %v4332_v9 = vpop.f32.mrb[10].mxu0 }
 0x23c   : > { %v1448_v18 = vadd.f32 %v4332_v9, %v5808_v3  ;;  %v1442_v58 = vpop.f32.mrb[11].mxu0  ;;  %v6019_v9 = vpack.c.bf16 %v3308_v41, %v3307_v8 }
 0x23d   : > { %v1443_v26 = vadd.f32 %v5808_v3, %v1442_v58 }
 0x23e   : > { %v5984_v30 = vmax.f32 %v1448_v18, 0.0  ;;  %4820 = vmatprep.subr.bf16.mxu0 %v6019_v9 }
 0x23f   : > { %v5986_v47 = vmax.f32 %v1443_v26, 0.0 }
 0x240   : > { %v5990_v14 = vrot.slane %v5984_v30, 1  ;;  %v1644_v20 = vrot.slane %v5984_v30, 7 }
 0x241   : > { %2192 = vmatprep.mubr.f32.mxu1 %v5986_v47  ;;  %v5995_v13 = vrot.slane %v5986_v47, 7  ;;  %v1739_v50 = vrot.slane %v5986_v47, 1 }
 0x243   : > { %3997 = vmatmul.mubr.msk.f32.gmra.mrb[24].mxu1 %vm5819_vm8, %v5995_v13  ;;  %v6004_v34 = vsel %vm407_vm0, %v1739_v50, %v5990_v14  ;;  %v6013_v55 = vsel %vm310_vm1, %v5995_v13, %v1644_v20 }
 0x244   : > { %2197 = vmatprep.mubr.f32.mxu1 %v5984_v30  ;;  %4413 = vmatprep.mubr.f32.mxu0 %v6004_v34  ;;  %7149 = vst [vmem:[#allocation7_spill] sm:$0xff] %v6013_v55 }
 0x245   : > { %4414 = vmatmul.mubr.msk.f32.gmra.mrb[44].mxu0 %vm407_vm0, %v5990_v14 }
 0x246   : > { %v6060_v29 = vpop.f32.mrb[0].mxu1 }
 0x247   : > { %2198 = vmatmul.mubr.f32.gmra.mrb[26].mxu1 %v6013_v55  ;;  %v3312_v55 = vld [vmem:[#allocation4 + $0x428] sm:$0xff] }
 0x24b   : > { %v4335_v62 = vpop.f32.mrb[12].mxu0 }
 0x24c   : > { %v1458_v6 = vadd.f32 %v4335_v62, %v5808_v3  ;;  %v1452_v2 = vpop.f32.mrb[13].mxu0 }
 0x24d   : > { %v1453_v19 = vadd.f32 %v5808_v3, %v1452_v2 }
 0x24e   : > { %v6021_v52 = vmax.f32 %v1458_v6, 0.0  ;;  %v2136_v6 = vpop.f32.mrb[1].mxu1 }
 0x24f   : > { %v6023_v42 = vmax.f32 %v1453_v19, 0.0 }
 0x250   : > { %7150 = vst [vmem:[#allocation8_spill] sm:$0xff] %v6021_v52  ;;  %v6027_v18 = vrot.slane %v6021_v52, 1  ;;  %v1647_v26 = vrot.slane %v6021_v52, 7 }
 0x251   : > { %7151 = vst [vmem:[#allocation9_spill] sm:$0xff] %v6023_v42  ;;  %2202 = vmatprep.mubr.f32.mxu1 %v6023_v42  ;;  %v6031_v58 = vrot.slane %v6023_v42, 7  ;;  %v1742_v16 = vrot.slane %v6023_v42, 1 }
 0x253   : > { %7152 = vst [vmem:[#allocation10_spill] sm:$0xff] %v6031_v58  ;;  %v4338_v63 = vpop.f32.mrb[14].mxu0  ;;  %3999 = vmatmul.mubr.msk.f32.gmra.mrb[28].mxu1 %vm5819_vm8, %v6031_v58  ;;  %v6040_v36 = vsel %vm407_vm0, %v1742_v16, %v6027_v18  ;;  %v6052_v48 = vsel %vm310_vm1, %v6031_v58, %v1647_v26  ;;  %v6076_v26 = vpop.f32.mrb[2].mxu1 }
 0x254   : > { %v1468_v54 = vadd.f32 %v4338_v63, %v5808_v3  ;;  %v1462_v50 = vpop.f32.mrb[15].mxu0  ;;  %2207 = vmatprep.mubr.f32.mxu1 %v6021_v52  ;;  %4416 = vmatprep.mubr.f32.mxu0 %v6040_v36  ;;  %7154 = vst [vmem:[#allocation12_spill] sm:$0xff] %v6052_v48 }
 0x255   : > { %v1463_v20 = vadd.f32 %v5808_v3, %v1462_v50  ;;  %4417 = vmatmul.mubr.msk.f32.gmra.mrb[46].mxu0 %vm407_vm0, %v6027_v18 }
 0x256   : > { %v6048_v17 = vmax.f32 %v1468_v54, 0.0  ;;  %v2141_v54 = vpop.f32.mrb[3].mxu1 }
 0x257   : > { %v6054_v7 = vmax.f32 %v1463_v20, 0.0  ;;  %2208 = vmatmul.mubr.f32.gmra.mrb[30].mxu1 %v6052_v48 }
 0x258   : > { %7153 = vst [vmem:[#allocation11_spill] sm:$0xff] %v6048_v17  ;;  %v6058_v53 = vrot.slane %v6048_v17, 1  ;;  %v1650_v8 = vrot.slane %v6048_v17, 7 }
 0x259   : > { %7155 = vst [vmem:[#allocation13_spill] sm:$0xff] %v6054_v7  ;;  %2212 = vmatprep.mubr.f32.mxu1 %v6054_v7  ;;  %v6064_v11 = vrot.slane %v6054_v7, 7  ;;  %v1745_v62 = vrot.slane %v6054_v7, 1 }
 0x25a   : > { %v4341_v2 = vpop.f32.mrb[16].mxu0 }
 0x25b   : > { %7156 = vst [vmem:[#allocation14_spill] sm:$0xff] %v6064_v11  ;;  %v1478_v41 = vadd.f32 %v4341_v2, %v5808_v3  ;;  %4001 = vmatmul.mubr.msk.f32.gmra.mrb[32].mxu1 %vm5819_vm8, %v6064_v11  ;;  %v1472_v19 = vpop.f32.mrb[17].mxu0  ;;  %v6074_v16 = vsel %vm407_vm0, %v1745_v62, %v6058_v53  ;;  %v6089_v62 = vsel %vm310_vm1, %v6064_v11, %v1650_v8 }
 0x25c   : > { %v1473_v63 = vadd.f32 %v5808_v3, %v1472_v19  ;;  %2217 = vmatprep.mubr.f32.mxu1 %v6048_v17  ;;  %4419 = vmatprep.mubr.f32.mxu0 %v6074_v16  ;;  %7159 = vst [vmem:[#allocation17_spill] sm:$0xff] %v6089_v62 }
 0x25d   : > { %v6081_v50 = vmax.f32 %v1478_v41, 0.0  ;;  %4420 = vmatmul.mubr.msk.f32.gmra.mrb[48].mxu0 %vm407_vm0, %v6058_v53 }
 0x25e   : > { %v6085_v20 = vmax.f32 %v1473_v63, 0.0 }
 0x25f   : > { %7157 = vst [vmem:[#allocation15_spill] sm:$0xff] %v6081_v50  ;;  %2218 = vmatmul.mubr.f32.gmra.mrb[34].mxu1 %v6089_v62  ;;  %v6093_v6 = vrot.slane %v6081_v50, 1  ;;  %v1653_v8 = vrot.slane %v6081_v50, 7 }
 0x260   : > { %7158 = vst [vmem:[#allocation16_spill] sm:$0xff] %v6085_v20  ;;  %2222 = vmatprep.mubr.f32.mxu1 %v6085_v20  ;;  %v6097_v2 = vrot.slane %v6085_v20, 7  ;;  %v1748_v41 = vrot.slane %v6085_v20, 1 }
 0x262   : > { %7160 = vst [vmem:[#allocation18_spill] sm:$0xff] %v6097_v2  ;;  %v4344_v19 = vpop.f32.mrb[18].mxu0  ;;  %v6102_v63 = vsel %vm407_vm0, %v1748_v41, %v6093_v6 }
 0x263   : > { %v1488_v54 = vadd.f32 %v4344_v19, %v5808_v3  ;;  %4003 = vmatmul.mubr.msk.f32.gmra.mrb[36].mxu1 %vm5819_vm8, %v6097_v2  ;;  %v1482_v4 = vpop.f32.mrb[19].mxu0  ;;  %4422 = vmatprep.mubr.f32.mxu0 %v6102_v63  ;;  %v6120_v19 = vsel %vm310_vm1, %v6097_v2, %v1653_v8 }
 0x264   : > { %v1483_v27 = vadd.f32 %v5808_v3, %v1482_v4  ;;  %2227 = vmatprep.mubr.f32.mxu1 %v6081_v50  ;;  %4423 = vmatmul.mubr.msk.f32.gmra.mrb[50].mxu0 %vm407_vm0, %v6093_v6  ;;  %7163 = vst [vmem:[#allocation21_spill] sm:$0xff] %v6120_v19 }
 0x265   : > { %v6114_v41 = vmax.f32 %v1488_v54, 0.0 }
 0x266   : > { %v6116_v20 = vmax.f32 %v1483_v27, 0.0 }
 0x267   : > { %7161 = vst [vmem:[#allocation19_spill] sm:$0xff] %v6114_v41  ;;  %2228 = vmatmul.mubr.f32.gmra.mrb[38].mxu1 %v6120_v19  ;;  %v6124_v62 = vrot.slane %v6114_v41, 1  ;;  %v1656_v8 = vrot.slane %v6114_v41, 7 }
 0x268   : > { %7162 = vst [vmem:[#allocation20_spill] sm:$0xff] %v6116_v20  ;;  %2232 = vmatprep.mubr.f32.mxu1 %v6116_v20  ;;  %v6128_v4 = vrot.slane %v6116_v20, 7  ;;  %v1751_v50 = vrot.slane %v6116_v20, 1 }
 0x269   : > { %7164 = vst [vmem:[#allocation22_spill] sm:$0xff] %v6124_v62 }
 0x26a   : > { %7165 = vst [vmem:[#allocation23_spill] sm:$0xff] %v6128_v4  ;;  %v4347_v54 = vpop.f32.mrb[20].mxu0  ;;  %v6133_v27 = vsel %vm407_vm0, %v1751_v50, %v6124_v62 }
 0x26b   : > { %v1498_v2 = vadd.f32 %v4347_v54, %v5808_v3  ;;  %4005 = vmatmul.mubr.msk.f32.gmra.mrb[40].mxu1 %vm5819_vm8, %v6128_v4  ;;  %v1492_v19 = vpop.f32.mrb[21].mxu0  ;;  %4425 = vmatprep.mubr.f32.mxu0 %v6133_v27  ;;  %v6151_v54 = vsel %vm310_vm1, %v6128_v4, %v1656_v8 }
 0x26c   : > { %v1493_v17 = vadd.f32 %v5808_v3, %v1492_v19  ;;  %2237 = vmatprep.mubr.f32.mxu1 %v6114_v41  ;;  %4426 = vmatmul.mubr.msk.f32.gmra.mrb[52].mxu0 %vm407_vm0, %v6124_v62  ;;  %7168 = vst [vmem:[#allocation26_spill] sm:$0xff] %v6151_v54 }
 0x26d   : > { %v6145_v50 = vmax.f32 %v1498_v2, 0.0 }
 0x26e   : > { %v6147_v20 = vmax.f32 %v1493_v17, 0.0 }
 0x26f   : > { %7166 = vst [vmem:[#allocation24_spill] sm:$0xff] %v6145_v50  ;;  %2238 = vmatmul.mubr.f32.gmra.mrb[42].mxu1 %v6151_v54  ;;  %v6155_v11 = vrot.slane %v6145_v50, 1  ;;  %v1659_v8 = vrot.slane %v6145_v50, 7 }
 0x270   : > { %7167 = vst [vmem:[#allocation25_spill] sm:$0xff] %v6147_v20  ;;  %2242 = vmatprep.mubr.f32.mxu1 %v6147_v20  ;;  %v6159_v19 = vrot.slane %v6147_v20, 7  ;;  %v1754_v41 = vrot.slane %v6147_v20, 1 }
 0x271   : > { %7169 = vst [vmem:[#allocation27_spill] sm:$0xff] %v6155_v11 }
 0x272   : > { %7170 = vst [vmem:[#allocation28_spill] sm:$0xff] %v6159_v19  ;;  %v4350_v2 = vpop.f32.mrb[22].mxu0  ;;  %v6164_v17 = vsel %vm407_vm0, %v1754_v41, %v6155_v11 }
 0x273   : > { %7171 = vst [vmem:[#allocation29_spill] sm:$0xff] %v6164_v17  ;;  %v1508_v4 = vadd.f32 %v4350_v2, %v5808_v3  ;;  %4007 = vmatmul.mubr.msk.f32.gmra.mrb[44].mxu1 %vm5819_vm8, %v6159_v19  ;;  %v1502_v54 = vpop.f32.mrb[23].mxu0  ;;  %4428 = vmatprep.mubr.f32.mxu0 %v6164_v17  ;;  %v6182_v2 = vsel %vm310_vm1, %v6159_v19, %v1659_v8 }
 0x274   : > { %v1503_v7 = vadd.f32 %v5808_v3, %v1502_v54  ;;  %2247 = vmatprep.mubr.f32.mxu1 %v6145_v50  ;;  %4429 = vmatmul.mubr.msk.f32.gmra.mrb[54].mxu0 %vm407_vm0, %v6155_v11  ;;  %7174 = vst [vmem:[#allocation32_spill] sm:$0xff] %v6182_v2 }
 0x275   : > { %v6176_v41 = vmax.f32 %v1508_v4, 0.0 }
 0x276   : > { %v6178_v20 = vmax.f32 %v1503_v7, 0.0 }
 0x277   : > { %7172 = vst [vmem:[#allocation30_spill] sm:$0xff] %v6176_v41  ;;  %2248 = vmatmul.mubr.f32.gmra.mrb[46].mxu1 %v6182_v2  ;;  %v6186_v48 = vrot.slane %v6176_v41, 1  ;;  %v1662_v4 = vrot.slane %v6176_v41, 7 }
 0x278   : > { %7173 = vst [vmem:[#allocation31_spill] sm:$0xff] %v6178_v20  ;;  %2252 = vmatprep.mubr.f32.mxu1 %v6178_v20  ;;  %v6190_v54 = vrot.slane %v6178_v20, 7  ;;  %v1757_v50 = vrot.slane %v6178_v20, 1 }
 0x279   : > { %7175 = vst [vmem:[#allocation33_spill] sm:$0xff] %v6186_v48 }
 0x27a   : > { %7176 = vst [vmem:[#allocation34_spill] sm:$0xff] %v6190_v54  ;;  %v6195_v7 = vsel %vm407_vm0, %v1757_v50, %v6186_v48  ;;  %v6207_v8 = vsel %vm310_vm1, %v6190_v54, %v1662_v4 }
 0x27b   : > { %7177 = vst [vmem:[#allocation35_spill] sm:$0xff] %v6195_v7  ;;  %4009 = vmatmul.mubr.msk.f32.gmra.mrb[48].mxu1 %vm5819_vm8, %v6190_v54  ;;  %4431 = vmatprep.mubr.f32.mxu0 %v6195_v7  ;;  %7178 = vst [vmem:[#allocation36_spill] sm:$0xff] %v6207_v8 }
 0x27c   : > { %2257 = vmatprep.mubr.f32.mxu1 %v6176_v41  ;;  %4432 = vmatmul.mubr.msk.f32.gmra.mrb[56].mxu0 %vm407_vm0, %v6186_v48 }
 0x27f   : > { %2258 = vmatmul.mubr.f32.gmra.mrb[50].mxu1 %v6207_v8 }
 0x29e   : > { %v4353_v50 = vpop.f32.mrb[24].mxu0 }
 0x29f   : > { %v1518_v20 = vadd.f32 %v4353_v50, %v5808_v3  ;;  %v1512_v2 = vpop.f32.mrb[25].mxu0 }
 0x2a0   : > { %v1513_v19 = vadd.f32 %v5808_v3, %v1512_v2 }
 0x2a1   : > { %v6212_v52 = vmax.f32 %v1518_v20, 0.0 }
 0x2a2   : > { %v6214_v58 = vmax.f32 %v1513_v19, 0.0 }
 0x2a3   : > { %7179 = vst [vmem:[#allocation37_spill] sm:$0xff] %v6212_v52  ;;  %v6217_v41 = vrot.slane %v6212_v52, 1  ;;  %v1665_v54 = vrot.slane %v6212_v52, 7 }
 0x2a4   : > { %7180 = vst [vmem:[#allocation38_spill] sm:$0xff] %v6214_v58  ;;  %2262 = vmatprep.mubr.f32.mxu1 %v6214_v58  ;;  %v6221_v4 = vrot.slane %v6214_v58, 7  ;;  %v1760_v8 = vrot.slane %v6214_v58, 1 }
 0x2a5   : > { %7181 = vst [vmem:[#allocation39_spill] sm:$0xff] %v6217_v41 }
 0x2a6   : > { %7182 = vst [vmem:[#allocation40_spill] sm:$0xff] %v6221_v4  ;;  %4011 = vmatmul.mubr.msk.f32.gmra.mrb[52].mxu1 %vm5819_vm8, %v6221_v4  ;;  %v6230_v20 = vsel %vm407_vm0, %v1760_v8, %v6217_v41  ;;  %v6238_v19 = vsel %vm310_vm1, %v6221_v4, %v1665_v54 }
 0x2a7   : > { %7183 = vst [vmem:[#allocation41_spill] sm:$0xff] %v6230_v20  ;;  %2267 = vmatprep.mubr.f32.mxu1 %v6212_v52  ;;  %4434 = vmatprep.mubr.f32.mxu0 %v6230_v20  ;;  %7184 = vst [vmem:[#allocation42_spill] sm:$0xff] %v6238_v19 }
 0x2a8   : > { %4435 = vmatmul.mubr.msk.f32.gmra.mrb[58].mxu0 %vm407_vm0, %v6217_v41 }
 0x2aa   : > { %2268 = vmatmul.mubr.f32.gmra.mrb[54].mxu1 %v6238_v19 }
 0x2ae   : > { %v4356_v2 = vpop.f32.mrb[26].mxu0 }
 0x2af   : > { %v1528_v50 = vadd.f32 %v4356_v2, %v5808_v3  ;;  %v1522_v58 = vpop.f32.mrb[27].mxu0 }
 0x2b0   : > { %v1523_v8 = vadd.f32 %v5808_v3, %v1522_v58 }
 0x2b1   : > { %v6243_v48 = vmax.f32 %v1528_v50, 0.0 }
 0x2b2   : > { %v6245_v52 = vmax.f32 %v1523_v8, 0.0 }
 0x2b3   : > { %7185 = vst [vmem:[#allocation43_spill] sm:$0xff] %v6243_v48  ;;  %v6248_v20 = vrot.slane %v6243_v48, 1  ;;  %v1668_v4 = vrot.slane %v6243_v48, 7 }
 0x2b4   : > { %7186 = vst [vmem:[#allocation44_spill] sm:$0xff] %v6245_v52  ;;  %2272 = vmatprep.mubr.f32.mxu1 %v6245_v52  ;;  %v6252_v54 = vrot.slane %v6245_v52, 7  ;;  %v1763_v19 = vrot.slane %v6245_v52, 1 }
 0x2b5   : > { %7187 = vst [vmem:[#allocation45_spill] sm:$0xff] %v6248_v20 }
 0x2b6   : > { %7188 = vst [vmem:[#allocation46_spill] sm:$0xff] %v6252_v54  ;;  %4013 = vmatmul.mubr.msk.f32.gmra.mrb[56].mxu1 %vm5819_vm8, %v6252_v54  ;;  %v6261_v58 = vsel %vm407_vm0, %v1763_v19, %v6248_v20  ;;  %v6269_v2 = vsel %vm310_vm1, %v6252_v54, %v1668_v4 }
 0x2b7   : > { %7189 = vst [vmem:[#allocation47_spill] sm:$0xff] %v6261_v58  ;;  %2277 = vmatprep.mubr.f32.mxu1 %v6243_v48  ;;  %4437 = vmatprep.mubr.f32.mxu0 %v6261_v58  ;;  %7190 = vst [vmem:[#allocation48_spill] sm:$0xff] %v6269_v2 }
 0x2b8   : > { %4438 = vmatmul.mubr.msk.f32.gmra.mrb[60].mxu0 %vm407_vm0, %v6248_v20  ;;  %v3276_v20 = vld [vmem:[#allocation4 + $0x308] sm:$0xff] }
 0x2ba   : > { %2278 = vmatmul.mubr.f32.gmra.mrb[58].mxu1 %v6269_v2 }
 0x2be   : > { %v4359_v50 = vpop.f32.mrb[28].mxu0 }
 0x2bf   : > { %v1538_v8 = vadd.f32 %v4359_v50, %v5808_v3  ;;  %v1532_v52 = vpop.f32.mrb[29].mxu0 }
 0x2c0   : > { %v1533_v19 = vadd.f32 %v5808_v3, %v1532_v52 }
 0x2c1   : > { %v6274_v41 = vmax.f32 %v1538_v8, 0.0  ;;  %v3309_v8 = vld [vmem:[#allocation4 + $0x410] sm:$0xff] }
 0x2c2   : > { %v6276_v48 = vmax.f32 %v1533_v19, 0.0  ;;  %v3310_v19 = vld [vmem:[#allocation4 + $0x418] sm:$0xff] }
 0x2c3   : > { %7191 = vst [vmem:[#allocation49_spill] sm:$0xff] %v6274_v41  ;;  %v6279_v58 = vrot.slane %v6274_v41, 1  ;;  %v1671_v54 = vrot.slane %v6274_v41, 7 }
 0x2c4   : > { %7192 = vst [vmem:[#allocation50_spill] sm:$0xff] %v6276_v48  ;;  %2282 = vmatprep.mubr.f32.mxu1 %v6276_v48  ;;  %v6283_v4 = vrot.slane %v6276_v48, 7  ;;  %v1766_v2 = vrot.slane %v6276_v48, 1  ;;  %v3275_v48 = vld [vmem:[#allocation4 + $0x300] sm:$0xff] }
 0x2c5   : > { %7193 = vst [vmem:[#allocation51_spill] sm:$0xff] %v6279_v58 }
 0x2c6   : > { %7194 = vst [vmem:[#allocation52_spill] sm:$0xff] %v6283_v4  ;;  %v6287_v50 = vpop.f32.mrb[30].mxu0  ;;  %4015 = vmatmul.mubr.msk.f32.gmra.mrb[60].mxu1 %vm5819_vm8, %v6283_v4  ;;  %v6294_v3 = vsel %vm407_vm0, %v1766_v2, %v6279_v58  ;;  %v4823_v2 = vpack.c.bf16 %v3310_v19, %v3309_v8  ;;  %v3317_v8 = vld [vmem:[#allocation4 + $0x450] sm:$0xff]  ;;  %v3318_v19 = vld [vmem:[#allocation4 + $0x458] sm:$0xff] }
 0x2c7   : > { %7195 = vst [vmem:[#allocation53_spill] sm:$0xff] %v6287_v50  ;;  %7196 = vst [vmem:[#allocation54_spill] sm:$0xff] %v6294_v3  ;;  %v6296_v52 = vpop.f32.mrb[31].mxu0  ;;  %2287 = vmatprep.mubr.f32.mxu1 %v6274_v41  ;;  %4440 = vmatprep.mubr.f32.mxu0 %v6294_v3  ;;  %v6305_v50 = vsel %vm310_vm1, %v6283_v4, %v1671_v54  ;;  %v4772_v41 = vpack.c.bf16 %v3276_v20, %v3275_v48  ;;  %v3278_v54 = vld [vmem:[#allocation4 + $0x318] sm:$0xff]  ;;  %v7200_v20 = vmov 0.0|0.0  }
 0x2c8   : > { %7197 = vst [vmem:[#allocation55_spill] sm:$0xff] %v6296_v52  ;;  %4441 = vmatmul.mubr.msk.f32.gmra.mrb[62].mxu0 %vm407_vm0, %v6279_v58  ;;  %v3311_v58 = vld [vmem:[#allocation4 + $0x420] sm:$0xff] }
 0x2c9   : > { %2759 = vmatprep.mubr.f32.mxu0 %v5815_v40  ;;  %v3277_v40 = vld [vmem:[#allocation4 + $0x310] sm:$0xff] }
 0x2ca   : > { %2288 = vmatmul.mubr.f32.gmra.mrb[62].mxu1 %v6305_v50  ;;  %v4397_v52 = vpop.f32.mrb[32].mxu0  ;;  %v4775_v48 = vpack.c.bf16 %v3278_v54, %v3277_v40  ;;  %v3284_v40 = vld [vmem:[#allocation4 + $0x348] sm:$0xff]  ;;  %v4839_v54 = vpack.c.bf16 %v3318_v19, %v3317_v8 }
 0x2cb   : > { %4475 = vmatprep.mubr.f32.mxu1 %v5838_v51  ;;  %v6310_v3 = vadd.f32 %v4397_v52, %v6076_v26  ;;  %v2359_v42 = vpop.f32.mrb[33].mxu0  ;;  %v4827_v51 = vpack.c.bf16 %v3312_v55, %v3311_v58  ;;  %v3313_v26 = vld [vmem:[#allocation4 + $0x430] sm:$0xff]  ;;  %v3315_v55 = vld [vmem:[#allocation4 + $0x440] sm:$0xff] }
 0x2cc   : > { %4032 = vmatmul.mubr.msk.f32.vlgmr.msra.gmra.mrb[64].mxu0 %vm5819_vm8, %v5828_v25  ;;  %v6316_v4 = vadd.f32 %v2359_v42, %v6060_v29  ;;  %v3314_v25 = vld [vmem:[#allocation4 + $0x438] sm:$0xff]  ;;  %v3279_v42 = vld [vmem:[#allocation4 + $0x320] sm:$0xff]  ;;  %v3280_v29 = vld [vmem:[#allocation4 + $0x328] sm:$0xff] }
 0x2cd   : > { %7198 = vst [vmem:[#allocation56_spill] sm:$0xff] %v6310_v3  ;;  %2764 = vmatprep.mubr.f32.mxu0 %v5813_v10  ;;  %4822 = vmatpush3.bf16.msra.mxu0 %v6019_v9  ;;  %v4831_v10 = vpack.c.bf16 %v3314_v25, %v3313_v26  ;;  %v3316_v9 = vld [vmem:[#allocation4 + $0x448] sm:$0xff]  ;;  %v3285_v25 = vld [vmem:[#allocation4 + $0x350] sm:$0xff] }
 0x2ce   : > { %7199 = vst [vmem:[#allocation57_spill] sm:$0xff] %v6316_v4  ;;  %4476 = vmatmul.mubr.msk.f32.vlgmr.msra.gmra.mrb[64].mxu1 %vm407_vm0, %v5824_v28  ;;  %4824 = vmatprep.subr.bf16.mxu0 %v4823_v2  ;;  %v4778_v28 = vpack.c.bf16 %v3280_v29, %v3279_v42  ;;  %v4835_v58 = vpack.c.bf16 %v3316_v9, %v3315_v55  ;;  %v3320_v26 = vld [vmem:[#allocation4 + $0x468] sm:$0xff]  ;;  %v3286_v42 = vld [vmem:[#allocation4 + $0x358] sm:$0xff]  ;;  %v3321_v9 = vld [vmem:[#allocation4 + $0x470] sm:$0xff] }
 0x2cf   : > { %4773 = vmatpush1.bf16.msra.mxu1 %v4772_v41  ;;  %4478 = vmatprep.mubr.f32.mxu1 %v5866_v38  ;;  %v3282_v41 = vld [vmem:[#allocation4 + $0x338] sm:$0xff]  ;;  %v4787_v55 = vpack.c.bf16 %v3286_v42, %v3285_v25  ;;  %v7221_v4 = vld [vmem:[#allocation45_spill] sm:$0xff] }
 0x2d0   : > { %2765 = vmatmul.mubr.f32.gmra.mrb[66].mxu0 %v5852_v22  ;;  %4774 = vmatprep.subr.bf16.mxu1 %v7200_v20  ;;  %v3281_v22 = vld [vmem:[#allocation4 + $0x330] sm:$0xff]  ;;  %v3290_v25 = vld [vmem:[#allocation4 + $0x378] sm:$0xff] }
 0x2d1   : > { %2769 = vmatprep.mubr.f32.mxu0 %v5848_v46  ;;  %4826 = vmatpush3.bf16.msra.mxu0 %v4823_v2  ;;  %v4781_v52 = vpack.c.bf16 %v3282_v41, %v3281_v22  ;;  %v3283_v2 = vld [vmem:[#allocation4 + $0x340] sm:$0xff]  ;;  %v3322_v22 = vld [vmem:[#allocation4 + $0x478] sm:$0xff] }
 0x2d2   : > { %4479 = vmatmul.mubr.msk.f32.gmra.mrb[66].mxu1 %vm407_vm0, %v5856_v1  ;;  %4828 = vmatprep.subr.bf16.mxu0 %v4827_v51 }
 0x2d3   : > { %4776 = vmatpush1.bf16.msra.mxu1 %v4775_v48  ;;  %4481 = vmatprep.mubr.f32.mxu1 %v5898_v60  ;;  %v3319_v48 = vld [vmem:[#allocation4 + $0x460] sm:$0xff] }
 0x2d4   : > { %4034 = vmatmul.mubr.msk.f32.gmra.mrb[68].mxu0 %vm5819_vm8, %v5861_v31  ;;  %4777 = vmatprep.subr.bf16.mxu1 %v7200_v20 }
 0x2d5   : > { %2774 = vmatprep.mubr.f32.mxu0 %v5844_v44  ;;  %4830 = vmatpush3.bf16.msra.mxu0 %v4827_v51  ;;  %v4784_v51 = vpack.c.bf16 %v3284_v40, %v3283_v2  ;;  %v4847_v40 = vpack.c.bf16 %v3322_v22, %v3321_v9  ;;  %v3291_v22 = vld [vmem:[#allocation4 + $0x380] sm:$0xff] }
 0x2d6   : > { %4482 = vmatmul.mubr.msk.f32.gmra.mrb[68].mxu1 %vm407_vm0, %v5889_v21  ;;  %4832 = vmatprep.subr.bf16.mxu0 %v4831_v10 }
 0x2d7   : > { %4779 = vmatpush1.bf16.msra.mxu1 %v4778_v28  ;;  %4484 = vmatprep.mubr.f32.mxu1 %v5929_v57 }
 0x2d8   : > { %2775 = vmatmul.mubr.f32.gmra.mrb[70].mxu0 %v5885_v59  ;;  %4780 = vmatprep.subr.bf16.mxu1 %v7200_v20 }
 0x2d9   : > { %2779 = vmatprep.mubr.f32.mxu0 %v5881_v56  ;;  %4834 = vmatpush3.bf16.msra.mxu0 %v4831_v10  ;;  %v4843_v10 = vpack.c.bf16 %v3320_v26, %v3319_v48 }
 0x2da   : > { %4485 = vmatmul.mubr.msk.f32.gmra.mrb[70].mxu1 %vm407_vm0, %v5920_v0  ;;  %4836 = vmatprep.subr.bf16.mxu0 %v4835_v58 }
 0x2db   : > { %4782 = vmatpush1.bf16.msra.mxu1 %v4781_v52  ;;  %4487 = vmatprep.mubr.f32.mxu1 %v5968_v49  ;;  %v3287_v52 = vld [vmem:[#allocation4 + $0x360] sm:$0xff] }
 0x2dc   : > { %4036 = vmatmul.mubr.msk.f32.gmra.mrb[72].mxu0 %vm5819_vm8, %v5893_v12  ;;  %4783 = vmatprep.subr.bf16.mxu1 %v7200_v20 }
 0x2dd   : > { %2784 = vmatprep.mubr.f32.mxu0 %v5878_v23  ;;  %4838 = vmatpush3.bf16.msra.mxu0 %v4835_v58  ;;  %v3288_v58 = vld [vmem:[#allocation4 + $0x368] sm:$0xff] }
 0x2de   : > { %v2144_v29 = vpop.f32.mrb[4].mxu1  ;;  %4488 = vmatmul.mubr.msk.f32.gmra.mrb[72].mxu1 %vm407_vm0, %v5955_v39  ;;  %4840 = vmatprep.subr.bf16.mxu0 %v4839_v54  ;;  %v4790_v26 = vpack.c.bf16 %v3288_v58, %v3287_v52 }
 0x2df   : > { %v2146_v28 = vpop.f32.mrb[5].mxu1  ;;  %4785 = vmatpush1.bf16.msra.mxu1 %v4784_v51  ;;  %4490 = vmatprep.mubr.f32.mxu1 %v6004_v34 }
 0x2e0   : > { %v4400_v41 = vpop.f32.mrb[34].mxu0  ;;  %2785 = vmatmul.mubr.f32.gmra.mrb[74].mxu0 %v5916_v5  ;;  %4786 = vmatprep.subr.bf16.mxu1 %v7200_v20 }
 0x2e1   : > { %v2369_v8 = vpop.f32.mrb[35].mxu0  ;;  %2789 = vmatprep.mubr.f32.mxu0 %v5912_v45  ;;  %4842 = vmatpush3.bf16.msra.mxu0 %v4839_v54  ;;  %v3289_v54 = vld [vmem:[#allocation4 + $0x370] sm:$0xff] }
 0x2e2   : > { %v6354_v19 = vadd.f32 %v2369_v8, %v2144_v29  ;;  %v2149_v2 = vpop.f32.mrb[6].mxu1  ;;  %4491 = vmatmul.mubr.msk.f32.gmra.mrb[74].mxu1 %vm407_vm0, %v5990_v14  ;;  %4844 = vmatprep.subr.bf16.mxu0 %v4843_v10 }
 0x2e3   : > { %v6358_v51 = vadd.f32 %v4400_v41, %v2149_v2  ;;  %v2151_v48 = vpop.f32.mrb[7].mxu1  ;;  %4788 = vmatpush1.bf16.msra.mxu1 %v4787_v55  ;;  %4493 = vmatprep.mubr.f32.mxu1 %v6040_v36  ;;  %v4793_v55 = vpack.c.bf16 %v3290_v25, %v3289_v54  ;;  %v3292_v41 = vld [vmem:[#allocation4 + $0x388] sm:$0xff] }
 0x2e4   : > { %7201 = vst [vmem:[#allocation58_spill] sm:$0xff] %v6354_v19  ;;  %4038 = vmatmul.mubr.msk.f32.gmra.mrb[76].mxu0 %vm5819_vm8, %v5924_v61  ;;  %4789 = vmatprep.subr.bf16.mxu1 %v7200_v20  ;;  %v4796_v2 = vpack.c.bf16 %v3292_v41, %v3291_v22  ;;  %v3293_v48 = vld [vmem:[#allocation4 + $0x390] sm:$0xff]  ;;  %v3302_v19 = vld [vmem:[#allocation4 + $0x3d8] sm:$0xff] }
 0x2e5   : > { %7202 = vst [vmem:[#allocation59_spill] sm:$0xff] %v6358_v51  ;;  %2794 = vmatprep.mubr.f32.mxu0 %v5910_v15  ;;  %4846 = vmatpush3.bf16.msra.mxu0 %v4843_v10 }
 0x2e6   : > { %v2154_v42 = vpop.f32.mrb[8].mxu1  ;;  %4494 = vmatmul.mubr.msk.f32.gmra.mrb[76].mxu1 %vm407_vm0, %v6027_v18  ;;  %4848 = vmatprep.subr.bf16.mxu0 %v4847_v40 }
 0x2e7   : > { %v2156_v29 = vpop.f32.mrb[9].mxu1  ;;  %4791 = vmatpush1.bf16.msra.mxu1 %v4790_v26  ;;  %v4403_v28 = vpop.f32.mrb[36].mxu0  ;;  %4496 = vmatprep.mubr.f32.mxu1 %v6074_v16  ;;  %v3294_v26 = vld [vmem:[#allocation4 + $0x398] sm:$0xff] }
 0x2e8   : > { %v2379_v9 = vpop.f32.mrb[37].mxu0  ;;  %2795 = vmatmul.mubr.f32.gmra.mrb[78].mxu0 %v5942_v37  ;;  %4792 = vmatprep.subr.bf16.mxu1 %v7200_v20 }
 0x2e9   : > { %v6371_v52 = vadd.f32 %v2379_v9, %v2154_v42  ;;  %2799 = vmatprep.mubr.f32.mxu0 %v5951_v43  ;;  %4850 = vmatpush3.bf16.msra.mxu0 %v4847_v40  ;;  %v4799_v42 = vpack.c.bf16 %v3294_v26, %v3293_v48  ;;  %v3298_v48 = vld [vmem:[#allocation4 + $0x3b8] sm:$0xff] }
 0x2ea   : > { %v2159_v10 = vpop.f32.mrb[10].mxu1  ;;  %4497 = vmatmul.mubr.msk.f32.gmra.mrb[78].mxu1 %vm407_vm0, %v6058_v53 }
 0x2eb   : > { %7203 = vst [vmem:[#allocation60_spill] sm:$0xff] %v6371_v52  ;;  %v6376_v58 = vadd.f32 %v4403_v28, %v2159_v10  ;;  %v2161_v8 = vpop.f32.mrb[11].mxu1  ;;  %4794 = vmatpush1.bf16.msra.mxu1 %v4793_v55  ;;  %4499 = vmatprep.mubr.f32.mxu1 %v6102_v63  ;;  %v3295_v28 = vld [vmem:[#allocation4 + $0x3a0] sm:$0xff]  ;;  %v3296_v55 = vld [vmem:[#allocation4 + $0x3a8] sm:$0xff] }
 0x2ec   : > { %4040 = vmatmul.mubr.msk.f32.gmra.mrb[80].mxu0 %vm5819_vm8, %v5959_v32  ;;  %4795 = vmatprep.subr.bf16.mxu1 %v7200_v20  ;;  %v4802_v8 = vpack.c.bf16 %v3296_v55, %v3295_v28  ;;  %v3299_v28 = vld [vmem:[#allocation4 + $0x3c0] sm:$0xff]  ;;  %v3300_v55 = vld [vmem:[#allocation4 + $0x3c8] sm:$0xff] }
 0x2ed   : > { %7204 = vst [vmem:[#allocation61_spill] sm:$0xff] %v6376_v58  ;;  %2804 = vmatprep.mubr.f32.mxu0 %v5949_v24 }
 0x2ee   : > { %v2164_v40 = vpop.f32.mrb[12].mxu1  ;;  %4500 = vmatmul.mubr.msk.f32.gmra.mrb[80].mxu1 %vm407_vm0, %v6093_v6 }
 0x2ef   : > { %v2166_v54 = vpop.f32.mrb[13].mxu1  ;;  %4797 = vmatpush1.bf16.msra.mxu1 %v4796_v2  ;;  %v4406_v25 = vpop.f32.mrb[38].mxu0  ;;  %4502 = vmatprep.mubr.f32.mxu1 %v6133_v27  ;;  %v3297_v2 = vld [vmem:[#allocation4 + $0x3b0] sm:$0xff] }
 0x2f0   : > { %v2389_v29 = vpop.f32.mrb[39].mxu0  ;;  %2805 = vmatmul.mubr.f32.gmra.mrb[82].mxu0 %v5977_v33  ;;  %4798 = vmatprep.subr.bf16.mxu1 %v7200_v20 }
 0x2f1   : > { %v6389_v9 = vadd.f32 %v2389_v29, %v2164_v40  ;;  %2809 = vmatprep.mubr.f32.mxu0 %v5986_v47  ;;  %v7207_v29 = vld [vmem:[#allocation7_spill] sm:$0xff] }
 0x2f2   : > { %v2169_v22 = vpop.f32.mrb[14].mxu1  ;;  %4503 = vmatmul.mubr.msk.f32.gmra.mrb[82].mxu1 %vm407_vm0, %v6124_v62 }
 0x2f3   : > { %7205 = vst [vmem:[#allocation62_spill] sm:$0xff] %v6389_v9  ;;  %v6394_v41 = vadd.f32 %v4406_v25, %v2169_v22  ;;  %v2171_v10 = vpop.f32.mrb[15].mxu1  ;;  %4800 = vmatpush1.bf16.msra.mxu1 %v4799_v42  ;;  %4505 = vmatprep.mubr.f32.mxu1 %v6164_v17  ;;  %v4805_v25 = vpack.c.bf16 %v3298_v48, %v3297_v2  ;;  %v7211_v9 = vld [vmem:[#allocation55_spill] sm:$0xff]  ;;  %v7212_v48 = vld [vmem:[#allocation33_spill] sm:$0xff]  ;;  %v7227_v17 = vld [vmem:[#allocation16_spill] sm:$0xff] }
 0x2f4   : > { %4042 = vmatmul.mubr.msk.f32.gmra.mrb[84].mxu0 %vm5819_vm8, %v5995_v13  ;;  %4801 = vmatprep.subr.bf16.mxu1 %v7200_v20  ;;  %v7209_v10 = vld [vmem:[#allocation9_spill] sm:$0xff] }
 0x2f5   : > { %7206 = vst [vmem:[#allocation63_spill] sm:$0xff] %v6394_v41  ;;  %2814 = vmatprep.mubr.f32.mxu0 %v5984_v30 }
 0x2f6   : > { %v2174_v26 = vpop.f32.mrb[16].mxu1  ;;  %4506 = vmatmul.mubr.msk.f32.gmra.mrb[84].mxu1 %vm407_vm0, %v6155_v11 }
 0x2f7   : > { %v2176_v40 = vpop.f32.mrb[17].mxu1  ;;  %4803 = vmatpush1.bf16.msra.mxu1 %v4802_v8  ;;  %v4409_v54 = vpop.f32.mrb[40].mxu0  ;;  %4508 = vmatprep.mubr.f32.mxu1 %v6195_v7  ;;  %v7210_v8 = vld [vmem:[#allocation53_spill] sm:$0xff] }
 0x2f8   : > { %v2399_v42 = vpop.f32.mrb[41].mxu0  ;;  %2815 = vmatmul.mubr.f32.gmra.mrb[86].mxu0 %v7207_v29  ;;  %4804 = vmatprep.subr.bf16.mxu1 %v7200_v20  ;;  %v4878_v40 = vld [vmem:[%s7042_s2] ss:$0 sm:$0xff]  ;;  %v7226_v7 = vld [vmem:[#allocation17_spill] sm:$0xff] }
 0x2f9   : > { %v6407_v22 = vadd.f32 %v2399_v42, %v2174_v26  ;;  %2819 = vmatprep.mubr.f32.mxu0 %v7209_v10  ;;  %v1548_v41 = vadd.f32 %v4878_v40, %v7210_v8  ;;  %v1543_v58 = vadd.f32 %v4878_v40, %v7211_v9  ;;  %v7214_v26 = vld [vmem:[#allocation41_spill] sm:$0xff]  ;;  %v4808_v42 = vpack.c.bf16 %v3300_v55, %v3299_v28  ;;  %v7216_v9 = vld [vmem:[#allocation8_spill] sm:$0xff]  ;;  %v3303_v55 = vld [vmem:[#allocation4 + $0x3e0] sm:$0xff] }
 0x2fa   : > { %v2179_v2 = vpop.f32.mrb[18].mxu1  ;;  %4509 = vmatmul.mubr.msk.f32.gmra.mrb[86].mxu1 %vm407_vm0, %v7212_v48  ;;  %v3301_v8 = vld [vmem:[#allocation4 + $0x3d0] sm:$0xff]  ;;  %v7219_v28 = vld [vmem:[#allocation12_spill] sm:$0xff]  ;;  %v7225_v48 = vld [vmem:[#allocation51_spill] sm:$0xff] }
 0x2fb   : > { %7208 = vst [vmem:[#allocation7_spill] sm:$0xff] %v6407_v22  ;;  %v6417_v52 = vadd.f32 %v4409_v54, %v2179_v2  ;;  %v2181_v51 = vpop.f32.mrb[19].mxu1  ;;  %4806 = vmatpush1.bf16.msra.mxu1 %v4805_v25  ;;  %4511 = vmatprep.mubr.f32.mxu1 %v7214_v26  ;;  %v7215_v22 = vld [vmem:[#allocation10_spill] sm:$0xff]  ;;  %v6425_v40 = vmax.f32 %v1548_v41, 0.0  ;;  %v6427_v3 = vmax.f32 %v1543_v58, 0.0  ;;  %v7217_v54 = vld [vmem:[#allocation39_spill] sm:$0xff]  ;;  %v4811_v25 = vpack.c.bf16 %v3302_v19, %v3301_v8 }
 0x2fc   : > { %4044 = vmatmul.mubr.msk.f32.gmra.mrb[88].mxu0 %vm5819_vm8, %v7215_v22  ;;  %4807 = vmatprep.subr.bf16.mxu1 %v7200_v20  ;;  %v7218_v51 = vld [vmem:[#allocation47_spill] sm:$0xff]  ;;  %v3304_v2 = vld [vmem:[#allocation4 + $0x3e8] sm:$0xff]  ;;  %v7223_v8 = vld [vmem:[#allocation14_spill] sm:$0xff] }
 0x2fd   : > { %7213 = vst [vmem:[#allocation9_spill] sm:$0xff] %v6417_v52  ;;  %2824 = vmatprep.mubr.f32.mxu0 %v7216_v9  ;;  %v7220_v52 = vld [vmem:[#allocation13_spill] sm:$0xff]  ;;  %v1769_v58 = vrot.slane %v6427_v3, 1  ;;  %v6439_v41 = vrot.slane %v6425_v40, 1  ;;  %v4814_v19 = vpack.c.bf16 %v3304_v2, %v3303_v55  ;;  %v7224_v26 = vld [vmem:[#allocation11_spill] sm:$0xff] }
 0x2fe   : > { %4512 = vmatmul.mubr.msk.f32.gmra.mrb[88].mxu1 %vm407_vm0, %v7217_v54  ;;  %v3306_v54 = vld [vmem:[#allocation4 + $0x3f8] sm:$0xff] }
 0x2ff   : > { %4809 = vmatpush1.bf16.msra.mxu1 %v4808_v42  ;;  %4514 = vmatprep.mubr.f32.mxu1 %v7218_v51  ;;  %v7222_v42 = vld [vmem:[#allocation54_spill] sm:$0xff]  ;;  %v3305_v51 = vld [vmem:[#allocation4 + $0x3f0] sm:$0xff] }
 0x300   : > { %2825 = vmatmul.mubr.f32.gmra.mrb[90].mxu0 %v7219_v28  ;;  %4810 = vmatprep.subr.bf16.mxu1 %v7200_v20  ;;  %v4817_v55 = vpack.c.bf16 %v3306_v54, %v3305_v51  ;;  %v7229_v54 = vld [vmem:[#allocation18_spill] sm:$0xff] }
 0x301   : > { %2829 = vmatprep.mubr.f32.mxu0 %v7220_v52 }
 0x302   : > { %4515 = vmatmul.mubr.msk.f32.gmra.mrb[90].mxu1 %vm407_vm0, %v7221_v4 }
 0x303   : > { %4812 = vmatpush1.bf16.msra.mxu1 %v4811_v25  ;;  %4517 = vmatprep.mubr.f32.mxu1 %v7222_v42  ;;  %v6451_v25 = vsel %vm407_vm0, %v1769_v58, %v6439_v41 }
 0x304   : > { %4046 = vmatmul.mubr.msk.f32.gmra.mrb[92].mxu0 %vm5819_vm8, %v7223_v8  ;;  %4813 = vmatprep.subr.bf16.mxu1 %v7200_v20 }
 0x305   : > { %2834 = vmatprep.mubr.f32.mxu0 %v7224_v26 }
 0x306   : > { %v2184_v4 = vpop.f32.mrb[20].mxu1  ;;  %4518 = vmatmul.mubr.msk.f32.gmra.mrb[92].mxu1 %vm407_vm0, %v7225_v48 }
 0x307   : > { %v2186_v42 = vpop.f32.mrb[21].mxu1  ;;  %4815 = vmatpush1.bf16.msra.mxu1 %v4814_v19  ;;  %4520 = vmatprep.mubr.f32.mxu1 %v6451_v25  ;;  %v7235_v19 = vld [vmem:[#allocation26_spill] sm:$0xff] }
 0x308   : > { %v4412_v2 = vpop.f32.mrb[42].mxu0  ;;  %2835 = vmatmul.mubr.f32.gmra.mrb[94].mxu0 %v7226_v7  ;;  %4816 = vmatprep.subr.bf16.mxu1 %v7200_v20  ;;  %v7230_v20 = vld [vmem:[#allocation15_spill] sm:$0xff] }
 0x309   : > { %v2409_v11 = vpop.f32.mrb[43].mxu0  ;;  %2839 = vmatprep.mubr.f32.mxu0 %v7227_v17 }
 0x30a   : > { %v6457_v62 = vadd.f32 %v2409_v11, %v2184_v4  ;;  %v2189_v48 = vpop.f32.mrb[22].mxu1  ;;  %4521 = vmatmul.mubr.msk.f32.gmra.mrb[94].mxu1 %vm407_vm0, %v6439_v41  ;;  %v7231_v11 = vld [vmem:[#allocation21_spill] sm:$0xff]  ;;  %v7232_v4 = vld [vmem:[#allocation20_spill] sm:$0xff] }
 0x30b   : > { %v6461_v58 = vadd.f32 %v4412_v2, %v2189_v48  ;;  %v2191_v42 = vpop.f32.mrb[23].mxu1  ;;  %4818 = vmatpush1.bf16.msra.mxu1 %v4817_v55  ;;  %3387 = vmatprep.mubr.f32.mxu1 %v5848_v46  ;;  %v7233_v46 = vld [vmem:[#allocation23_spill] sm:$0xff]  ;;  %v7236_v55 = vld [vmem:[#allocation25_spill] sm:$0xff] }
 0x30c   : > { %4048 = vmatmul.mubr.msk.f32.gmra.mrb[96].mxu0 %vm5819_vm8, %v7229_v54  ;;  %v7234_v48 = vld [vmem:[#allocation19_spill] sm:$0xff] }
 0x30d   : > { %7228 = vst [vmem:[#allocation53_spill] sm:$0xff] %v6461_v58  ;;  %2844 = vmatprep.mubr.f32.mxu0 %v7230_v20 }
 0x30e   : > { %4080 = vmatmul.mubr.msk.f32.vlgmr.msra.gmra.mrb[96].mxu1 %vm5819_vm8, %v5861_v31 }
 0x30f   : > { %3392 = vmatprep.mubr.f32.mxu1 %v5844_v44 }
 0x310   : > { %2845 = vmatmul.mubr.f32.gmra.mrb[98].mxu0 %v7231_v11 }
 0x311   : > { %2849 = vmatprep.mubr.f32.mxu0 %v7232_v4 }
 0x312   : > { %3393 = vmatmul.mubr.f32.gmra.mrb[98].mxu1 %v5885_v59 }
 0x313   : > { %3397 = vmatprep.mubr.f32.mxu1 %v5881_v56 }
 0x314   : > { %4050 = vmatmul.mubr.msk.f32.gmra.mrb[100].mxu0 %vm5819_vm8, %v7233_v46 }
 0x315   : > { %2854 = vmatprep.mubr.f32.mxu0 %v7234_v48 }
 0x316   : > { %v2194_v51 = vpop.f32.mrb[24].mxu1  ;;  %4082 = vmatmul.mubr.msk.f32.gmra.mrb[100].mxu1 %vm5819_vm8, %v5893_v12  ;;  %v7239_v12 = vld [vmem:[#allocation28_spill] sm:$0xff] }
 0x317   : > { %v2196_v44 = vpop.f32.mrb[25].mxu1  ;;  %3402 = vmatprep.mubr.f32.mxu1 %v5878_v23  ;;  %v7240_v23 = vld [vmem:[#allocation24_spill] sm:$0xff] }
 0x318   : > { %v4415_v31 = vpop.f32.mrb[44].mxu0  ;;  %2855 = vmatmul.mubr.f32.gmra.mrb[102].mxu0 %v7235_v19 }
 0x319   : > { %v2419_v59 = vpop.f32.mrb[45].mxu0  ;;  %2859 = vmatprep.mubr.f32.mxu0 %v7236_v55 }
 0x31a   : > { %v6486_v56 = vadd.f32 %v2419_v59, %v2194_v51  ;;  %v2199_v2 = vpop.f32.mrb[26].mxu1  ;;  %3403 = vmatmul.mubr.f32.gmra.mrb[102].mxu1 %v5916_v5  ;;  %v7241_v51 = vld [vmem:[#allocation32_spill] sm:$0xff]  ;;  %v7242_v5 = vld [vmem:[#allocation31_spill] sm:$0xff]  ;;  %v7246_v59 = vld [vmem:[#allocation38_spill] sm:$0xff] }
 0x31b   : > { %v6489_v42 = vadd.f32 %v4415_v31, %v2199_v2  ;;  %v2201_v58 = vpop.f32.mrb[27].mxu1  ;;  %3407 = vmatprep.mubr.f32.mxu1 %v5912_v45  ;;  %v7243_v45 = vld [vmem:[#allocation34_spill] sm:$0xff]  ;;  %v7245_v31 = vld [vmem:[#allocation36_spill] sm:$0xff] }
 0x31c   : > { %7237 = vst [vmem:[#allocation55_spill] sm:$0xff] %v6486_v56  ;;  %4052 = vmatmul.mubr.msk.f32.gmra.mrb[104].mxu0 %vm5819_vm8, %v7239_v12  ;;  %v7244_v58 = vld [vmem:[#allocation30_spill] sm:$0xff] }
 0x31d   : > { %7238 = vst [vmem:[#allocation10_spill] sm:$0xff] %v6489_v42  ;;  %2864 = vmatprep.mubr.f32.mxu0 %v7240_v23 }
 0x31e   : > { %4084 = vmatmul.mubr.msk.f32.gmra.mrb[104].mxu1 %vm5819_vm8, %v5924_v61 }
 0x31f   : > { %3412 = vmatprep.mubr.f32.mxu1 %v5910_v15 }
 0x320   : > { %2865 = vmatmul.mubr.f32.gmra.mrb[106].mxu0 %v7241_v51 }
 0x321   : > { %2869 = vmatprep.mubr.f32.mxu0 %v7242_v5 }
 0x322   : > { %3413 = vmatmul.mubr.f32.gmra.mrb[106].mxu1 %v5942_v37 }
 0x323   : > { %3417 = vmatprep.mubr.f32.mxu1 %v5951_v43 }
 0x324   : > { %4054 = vmatmul.mubr.msk.f32.gmra.mrb[108].mxu0 %vm5819_vm8, %v7243_v45 }
 0x325   : > { %2874 = vmatprep.mubr.f32.mxu0 %v7244_v58 }
 0x326   : > { %v2204_v44 = vpop.f32.mrb[28].mxu1  ;;  %4086 = vmatmul.mubr.msk.f32.gmra.mrb[108].mxu1 %vm5819_vm8, %v5959_v32  ;;  %v7249_v32 = vld [vmem:[#allocation40_spill] sm:$0xff] }
 0x327   : > { %v2206_v15 = vpop.f32.mrb[29].mxu1  ;;  %3422 = vmatprep.mubr.f32.mxu1 %v5949_v24  ;;  %v7250_v24 = vld [vmem:[#allocation37_spill] sm:$0xff] }
 0x328   : > { %v4418_v61 = vpop.f32.mrb[46].mxu0  ;;  %2875 = vmatmul.mubr.f32.gmra.mrb[110].mxu0 %v7245_v31 }
 0x329   : > { %v2429_v37 = vpop.f32.mrb[47].mxu0  ;;  %2879 = vmatprep.mubr.f32.mxu0 %v7246_v59 }
 0x32a   : > { %v6514_v43 = vadd.f32 %v2429_v37, %v2204_v44  ;;  %v2209_v2 = vpop.f32.mrb[30].mxu1  ;;  %3423 = vmatmul.mubr.f32.gmra.mrb[110].mxu1 %v5977_v33  ;;  %v7252_v37 = vld [vmem:[#allocation44_spill] sm:$0xff] }
 0x32b   : > { %v6517_v42 = vadd.f32 %v4418_v61, %v2209_v2  ;;  %v2211_v56 = vpop.f32.mrb[31].mxu1  ;;  %3427 = vmatprep.mubr.f32.mxu1 %v5986_v47  ;;  %v7251_v61 = vld [vmem:[#allocation42_spill] sm:$0xff] }
 0x32c   : > { %7247 = vst [vmem:[#allocation8_spill] sm:$0xff] %v6514_v43  ;;  %4056 = vmatmul.mubr.msk.f32.gmra.mrb[112].mxu0 %vm5819_vm8, %v7249_v32 }
 0x32d   : > { %7248 = vst [vmem:[#allocation12_spill] sm:$0xff] %v6517_v42  ;;  %2884 = vmatprep.mubr.f32.mxu0 %v7250_v24 }
 0x32e   : > { %v2214_v15 = vpop.f32.mrb[32].mxu1  ;;  %4088 = vmatmul.mubr.msk.f32.gmra.mrb[112].mxu1 %vm5819_vm8, %v5995_v13  ;;  %v7255_v13 = vld [vmem:[#allocation46_spill] sm:$0xff] }
 0x32f   : > { %v2216_v44 = vpop.f32.mrb[33].mxu1  ;;  %3432 = vmatprep.mubr.f32.mxu1 %v5984_v30  ;;  %v7256_v30 = vld [vmem:[#allocation43_spill] sm:$0xff] }
 0x330   : > { %v4421_v33 = vpop.f32.mrb[48].mxu0  ;;  %2885 = vmatmul.mubr.f32.gmra.mrb[114].mxu0 %v7251_v61 }
 0x331   : > { %v2439_v56 = vpop.f32.mrb[49].mxu0  ;;  %2889 = vmatprep.mubr.f32.mxu0 %v7252_v37 }
 0x332   : > { %v6530_v47 = vadd.f32 %v2439_v56, %v2214_v15  ;;  %v2219_v2 = vpop.f32.mrb[34].mxu1  ;;  %3433 = vmatmul.mubr.f32.gmra.mrb[114].mxu1 %v7207_v29 }
 0x333   : > { %v6533_v42 = vadd.f32 %v4421_v33, %v2219_v2  ;;  %v2221_v43 = vpop.f32.mrb[35].mxu1  ;;  %3437 = vmatprep.mubr.f32.mxu1 %v7209_v10  ;;  %v7257_v33 = vld [vmem:[#allocation48_spill] sm:$0xff]  ;;  %v7258_v10 = vld [vmem:[#allocation50_spill] sm:$0xff] }
 0x334   : > { %7253 = vst [vmem:[#allocation13_spill] sm:$0xff] %v6530_v47  ;;  %4058 = vmatmul.mubr.msk.f32.gmra.mrb[116].mxu0 %vm5819_vm8, %v7255_v13 }
 0x335   : > { %7254 = vst [vmem:[#allocation14_spill] sm:$0xff] %v6533_v42  ;;  %2894 = vmatprep.mubr.f32.mxu0 %v7256_v30 }
 0x336   : > { %v2224_v44 = vpop.f32.mrb[36].mxu1  ;;  %4090 = vmatmul.mubr.msk.f32.gmra.mrb[116].mxu1 %vm5819_vm8, %v7215_v22  ;;  %v7259_v22 = vld [vmem:[#allocation52_spill] sm:$0xff] }
 0x337   : > { %v2226_v15 = vpop.f32.mrb[37].mxu1  ;;  %v4424_v56 = vpop.f32.mrb[50].mxu0  ;;  %3442 = vmatprep.mubr.f32.mxu1 %v7216_v9  ;;  %v7260_v9 = vld [vmem:[#allocation49_spill] sm:$0xff] }
 0x338   : > { %v2449_v29 = vpop.f32.mrb[51].mxu0  ;;  %2895 = vmatmul.mubr.f32.gmra.mrb[118].mxu0 %v7257_v33 }
 0x339   : > { %v6545_v43 = vadd.f32 %v2449_v29, %v2224_v44  ;;  %2899 = vmatprep.mubr.f32.mxu0 %v7258_v10 }
 0x33a   : > { %v2229_v2 = vpop.f32.mrb[38].mxu1  ;;  %3443 = vmatmul.mubr.f32.gmra.mrb[118].mxu1 %v7219_v28 }
 0x33b   : > { %v6549_v42 = vadd.f32 %v4424_v56, %v2229_v2  ;;  %v2231_v47 = vpop.f32.mrb[39].mxu1  ;;  %3447 = vmatprep.mubr.f32.mxu1 %v7220_v52  ;;  %v6566_v56 = vrot.slane %v6427_v3, 7 }
 0x33c   : > { %4060 = vmatmul.mubr.msk.f32.gmra.mrb[120].mxu0 %vm5819_vm8, %v7259_v22 }
 0x33d   : > { %2904 = vmatprep.mubr.f32.mxu0 %v7260_v9 }
 0x33e   : > { %v2234_v15 = vpop.f32.mrb[40].mxu1  ;;  %4092 = vmatmul.mubr.msk.f32.gmra.mrb[120].mxu1 %vm5819_vm8, %v7223_v8 }
 0x33f   : > { %v2236_v44 = vpop.f32.mrb[41].mxu1  ;;  %v4427_v29 = vpop.f32.mrb[52].mxu0  ;;  %3452 = vmatprep.mubr.f32.mxu1 %v7224_v26  ;;  %v1674_v26 = vrot.slane %v6425_v40, 7 }
 0x340   : > { %v2459_v28 = vpop.f32.mrb[53].mxu0  ;;  %2905 = vmatmul.mubr.f32.gmra.mrb[122].mxu0 %v6305_v50 }
 0x341   : > { %v6561_v47 = vadd.f32 %v2459_v28, %v2234_v15  ;;  %2909 = vmatprep.mubr.f32.mxu0 %v6427_v3 }
 0x342   : > { %v2239_v52 = vpop.f32.mrb[42].mxu1  ;;  %3453 = vmatmul.mubr.f32.gmra.mrb[122].mxu1 %v7226_v7 }
 0x343   : > { %v6568_v2 = vadd.f32 %v4427_v29, %v2239_v52  ;;  %v2241_v8 = vpop.f32.mrb[43].mxu1  ;;  %3457 = vmatprep.mubr.f32.mxu1 %v7227_v17  ;;  %v6582_v17 = vsel %vm310_vm1, %v6566_v56, %v1674_v26 }
 0x344   : > { %4062 = vmatmul.mubr.msk.f32.gmra.mrb[124].mxu0 %vm5819_vm8, %v6566_v56 }
 0x345   : > { %2914 = vmatprep.mubr.f32.mxu0 %v6425_v40 }
 0x346   : > { %v2244_v15 = vpop.f32.mrb[44].mxu1  ;;  %4094 = vmatmul.mubr.msk.f32.gmra.mrb[124].mxu1 %vm5819_vm8, %v7229_v54 }
 0x347   : > { %v2246_v7 = vpop.f32.mrb[45].mxu1  ;;  %v4430_v44 = vpop.f32.mrb[54].mxu0  ;;  %3462 = vmatprep.mubr.f32.mxu1 %v7230_v20 }
 0x348   : > { %v2469_v29 = vpop.f32.mrb[55].mxu0  ;;  %2915 = vmatmul.mubr.f32.gmra.mrb[126].mxu0 %v6582_v17 }
 0x349   : > { %v6585_v28 = vadd.f32 %v2469_v29, %v2244_v15  ;;  %4555 = vmatprep.mubr.f32.mxu0 %v5866_v38 }
 0x34a   : > { %v2249_v52 = vpop.f32.mrb[46].mxu1  ;;  %3463 = vmatmul.mubr.f32.gmra.mrb[126].mxu1 %v7231_v11 }
 0x34b   : > { %v6589_v8 = vadd.f32 %v4430_v44, %v2249_v52  ;;  %v2251_v54 = vpop.f32.mrb[47].mxu1  ;;  %3467 = vmatprep.mubr.f32.mxu1 %v7232_v4 }
 0x34c   : > { %4556 = vmatmul.mubr.msk.f32.vlgmr.msra.gmra.mrb[128].mxu0 %vm407_vm0, %v5856_v1 }
 0x34d   : > { %4558 = vmatprep.mubr.f32.mxu0 %v5898_v60 }
 0x34e   : > { %v2254_v20 = vpop.f32.mrb[48].mxu1  ;;  %4096 = vmatmul.mubr.msk.f32.gmra.mrb[128].mxu1 %vm5819_vm8, %v7233_v46 }
 0x34f   : > { %v2256_v26 = vpop.f32.mrb[49].mxu1  ;;  %v4433_v38 = vpop.f32.mrb[56].mxu0  ;;  %3472 = vmatprep.mubr.f32.mxu1 %v7234_v48  ;;  %v7270_v48 = vld [vmem:[#allocation54_spill] sm:$0xff] }
 0x350   : > { %v2479_v11 = vpop.f32.mrb[57].mxu0  ;;  %4559 = vmatmul.mubr.msk.f32.gmra.mrb[130].mxu0 %vm407_vm0, %v5889_v21  ;;  %v7261_v21 = vld [vmem:[#allocation22_spill] sm:$0xff] }
 0x351   : > { %v6601_v15 = vadd.f32 %v2479_v11, %v2254_v20  ;;  %4561 = vmatprep.mubr.f32.mxu0 %v5929_v57  ;;  %v7263_v57 = vld [vmem:[#allocation27_spill] sm:$0xff] }
 0x352   : > { %v2259_v1 = vpop.f32.mrb[50].mxu1  ;;  %3473 = vmatmul.mubr.f32.gmra.mrb[130].mxu1 %v7235_v19 }
 0x353   : > { %v6605_v60 = vadd.f32 %v4433_v38, %v2259_v1  ;;  %v2261_v4 = vpop.f32.mrb[51].mxu1  ;;  %3477 = vmatprep.mubr.f32.mxu1 %v7236_v55 }
 0x354   : > { %4562 = vmatmul.mubr.msk.f32.gmra.mrb[132].mxu0 %vm407_vm0, %v5920_v0  ;;  %v7262_v0 = vld [vmem:[#allocation29_spill] sm:$0xff]  ;;  %v7275_v4 = vld [vmem:[#allocation58_spill] sm:$0xff] }
 0x355   : > { %4564 = vmatprep.mubr.f32.mxu0 %v5968_v49  ;;  %v7265_v49 = vld [vmem:[#allocation33_spill] sm:$0xff] }
 0x356   : > { %4098 = vmatmul.mubr.msk.f32.gmra.mrb[132].mxu1 %vm5819_vm8, %v7239_v12 }
 0x357   : > { %3482 = vmatprep.mubr.f32.mxu1 %v7240_v23 }
 0x358   : > { %4565 = vmatmul.mubr.msk.f32.gmra.mrb[134].mxu0 %vm407_vm0, %v5955_v39  ;;  %v7264_v39 = vld [vmem:[#allocation35_spill] sm:$0xff] }
 0x359   : > { %4567 = vmatprep.mubr.f32.mxu0 %v6004_v34  ;;  %v7267_v34 = vld [vmem:[#allocation39_spill] sm:$0xff] }
 0x35a   : > { %3483 = vmatmul.mubr.f32.gmra.mrb[134].mxu1 %v7241_v51 }
 0x35b   : > { %3487 = vmatprep.mubr.f32.mxu1 %v7242_v5 }
 0x35c   : > { %4568 = vmatmul.mubr.msk.f32.gmra.mrb[136].mxu0 %vm407_vm0, %v5990_v14  ;;  %v7266_v14 = vld [vmem:[#allocation41_spill] sm:$0xff] }
 0x35d   : > { %4570 = vmatprep.mubr.f32.mxu0 %v6040_v36  ;;  %v7268_v36 = vld [vmem:[#allocation47_spill] sm:$0xff] }
 0x35e   : > { %4100 = vmatmul.mubr.msk.f32.gmra.mrb[136].mxu1 %vm5819_vm8, %v7243_v45 }
 0x35f   : > { %3492 = vmatprep.mubr.f32.mxu1 %v7244_v58 }
 0x360   : > { %4571 = vmatmul.mubr.msk.f32.gmra.mrb[138].mxu0 %vm407_vm0, %v6027_v18 }
 0x361   : > { %4573 = vmatprep.mubr.f32.mxu0 %v6074_v16 }
 0x362   : > { %3493 = vmatmul.mubr.f32.gmra.mrb[138].mxu1 %v7245_v31 }
 0x363   : > { %3497 = vmatprep.mubr.f32.mxu1 %v7246_v59 }
 0x364   : > { %4574 = vmatmul.mubr.msk.f32.gmra.mrb[140].mxu0 %vm407_vm0, %v6058_v53 }
 0x365   : > { %4576 = vmatprep.mubr.f32.mxu0 %v6102_v63  ;;  %v7269_v63 = vld [vmem:[#allocation45_spill] sm:$0xff] }
 0x366   : > { %4102 = vmatmul.mubr.msk.f32.gmra.mrb[140].mxu1 %vm5819_vm8, %v7249_v32 }
 0x367   : > { %3502 = vmatprep.mubr.f32.mxu1 %v7250_v24 }
 0x368   : > { %4577 = vmatmul.mubr.msk.f32.gmra.mrb[142].mxu0 %vm407_vm0, %v6093_v6 }
 0x369   : > { %4579 = vmatprep.mubr.f32.mxu0 %v6133_v27 }
 0x36a   : > { %3503 = vmatmul.mubr.f32.gmra.mrb[142].mxu1 %v7251_v61 }
 0x36b   : > { %3507 = vmatprep.mubr.f32.mxu1 %v7252_v37 }
 0x36c   : > { %4580 = vmatmul.mubr.msk.f32.gmra.mrb[144].mxu0 %vm407_vm0, %v7261_v21 }
 0x36d   : > { %4582 = vmatprep.mubr.f32.mxu0 %v7262_v0 }
 0x36e   : > { %4104 = vmatmul.mubr.msk.f32.gmra.mrb[144].mxu1 %vm5819_vm8, %v7255_v13 }
 0x36f   : > { %3512 = vmatprep.mubr.f32.mxu1 %v7256_v30 }
 0x370   : > { %4583 = vmatmul.mubr.msk.f32.gmra.mrb[146].mxu0 %vm407_vm0, %v7263_v57 }
 0x371   : > { %4585 = vmatprep.mubr.f32.mxu0 %v7264_v39 }
 0x372   : > { %3513 = vmatmul.mubr.f32.gmra.mrb[146].mxu1 %v7257_v33 }
 0x373   : > { %3517 = vmatprep.mubr.f32.mxu1 %v7258_v10  ;;  %v6702_v10 = vld [vmem:[%s7044_s4] ss:$0 sm:$0xff] }
 0x374   : > { %4586 = vmatmul.mubr.msk.f32.gmra.mrb[148].mxu0 %vm407_vm0, %v7265_v49  ;;  %v2520_v21 = vadd.f32 %v6702_v10, %v7275_v4 }
 0x375   : > { %4588 = vmatprep.mubr.f32.mxu0 %v7266_v14 }
 0x376   : > { %4106 = vmatmul.mubr.msk.f32.gmra.mrb[148].mxu1 %vm5819_vm8, %v7259_v22 }
 0x377   : > { %3522 = vmatprep.mubr.f32.mxu1 %v7260_v9  ;;  %v7273_v9 = vld [vmem:[#allocation57_spill] sm:$0xff] }
 0x378   : > { %4589 = vmatmul.mubr.msk.f32.gmra.mrb[150].mxu0 %vm407_vm0, %v7267_v34 }
 0x379   : > { %v2264_v18 = vpop.f32.mrb[52].mxu1  ;;  %4591 = vmatprep.mubr.f32.mxu0 %v7268_v36 }
 0x37a   : > { %v2266_v53 = vpop.f32.mrb[53].mxu1  ;;  %3523 = vmatmul.mubr.f32.gmra.mrb[150].mxu1 %v6305_v50  ;;  %v7271_v50 = vld [vmem:[#allocation51_spill] sm:$0xff] }
 0x37b   : > { %v4436_v16 = vpop.f32.mrb[58].mxu0  ;;  %3527 = vmatprep.mubr.f32.mxu1 %v6427_v3  ;;  %v7272_v3 = vmov 0.0  }
 0x37c   : > { %v2489_v6 = vpop.f32.mrb[59].mxu0  ;;  %4592 = vmatmul.mubr.msk.f32.gmra.mrb[152].mxu0 %vm407_vm0, %v7269_v63 }
 0x37d   : > { %v6670_v27 = vadd.f32 %v2489_v6, %v2264_v18  ;;  %v2269_v46 = vpop.f32.mrb[54].mxu1  ;;  %4594 = vmatprep.mubr.f32.mxu0 %v7270_v48  ;;  %v7276_v18 = vld [vmem:[#allocation59_spill] sm:$0xff] }
 0x37e   : > { %v6673_v19 = vadd.f32 %v4436_v16, %v2269_v46  ;;  %v2271_v55 = vpop.f32.mrb[55].mxu1  ;;  %4108 = vmatmul.mubr.msk.f32.gmra.mrb[152].mxu1 %vm5819_vm8, %v6566_v56  ;;  %v2518_v56 = vadd.f32 %v6702_v10, %v7273_v9  ;;  %v2521_v36 = vadd.f32 %v6702_v10, %v7276_v18 }
 0x37f   : > { %3532 = vmatprep.mubr.f32.mxu1 %v6425_v40  ;;  %v7277_v55 = vld [vmem:[#allocation60_spill] sm:$0xff] }
 0x380   : > { %4595 = vmatmul.mubr.msk.f32.gmra.mrb[154].mxu0 %vm407_vm0, %v7271_v50  ;;  %v2522_v50 = vadd.f32 %v6702_v10, %v7277_v55 }
 0x381   : > { %4597 = vmatprep.mubr.f32.mxu0 %v6451_v25 }
 0x382   : > { %3533 = vmatmul.mubr.f32.gmra.mrb[154].mxu1 %v6582_v17  ;;  %v7274_v17 = vld [vmem:[#allocation56_spill] sm:$0xff] }
 0x383   : > { %3537 = vmatprep.mubr.f32.mxu1 %v7272_v3  ;;  %v2519_v29 = vadd.f32 %v6702_v10, %v7274_v17 }
 0x384   : > { %4598 = vmatmul.mubr.msk.f32.gmra.mrb[156].mxu0 %vm407_vm0, %v6439_v41 }
 0x385   : > { %4600 = vmatprep.mubr.f32.mxu0 %v7272_v3 }
 0x386   : > { %3538 = vmatmul.mubr.f32.gmra.mrb[156].mxu1 %v7272_v3 }
 0x387   : > { %3542 = vmatprep.mubr.f32.mxu1 %v7272_v3 }
 0x388   : > { %4601 = vmatmul.mubr.f32.gmra.mrb[158].mxu0 %v7272_v3 }
 0x389   : > { %v2274_v35 = vpop.f32.mrb[56].mxu1 }
 0x38a   : > { %v2276_v40 = vpop.f32.mrb[57].mxu1  ;;  %3543 = vmatmul.mubr.f32.gmra.mrb[158].mxu1 %v7272_v3 }
 0x38b   : > { %v4439_v25 = vpop.f32.mrb[60].mxu0 }
 0x38c   : > { %v2499_v12 = vpop.f32.mrb[61].mxu0 }
 0x38d   : > { %v6691_v23 = vadd.f32 %v2499_v12, %v2274_v35  ;;  %v2279_v51 = vpop.f32.mrb[58].mxu1 }
 0x38e   : > { %v6693_v5 = vadd.f32 %v4439_v25, %v2279_v51  ;;  %v2281_v41 = vpop.f32.mrb[59].mxu1 }
 0x38f   : > { %v7278_v41 = vld [vmem:[#allocation61_spill] sm:$0xff] }
 0x399   : > { %v2284_v45 = vpop.f32.mrb[60].mxu1 }
 0x39a   : > { %v2286_v58 = vpop.f32.mrb[61].mxu1 }
 0x39b   : > { %v4442_v31 = vpop.f32.mrb[62].mxu0 }
 0x39c   : > { %v2509_v59 = vpop.f32.mrb[63].mxu0 }
 0x39d   : > { %v6695_v32 = vadd.f32 %v2509_v59, %v2284_v45  ;;  %v2289_v24 = vpop.f32.mrb[62].mxu1  ;;  %v2523_v45 = vadd.f32 %v6702_v10, %v7278_v41 }
 0x39e   : > { %v6697_v61 = vadd.f32 %v4442_v31, %v2289_v24  ;;  %v2291_v37 = vpop.f32.mrb[63].mxu1 }
 0x39f   : > { %v2761_v13 = vpop.f32.mrb[64].mxu0 }
 0x3a0   : > { %v2763_v30 = vpop.f32.mrb[65].mxu0 }
 0x3a1   : > { %v4477_v33 = vpop.f32.mrb[64].mxu1  ;;  %v7279_v30 = vld [vmem:[#allocation62_spill] sm:$0xff] }
 0x3a2   : > { %v2986_v22 = vpop.f32.mrb[65].mxu1 }
 0x3a3   : > { %v2987_v7 = vadd.f32 %v2986_v22, %v2761_v13  ;;  %v2766_v44 = vpop.f32.mrb[66].mxu0 }
 0x3a4   : > { %v2992_v52 = vadd.f32 %v4477_v33, %v2766_v44  ;;  %v2768_v54 = vpop.f32.mrb[67].mxu0  ;;  %v2524_v33 = vadd.f32 %v6702_v10, %v7279_v30 }
 0x3a5   : > { %v6708_v20 = vadd.f32 %v2987_v7, %v2518_v56  ;;  %v4480_v26 = vpop.f32.mrb[66].mxu1 }
 0x3a6   : > { %v6710_v38 = vadd.f32 %v2992_v52, %v2519_v29  ;;  %v2996_v11 = vpop.f32.mrb[67].mxu1  ;;  %v7280_v29 = vld [vmem:[#allocation63_spill] sm:$0xff] }
 0x3a7   : > { %v2771_v1 = vpop.f32.mrb[68].mxu0  ;;  %v2525_v52 = vadd.f32 %v6702_v10, %v7280_v29 }
 0x3a8   : > { %v2997_v0 = vadd.f32 %v2996_v11, %v2771_v1  ;;  %v2773_v57 = vpop.f32.mrb[69].mxu0 }
 0x3a9   : > { %v4483_v39 = vpop.f32.mrb[68].mxu1 }
 0x3aa   : > { %v6714_v49 = vadd.f32 %v2997_v0, %v2520_v21  ;;  %v3006_v14 = vpop.f32.mrb[69].mxu1  ;;  %v7281_v0 = vld [vmem:[#allocation7_spill] sm:$0xff] }
 0x3ab   : > { %v2776_v34 = vpop.f32.mrb[70].mxu0  ;;  %v2526_v57 = vadd.f32 %v6702_v10, %v7281_v0 }
 0x3ac   : > { %v3002_v53 = vadd.f32 %v4480_v26, %v2776_v34  ;;  %v2778_v16 = vpop.f32.mrb[71].mxu0 }
 0x3ad   : > { %v4486_v6 = vpop.f32.mrb[70].mxu1  ;;  %v7282_v16 = vld [vmem:[#allocation9_spill] sm:$0xff] }
 0x3ae   : > { %v6718_v63 = vadd.f32 %v3002_v53, %v2521_v36  ;;  %v3016_v46 = vpop.f32.mrb[71].mxu1 }
 0x3af   : > { %v2781_v48 = vpop.f32.mrb[72].mxu0 }
 0x3b0   : > { %v3007_v3 = vadd.f32 %v3006_v14, %v2781_v48  ;;  %v2783_v35 = vpop.f32.mrb[73].mxu0 }
 0x3b1   : > { %v4489_v40 = vpop.f32.mrb[72].mxu1 }
 0x3b2   : > { %v6722_v25 = vadd.f32 %v3007_v3, %v2522_v50  ;;  %v3026_v12 = vpop.f32.mrb[73].mxu1 }
 0x3b3   : > { %v2786_v51 = vpop.f32.mrb[74].mxu0 }
 0x3b4   : > { %v3012_v58 = vadd.f32 %v4483_v39, %v2786_v51  ;;  %v2788_v31 = vpop.f32.mrb[75].mxu0 }
 0x3b5   : > { %v4492_v59 = vpop.f32.mrb[74].mxu1 }
 0x3b6   : > { %v6726_v24 = vadd.f32 %v3012_v58, %v2523_v45  ;;  %v3036_v37 = vpop.f32.mrb[75].mxu1 }
 0x3b7   : > { %v2791_v13 = vpop.f32.mrb[76].mxu0 }
 0x3b8   : > { %v3017_v22 = vadd.f32 %v3016_v46, %v2791_v13  ;;  %v2793_v9 = vpop.f32.mrb[77].mxu0  ;;  %v2527_v46 = vadd.f32 %v6702_v10, %v7282_v16 }
 0x3b9   : > { %v4495_v56 = vpop.f32.mrb[76].mxu1 }
 0x3ba   : > { %v6730_v7 = vadd.f32 %v3017_v22, %v2524_v33  ;;  %v3046_v44 = vpop.f32.mrb[77].mxu1 }
 0x3bb   : > { %v2796_v17 = vpop.f32.mrb[78].mxu0 }
 0x3bc   : > { %v3022_v54 = vadd.f32 %v4486_v6, %v2796_v17  ;;  %v2798_v26 = vpop.f32.mrb[79].mxu0 }
 0x3bd   : > { %v4498_v11 = vpop.f32.mrb[78].mxu1 }
 0x3be   : > { %v6734_v1 = vadd.f32 %v3022_v54, %v2525_v52  ;;  %v3056_v4 = vpop.f32.mrb[79].mxu1 }
 0x3bf   : > { %v2801_v21 = vpop.f32.mrb[80].mxu0 }
 0x3c0   : > { %v3027_v39 = vadd.f32 %v3026_v12, %v2801_v21  ;;  %v2803_v14 = vpop.f32.mrb[81].mxu0  ;;  %v2528_v12 = vadd.f32 %v6702_v10, %v6457_v62 }
 0x3c1   : > { %v4501_v34 = vpop.f32.mrb[80].mxu1 }
 0x3c2   : > { %v6738_v18 = vadd.f32 %v3027_v39, %v2526_v57  ;;  %v3066_v36 = vpop.f32.mrb[81].mxu1  ;;  %v7285_v39 = vld [vmem:[#allocation10_spill] sm:$0xff] }
 0x3c3   : > { %v2806_v53 = vpop.f32.mrb[82].mxu0  ;;  %v2531_v14 = vadd.f32 %v6702_v10, %v7285_v39 }
 0x3c4   : > { %v3032_v6 = vadd.f32 %v4489_v40, %v2806_v53  ;;  %v2808_v48 = vpop.f32.mrb[83].mxu0  ;;  %v7283_v40 = vld [vmem:[#allocation53_spill] sm:$0xff] }
 0x3c5   : > { %v6742_v55 = vpop.f32.mrb[82].mxu1  ;;  %v2529_v30 = vadd.f32 %v6702_v10, %v7283_v40 }
 0x3c6   : > { %v6744_v50 = vadd.f32 %v3032_v6, %v2527_v46  ;;  %v3076_v3 = vpop.f32.mrb[83].mxu1 }
 0x3c7   : > { %v2811_v35 = vpop.f32.mrb[84].mxu0 }
 0x3c8   : > { %v3037_v51 = vadd.f32 %v3036_v37, %v2811_v35  ;;  %v2813_v41 = vpop.f32.mrb[85].mxu0  ;;  %v7284_v37 = vld [vmem:[#allocation55_spill] sm:$0xff]  ;;  %v7286_v35 = vld [vmem:[#allocation8_spill] sm:$0xff] }
 0x3c9   : > { %v6748_v45 = vpop.f32.mrb[84].mxu1  ;;  %v2530_v52 = vadd.f32 %v6702_v10, %v7284_v37 }
 0x3ca   : > { %v6750_v58 = vadd.f32 %v3037_v51, %v2528_v12  ;;  %v6752_v31 = vpop.f32.mrb[85].mxu1  ;;  %v2532_v12 = vadd.f32 %v6702_v10, %v7286_v35 }
 0x3cb   : > { %v2816_v13 = vpop.f32.mrb[86].mxu0 }
 0x3cc   : > { %v3042_v33 = vadd.f32 %v4492_v59, %v2816_v13  ;;  %v2818_v22 = vpop.f32.mrb[87].mxu0 }
 0x3cd   : > { %v6756_v9 = vpop.f32.mrb[86].mxu1 }
 0x3ce   : > { %v6758_v17 = vadd.f32 %v3042_v33, %v2529_v30  ;;  %v6760_v29 = vpop.f32.mrb[87].mxu1  ;;  %v7287_v33 = vld [vmem:[#allocation12_spill] sm:$0xff] }
 0x3cf   : > { %v2821_v62 = vpop.f32.mrb[88].mxu0  ;;  %v2533_v22 = vadd.f32 %v6702_v10, %v7287_v33 }
 0x3d0   : > { %v3047_v54 = vadd.f32 %v3046_v44, %v2821_v62  ;;  %v2823_v26 = vpop.f32.mrb[89].mxu0 }
 0x3d1   : > { %v6764_v21 = vpop.f32.mrb[88].mxu1 }
 0x3d2   : > { %v6766_v0 = vadd.f32 %v3047_v54, %v2530_v52  ;;  %v6768_v57 = vpop.f32.mrb[89].mxu1 }
 0x3d3   : > { %v2826_v59 = vpop.f32.mrb[90].mxu0 }
 0x3d4   : > { %v3052_v53 = vadd.f32 %v4495_v56, %v2826_v59  ;;  %v2828_v16 = vpop.f32.mrb[91].mxu0  ;;  %v7288_v59 = vld [vmem:[#allocation13_spill] sm:$0xff] }
 0x3d5   : > { %v6772_v46 = vpop.f32.mrb[90].mxu1  ;;  %v2534_v39 = vadd.f32 %v6702_v10, %v7288_v59 }
 0x3d6   : > { %v6774_v6 = vadd.f32 %v3052_v53, %v2531_v14  ;;  %v6776_v48 = vpop.f32.mrb[91].mxu1 }
 0x3d7   : > { %v2831_v44 = vpop.f32.mrb[92].mxu0 }
 0x3d8   : > { %v3057_v51 = vadd.f32 %v3056_v4, %v2831_v44  ;;  %v2833_v41 = vpop.f32.mrb[93].mxu0 }
 0x3d9   : > { %v6780_v13 = vpop.f32.mrb[92].mxu1 }
 0x3da   : > { %v6782_v40 = vadd.f32 %v3057_v51, %v2532_v12  ;;  %v6784_v30 = vpop.f32.mrb[93].mxu1 }
 0x3db   : > { %v2836_v56 = vpop.f32.mrb[94].mxu0 }
 0x3dc   : > { %v3062_v62 = vadd.f32 %v4498_v11, %v2836_v56  ;;  %v2838_v37 = vpop.f32.mrb[95].mxu0  ;;  %v7289_v11 = vld [vmem:[#allocation14_spill] sm:$0xff] }
 0x3dd   : > { %v6788_v52 = vpop.f32.mrb[94].mxu1  ;;  %v2535_v51 = vadd.f32 %v6702_v10, %v7289_v11 }
 0x3de   : > { %v6790_v54 = vadd.f32 %v3062_v62, %v2533_v22  ;;  %v6792_v26 = vpop.f32.mrb[95].mxu1 }
 0x3df   : > { %v2841_v4 = vpop.f32.mrb[96].mxu0 }
 0x3e0   : > { %v3067_v14 = vadd.f32 %v3066_v36, %v2841_v4  ;;  %v2843_v53 = vpop.f32.mrb[97].mxu0  ;;  %v2536_v36 = vadd.f32 %v6702_v10, %v6545_v43 }
 0x3e1   : > { %v6796_v16 = vpop.f32.mrb[96].mxu1 }
 0x3e2   : > { %v6798_v44 = vadd.f32 %v3067_v14, %v2534_v39  ;;  %v3391_v35 = vpop.f32.mrb[97].mxu1 }
 0x3e3   : > { %v2846_v12 = vpop.f32.mrb[98].mxu0 }
 0x3e4   : > { %v3072_v41 = vadd.f32 %v4501_v34, %v2846_v12  ;;  %v2848_v56 = vpop.f32.mrb[99].mxu0  ;;  %v2537_v34 = vadd.f32 %v6702_v10, %v6549_v42 }
 0x3e5   : > { %v6802_v33 = vpop.f32.mrb[98].mxu1 }
 0x3e6   : > { %v6804_v22 = vadd.f32 %v3072_v41, %v2535_v51  ;;  %v3396_v62 = vpop.f32.mrb[99].mxu1 }
 0x3e7   : > { %v2851_v37 = vpop.f32.mrb[100].mxu0 }
 0x3e8   : > { %v3077_v4 = vadd.f32 %v3076_v3, %v2851_v37  ;;  %v2853_v59 = vpop.f32.mrb[101].mxu0  ;;  %v2538_v3 = vadd.f32 %v6702_v10, %v6561_v47 }
 0x3e9   : > { %v6808_v39 = vpop.f32.mrb[100].mxu1 }
 0x3ea   : > { %v6810_v14 = vadd.f32 %v3077_v4, %v2536_v36  ;;  %v3401_v53 = vpop.f32.mrb[101].mxu1 }
 0x3eb   : > { %v2856_v35 = vpop.f32.mrb[102].mxu0 }
 0x3ec   : > { %v3082_v12 = vadd.f32 %v6742_v55, %v2856_v35  ;;  %v2858_v11 = vpop.f32.mrb[103].mxu0  ;;  %v2539_v55 = vadd.f32 %v6702_v10, %v6568_v2 }
 0x3ed   : > { %v6815_v51 = vpop.f32.mrb[102].mxu1 }
 0x3ee   : > { %v6817_v41 = vadd.f32 %v3082_v12, %v2537_v34  ;;  %v3406_v56 = vpop.f32.mrb[103].mxu1 }
 0x3ef   : > { %v2861_v43 = vpop.f32.mrb[104].mxu0 }
 0x3f0   : > { %v3087_v62 = vadd.f32 %v6752_v31, %v2861_v43  ;;  %v2863_v37 = vpop.f32.mrb[105].mxu0  ;;  %v2540_v31 = vadd.f32 %v6702_v10, %v6585_v28 }
 0x3f1   : > { %v6822_v36 = vpop.f32.mrb[104].mxu1 }
 0x3f2   : > { %v6824_v4 = vadd.f32 %v3087_v62, %v2538_v3  ;;  %v3411_v42 = vpop.f32.mrb[105].mxu1 }
 0x3f3   : > { %v2866_v59 = vpop.f32.mrb[106].mxu0 }
 0x3f4   : > { %v3092_v53 = vadd.f32 %v6748_v45, %v2866_v59  ;;  %v2868_v35 = vpop.f32.mrb[107].mxu0  ;;  %v2541_v45 = vadd.f32 %v6702_v10, %v6589_v8 }
 0x3f5   : > { %v6829_v34 = vpop.f32.mrb[106].mxu1 }
 0x3f6   : > { %v6831_v12 = vadd.f32 %v3092_v53, %v2539_v55  ;;  %v3416_v47 = vpop.f32.mrb[107].mxu1 }
 0x3f7   : > { %v2871_v11 = vpop.f32.mrb[108].mxu0 }
 0x3f8   : > { %v3097_v56 = vadd.f32 %v6760_v29, %v2871_v11  ;;  %v2873_v43 = vpop.f32.mrb[109].mxu0  ;;  %v2542_v29 = vadd.f32 %v6702_v10, %v6601_v15 }
 0x3f9   : > { %v6836_v3 = vpop.f32.mrb[108].mxu1 }
 0x3fa   : > { %v6838_v62 = vadd.f32 %v3097_v56, %v2540_v31  ;;  %v3421_v2 = vpop.f32.mrb[109].mxu1 }
 0x3fb   : > { %v2876_v37 = vpop.f32.mrb[110].mxu0 }
 0x3fc   : > { %v3102_v42 = vadd.f32 %v6756_v9, %v2876_v37  ;;  %v2878_v59 = vpop.f32.mrb[111].mxu0  ;;  %v2543_v9 = vadd.f32 %v6702_v10, %v6605_v60 }
 0x3fd   : > { %v6843_v55 = vpop.f32.mrb[110].mxu1 }
 0x3fe   : > { %v6845_v53 = vadd.f32 %v3102_v42, %v2541_v45  ;;  %v3426_v28 = vpop.f32.mrb[111].mxu1 }
 0x3ff   : > { %v2881_v35 = vpop.f32.mrb[112].mxu0 }
 0x400   : > { %v3107_v47 = vadd.f32 %v6768_v57, %v2881_v35  ;;  %v2883_v11 = vpop.f32.mrb[113].mxu0  ;;  %v2544_v57 = vadd.f32 %v6702_v10, %v6670_v27 }
 0x401   : > { %v6850_v31 = vpop.f32.mrb[112].mxu1 }
 0x402   : > { %v6852_v56 = vadd.f32 %v3107_v47, %v2542_v29  ;;  %v3431_v8 = vpop.f32.mrb[113].mxu1 }
 0x403   : > { %v2886_v43 = vpop.f32.mrb[114].mxu0 }
 0x404   : > { %v3112_v2 = vadd.f32 %v6764_v21, %v2886_v43  ;;  %v2888_v37 = vpop.f32.mrb[115].mxu0  ;;  %v2545_v21 = vadd.f32 %v6702_v10, %v6673_v19 }
 0x405   : > { %v6857_v45 = vpop.f32.mrb[114].mxu1 }
 0x406   : > { %v6859_v42 = vadd.f32 %v3112_v2, %v2543_v9  ;;  %v3436_v15 = vpop.f32.mrb[115].mxu1 }
 0x407   : > { %v2891_v59 = vpop.f32.mrb[116].mxu0 }
 0x408   : > { %v3117_v28 = vadd.f32 %v6776_v48, %v2891_v59  ;;  %v2893_v35 = vpop.f32.mrb[117].mxu0  ;;  %v2546_v48 = vadd.f32 %v6702_v10, %v6691_v23 }
 0x409   : > { %v6864_v29 = vpop.f32.mrb[116].mxu1 }
 0x40a   : > { %v6866_v47 = vadd.f32 %v3117_v28, %v2544_v57  ;;  %v3441_v60 = vpop.f32.mrb[117].mxu1 }
 0x40b   : > { %v2896_v11 = vpop.f32.mrb[118].mxu0 }
 0x40c   : > { %v3122_v8 = vadd.f32 %v6772_v46, %v2896_v11  ;;  %v2898_v43 = vpop.f32.mrb[119].mxu0  ;;  %v2547_v46 = vadd.f32 %v6702_v10, %v6693_v5 }
 0x40d   : > { %v6871_v9 = vpop.f32.mrb[118].mxu1 }
 0x40e   : > { %v6873_v2 = vadd.f32 %v3122_v8, %v2545_v21  ;;  %v3446_v27 = vpop.f32.mrb[119].mxu1 }
 0x40f   : > { %v2901_v37 = vpop.f32.mrb[120].mxu0 }
 0x410   : > { %v3127_v15 = vadd.f32 %v6784_v30, %v2901_v37  ;;  %v2903_v59 = vpop.f32.mrb[121].mxu0  ;;  %v2548_v30 = vadd.f32 %v6702_v10, %v6695_v32 }
 0x411   : > { %v6878_v57 = vpop.f32.mrb[120].mxu1  ;;  %v2549_v59 = vadd.f32 %v6702_v10, %v6697_v61 }
 0x412   : > { %v6880_v28 = vadd.f32 %v3127_v15, %v2546_v48  ;;  %v3451_v19 = vpop.f32.mrb[121].mxu1 }
 0x413   : > { %v2906_v35 = vpop.f32.mrb[122].mxu0 }
 0x414   : > { %v3132_v60 = vadd.f32 %v6780_v13, %v2906_v35  ;;  %v2908_v11 = vpop.f32.mrb[123].mxu0 }
 0x415   : > { %v6885_v21 = vpop.f32.mrb[122].mxu1 }
 0x416   : > { %v6887_v8 = vadd.f32 %v3132_v60, %v2547_v46  ;;  %v3456_v23 = vpop.f32.mrb[123].mxu1 }
 0x417   : > { %v2911_v43 = vpop.f32.mrb[124].mxu0 }
 0x418   : > { %v3137_v27 = vadd.f32 %v6792_v26, %v2911_v43  ;;  %v2913_v37 = vpop.f32.mrb[125].mxu0 }
 0x419   : > { %v6892_v48 = vpop.f32.mrb[124].mxu1 }
 0x41a   : > { %v6894_v15 = vadd.f32 %v3137_v27, %v2548_v30  ;;  %v3461_v5 = vpop.f32.mrb[125].mxu1 }
 0x41b   : > { %v2916_v13 = vpop.f32.mrb[126].mxu0 }
 0x41c   : > { %v3142_v19 = vadd.f32 %v6788_v52, %v2916_v13  ;;  %v2918_v35 = vpop.f32.mrb[127].mxu0 }
 0x41d   : > { %v6899_v46 = vpop.f32.mrb[126].mxu1 }
 0x41e   : > { %v6901_v60 = vadd.f32 %v3142_v19, %v2549_v59  ;;  %v3466_v32 = vpop.f32.mrb[127].mxu1 }
 0x41f   : > { %v4557_v26 = vpop.f32.mrb[128].mxu0 }
 0x420   : > { %v3620_v11 = vadd.f32 %v4557_v26, %v6802_v33  ;;  %v3614_v23 = vpop.f32.mrb[129].mxu0 }
 0x421   : > { %v3615_v43 = vadd.f32 %v3614_v23, %v6796_v16  ;;  %v6905_v30 = vpop.f32.mrb[128].mxu1 }
 0x422   : > { %v3774_v27 = vadd.f32 %v3620_v11, %v6710_v38  ;;  %v3471_v37 = vpop.f32.mrb[129].mxu1 }
 0x423   : > { %v3773_v61 = vadd.f32 %v3615_v43, %v6708_v20  ;;  %v4560_v10 = vpop.f32.mrb[130].mxu0 }
 0x424   : > { %v3806_v52 = vmax.f32 %v3774_v27, 0.0  ;;  %v3630_v33 = vadd.f32 %v4560_v10, %v6815_v51  ;;  %v3624_v16 = vpop.f32.mrb[131].mxu0 }
 0x425   : > { %v3805_v5 = vmax.f32 %v3773_v61, 0.0  ;;  %v3625_v38 = vadd.f32 %v3624_v16, %v6808_v39  ;;  %v6918_v13 = vpop.f32.mrb[130].mxu1 }
 0x426   : > { %3838 = vst.msk [vmem:[%s6913_s15 + $0x8] sm:$0xff] %vm729_vm4, %v3806_v52  ;;  %v3776_v59 = vadd.f32 %v3630_v33, %v6718_v63  ;;  %v3476_v19 = vpop.f32.mrb[131].mxu1 }
 0x427   : > { %3837 = vst.msk [vmem:[%s6913_s15] sm:$0xff] %vm729_vm4, %v3805_v5  ;;  %v3775_v20 = vadd.f32 %v3625_v38, %v6714_v49  ;;  %v4563_v35 = vpop.f32.mrb[132].mxu0 }
 0x428   : > { %v3808_v32 = vmax.f32 %v3776_v59, 0.0  ;;  %v3640_v51 = vadd.f32 %v4563_v35, %v6829_v34  ;;  %v3634_v26 = vpop.f32.mrb[133].mxu0 }
 0x429   : > { %v3807_v11 = vmax.f32 %v3775_v20, 0.0  ;;  %v3635_v39 = vadd.f32 %v3634_v26, %v6822_v36  ;;  %v6928_v23 = vpop.f32.mrb[132].mxu1 }
 0x42a   : > { %3840 = vst.msk [vmem:[%s6913_s15 + $0x18] sm:$0xff] %vm729_vm4, %v3808_v32  ;;  %v3778_v63 = vadd.f32 %v3640_v51, %v6726_v24  ;;  %v3481_v43 = vpop.f32.mrb[133].mxu1 }
 0x42b   : > { %3839 = vst.msk [vmem:[%s6913_s15 + $0x10] sm:$0xff] %vm729_vm4, %v3807_v11  ;;  %v3777_v49 = vadd.f32 %v3635_v39, %v6722_v25  ;;  %v4566_v27 = vpop.f32.mrb[134].mxu0 }
 0x42c   : > { %v3810_v37 = vmax.f32 %v3778_v63, 0.0  ;;  %v3650_v34 = vadd.f32 %v4566_v27, %v6843_v55  ;;  %v3644_v61 = vpop.f32.mrb[135].mxu0 }
 0x42d   : > { %v3809_v10 = vmax.f32 %v3777_v49, 0.0  ;;  %v3645_v36 = vadd.f32 %v3644_v61, %v6836_v3  ;;  %v6938_v52 = vpop.f32.mrb[134].mxu1 }
 0x42e   : > { %3842 = vst.msk [vmem:[%s6913_s15 + $0x28] sm:$0xff] %vm729_vm4, %v3810_v37  ;;  %v3780_v24 = vadd.f32 %v3650_v34, %v6734_v1  ;;  %v3486_v33 = vpop.f32.mrb[135].mxu1 }
 0x42f   : > { %3841 = vst.msk [vmem:[%s6913_s15 + $0x20] sm:$0xff] %vm729_vm4, %v3809_v10  ;;  %v3779_v25 = vadd.f32 %v3645_v36, %v6730_v7  ;;  %v4569_v16 = vpop.f32.mrb[136].mxu0 }
 0x430   : > { %v3812_v5 = vmax.f32 %v3780_v24, 0.0  ;;  %v3660_v55 = vadd.f32 %v4569_v16, %v6857_v45  ;;  %v3654_v38 = vpop.f32.mrb[137].mxu0 }
 0x431   : > { %v3811_v59 = vmax.f32 %v3779_v25, 0.0  ;;  %v3655_v3 = vadd.f32 %v3654_v38, %v6850_v31  ;;  %v6948_v19 = vpop.f32.mrb[136].mxu1 }
 0x432   : > { %3844 = vst.msk [vmem:[%s6913_s15 + $0x38] sm:$0xff] %vm729_vm4, %v3812_v5  ;;  %v3782_v1 = vadd.f32 %v3660_v55, %v6744_v50  ;;  %v3491_v20 = vpop.f32.mrb[137].mxu1 }
 0x433   : > { %3843 = vst.msk [vmem:[%s6913_s15 + $0x30] sm:$0xff] %vm729_vm4, %v3811_v59  ;;  %v3781_v7 = vadd.f32 %v3655_v3, %v6738_v18  ;;  %v4572_v35 = vpop.f32.mrb[138].mxu0 }
 0x434   : > { %v3814_v32 = vmax.f32 %v3782_v1, 0.0  ;;  %v3670_v45 = vadd.f32 %v4572_v35, %v6871_v9  ;;  %v3664_v51 = vpop.f32.mrb[139].mxu0 }
 0x435   : > { %v3813_v26 = vmax.f32 %v3781_v7, 0.0  ;;  %v3665_v31 = vadd.f32 %v3664_v51, %v6864_v29  ;;  %v3494_v11 = vpop.f32.mrb[138].mxu1 }
 0x436   : > { %3846 = vst.msk [vmem:[%s6913_s15 + $0x48] sm:$0xff] %vm729_vm4, %v3814_v32  ;;  %v3784_v50 = vadd.f32 %v3670_v45, %v6758_v17  ;;  %v3496_v39 = vpop.f32.mrb[139].mxu1 }
 0x437   : > { %3845 = vst.msk [vmem:[%s6913_s15 + $0x40] sm:$0xff] %vm729_vm4, %v3813_v26  ;;  %v3783_v18 = vadd.f32 %v3665_v31, %v6750_v58  ;;  %v4575_v63 = vpop.f32.mrb[140].mxu0 }
 0x438   : > { %v3816_v43 = vmax.f32 %v3784_v50, 0.0  ;;  %v3680_v9 = vadd.f32 %v4575_v63, %v6885_v21  ;;  %v3674_v49 = vpop.f32.mrb[141].mxu0 }
 0x439   : > { %v3815_v27 = vmax.f32 %v3783_v18, 0.0  ;;  %v3675_v29 = vadd.f32 %v3674_v49, %v6878_v57  ;;  %v3499_v37 = vpop.f32.mrb[140].mxu1 }
 0x43a   : > { %3848 = vst.msk [vmem:[%s6913_s15 + $0x58] sm:$0xff] %vm729_vm4, %v3816_v43  ;;  %v3786_v17 = vadd.f32 %v3680_v9, %v6774_v6  ;;  %v3501_v34 = vpop.f32.mrb[141].mxu1 }
 0x43b   : > { %3847 = vst.msk [vmem:[%s6913_s15 + $0x50] sm:$0xff] %vm729_vm4, %v3815_v27  ;;  %v3785_v58 = vadd.f32 %v3675_v29, %v6766_v0  ;;  %v4578_v61 = vpop.f32.mrb[142].mxu0 }
 0x43c   : > { %v3818_v10 = vmax.f32 %v3786_v17, 0.0  ;;  %v3690_v21 = vadd.f32 %v4578_v61, %v6899_v46  ;;  %v3684_v36 = vpop.f32.mrb[143].mxu0 }
 0x43d   : > { %v3817_v24 = vmax.f32 %v3785_v58, 0.0  ;;  %v3685_v57 = vadd.f32 %v3684_v36, %v6892_v48  ;;  %v3504_v33 = vpop.f32.mrb[142].mxu1 }
 0x43e   : > { %3850 = vst.msk [vmem:[%s6913_s15 + $0x68] sm:$0xff] %vm729_vm4, %v3818_v10  ;;  %v3788_v6 = vadd.f32 %v3690_v21, %v6790_v54  ;;  %v3506_v25 = vpop.f32.mrb[143].mxu1 }
 0x43f   : > { %3849 = vst.msk [vmem:[%s6913_s15 + $0x60] sm:$0xff] %vm729_vm4, %v3817_v24  ;;  %v3787_v0 = vadd.f32 %v3685_v57, %v6782_v40  ;;  %v4581_v16 = vpop.f32.mrb[144].mxu0 }
 0x440   : > { %v3820_v5 = vmax.f32 %v3788_v6, 0.0  ;;  %v3700_v46 = vadd.f32 %v4581_v16, %v6918_v13  ;;  %v3694_v55 = vpop.f32.mrb[145].mxu0 }
 0x441   : > { %v3819_v38 = vmax.f32 %v3787_v0, 0.0  ;;  %v3695_v48 = vadd.f32 %v3694_v55, %v6905_v30  ;;  %v3509_v59 = vpop.f32.mrb[144].mxu1 }
 0x442   : > { %3852 = vst.msk [vmem:[%s6913_s15 + $0x78] sm:$0xff] %vm729_vm4, %v3820_v5  ;;  %v3790_v54 = vadd.f32 %v3700_v46, %v6804_v22  ;;  %v3511_v3 = vpop.f32.mrb[145].mxu1 }
 0x443   : > { %3851 = vst.msk [vmem:[%s6913_s15 + $0x70] sm:$0xff] %vm729_vm4, %v3819_v38  ;;  %v3789_v40 = vadd.f32 %v3695_v48, %v6798_v44  ;;  %v4584_v1 = vpop.f32.mrb[146].mxu0 }
 0x444   : > { %v3822_v20 = vmax.f32 %v3790_v54, 0.0  ;;  %v3710_v13 = vadd.f32 %v4584_v1, %v6938_v52  ;;  %v3704_v7 = vpop.f32.mrb[147].mxu0 }
 0x445   : > { %v3821_v35 = vmax.f32 %v3789_v40, 0.0  ;;  %v3705_v30 = vadd.f32 %v3704_v7, %v6928_v23  ;;  %v3514_v32 = vpop.f32.mrb[146].mxu1 }
 0x446   : > { %3854 = vst.msk [vmem:[%s6913_s15 + $0x88] sm:$0xff] %vm729_vm4, %v3822_v20  ;;  %v3792_v22 = vadd.f32 %v3710_v13, %v6817_v41  ;;  %v3516_v45 = vpop.f32.mrb[147].mxu1 }
 0x447   : > { %3853 = vst.msk [vmem:[%s6913_s15 + $0x80] sm:$0xff] %vm729_vm4, %v3821_v35  ;;  %v3791_v44 = vadd.f32 %v3705_v30, %v6810_v14  ;;  %v4587_v51 = vpop.f32.mrb[148].mxu0 }
 0x448   : > { %v3824_v26 = vmax.f32 %v3792_v22, 0.0  ;;  %v3720_v31 = vadd.f32 %v4587_v51, %v3494_v11  ;;  %v3714_v52 = vpop.f32.mrb[149].mxu0 }
 0x449   : > { %v3823_v50 = vmax.f32 %v3791_v44, 0.0  ;;  %v3715_v39 = vadd.f32 %v3714_v52, %v6948_v19  ;;  %v3519_v23 = vpop.f32.mrb[148].mxu1 }
 0x44a   : > { %3856 = vst.msk [vmem:[%s6913_s15 + $0x98] sm:$0xff] %vm729_vm4, %v3824_v26  ;;  %v3794_v18 = vadd.f32 %v3720_v31, %v6831_v12  ;;  %v3521_v41 = vpop.f32.mrb[149].mxu1 }
 0x44b   : > { %3855 = vst.msk [vmem:[%s6913_s15 + $0x90] sm:$0xff] %vm729_vm4, %v3823_v50  ;;  %v3793_v63 = vadd.f32 %v3715_v39, %v6824_v4  ;;  %v4590_v14 = vpop.f32.mrb[150].mxu0 }
 0x44c   : > { %v3826_v43 = vmax.f32 %v3794_v18, 0.0  ;;  %v3730_v9 = vadd.f32 %v4590_v14, %v3504_v33  ;;  %v3724_v11 = vpop.f32.mrb[151].mxu0 }
 0x44d   : > { %v3825_v49 = vmax.f32 %v3793_v63, 0.0  ;;  %v3725_v27 = vadd.f32 %v3724_v11, %v3499_v37  ;;  %v3524_v29 = vpop.f32.mrb[150].mxu1 }
 0x44e   : > { %3858 = vst.msk [vmem:[%s6913_s15 + $0xa8] sm:$0xff] %vm729_vm4, %v3826_v43  ;;  %v3796_v19 = vadd.f32 %v3730_v9, %v6845_v53  ;;  %v3526_v17 = vpop.f32.mrb[151].mxu1 }
 0x44f   : > { %3857 = vst.msk [vmem:[%s6913_s15 + $0xa0] sm:$0xff] %vm729_vm4, %v3825_v49  ;;  %v3795_v12 = vadd.f32 %v3725_v27, %v6838_v62  ;;  %v4593_v34 = vpop.f32.mrb[152].mxu0 }
 0x450   : > { %v3828_v4 = vmax.f32 %v3796_v19, 0.0  ;;  %v3740_v58 = vadd.f32 %v4593_v34, %v3514_v32  ;;  %v3734_v61 = vpop.f32.mrb[153].mxu0 }
 0x451   : > { %v3827_v10 = vmax.f32 %v3795_v12, 0.0  ;;  %v3735_v21 = vadd.f32 %v3734_v61, %v3509_v59  ;;  %v3529_v36 = vpop.f32.mrb[152].mxu1 }
 0x452   : > { %3860 = vst.msk [vmem:[%s6913_s15 + $0xb8] sm:$0xff] %vm729_vm4, %v3828_v4  ;;  %v3798_v37 = vadd.f32 %v3740_v58, %v6859_v42  ;;  %v3531_v24 = vpop.f32.mrb[153].mxu1 }
 0x453   : > { %3859 = vst.msk [vmem:[%s6913_s15 + $0xb0] sm:$0xff] %vm729_vm4, %v3827_v10  ;;  %v3797_v53 = vadd.f32 %v3735_v21, %v6852_v56  ;;  %v4596_v57 = vpop.f32.mrb[154].mxu0 }
 0x454   : > { %v3830_v62 = vmax.f32 %v3798_v37, 0.0  ;;  %v3750_v33 = vadd.f32 %v4596_v57, %v3524_v29  ;;  %v3744_v6 = vpop.f32.mrb[155].mxu0 }
 0x455   : > { %v3829_v25 = vmax.f32 %v3797_v53, 0.0  ;;  %v3745_v0 = vadd.f32 %v3744_v6, %v3519_v23  ;;  %v3534_v16 = vpop.f32.mrb[154].mxu1 }
 0x456   : > { %3862 = vst.msk [vmem:[%s6913_s15 + $0xc8] sm:$0xff] %vm729_vm4, %v3830_v62  ;;  %v3800_v5 = vadd.f32 %v3750_v33, %v6873_v2  ;;  %v3536_v46 = vpop.f32.mrb[155].mxu1 }
 0x457   : > { %3861 = vst.msk [vmem:[%s6913_s15 + $0xc0] sm:$0xff] %vm729_vm4, %v3829_v25  ;;  %v3799_v42 = vadd.f32 %v3745_v0, %v6866_v47  ;;  %v4599_v55 = vpop.f32.mrb[156].mxu0 }
 0x458   : > { %v3832_v56 = vmax.f32 %v3800_v5, 0.0  ;;  %v3760_v38 = vadd.f32 %v4599_v55, %v3534_v16  ;;  %v3754_v48 = vpop.f32.mrb[157].mxu0 }
 0x459   : > { %v3831_v59 = vmax.f32 %v3799_v42, 0.0  ;;  %v3755_v54 = vadd.f32 %v3754_v48, %v3529_v36  ;;  %v3539_v3 = vpop.f32.mrb[156].mxu1 }
 0x45a   : > { %3864 = vst.msk [vmem:[%s6913_s15 + $0xd8] sm:$0xff] %vm729_vm4, %v3832_v56  ;;  %v3802_v40 = vadd.f32 %v3760_v38, %v6887_v8  ;;  %v3541_v1 = vpop.f32.mrb[157].mxu1 }
 0x45b   : > { %3863 = vst.msk [vmem:[%s6913_s15 + $0xd0] sm:$0xff] %vm729_vm4, %v3831_v59  ;;  %v3801_v2 = vadd.f32 %v3755_v54, %v6880_v28  ;;  %v4602_v47 = vpop.f32.mrb[158].mxu0 }
 0x45c   : > { %v3834_v20 = vmax.f32 %v3802_v40, 0.0  ;;  %v3764_v13 = vpop.f32.mrb[159].mxu0 }
 0x45d   : > { %v3833_v7 = vmax.f32 %v3801_v2, 0.0  ;;  %v3765_v35 = vadd.f32 %v3764_v13, %v3539_v3  ;;  %v3544_v30 = vpop.f32.mrb[158].mxu1 }
 0x45e   : > { %3866 = vst.msk [vmem:[%s6913_s15 + $0xe8] sm:$0xff] %vm729_vm4, %v3834_v20  ;;  %v3770_v32 = vadd.f32 %v4602_v47, %v3544_v30  ;;  %v3546_v22 = vpop.f32.mrb[159].mxu1 }
 0x45f   : > { %3865 = vst.msk [vmem:[%s6913_s15 + $0xe0] sm:$0xff] %vm729_vm4, %v3833_v7  ;;  %v3803_v8 = vadd.f32 %v3765_v35, %v6894_v15 }
 0x460   : > { %v3804_v45 = vadd.f32 %v3770_v32, %v6901_v60 }
 0x461   : > { %v3835_v44 = vmax.f32 %v3803_v8, 0.0 }
 0x462   : > { %v3836_v51 = vmax.f32 %v3804_v45, 0.0 }
 0x463   : > { %3867 = vst.msk [vmem:[%s6913_s15 + $0xf0] sm:$0xff] %vm729_vm4, %v3835_v44 }
 0x464   : > { %3868 = vst.msk [vmem:[%s6913_s15 + $0xf8] sm:$0xff] %vm729_vm4, %v3836_v51 }
 0x465 PF: > { %s16_s18 = sadd.s32 1, %s4917_s18  }
 0x466   : > { %p13_p3 = scmp.ge.s32.totalorder %s16_s18, 4  }
 0x468   :  { %15 = sbr.rel (!%p13_p3) target bundleno = 1 (0x1), region = 83 }
 0x46f   :  { %3890 = vsyncpa [#allocation5], 1 }
 0x470   :  { %3892 = vsyncpa [#allocation5 + $0x1], 1 }

</bundles_post_ra>
